<compile_context>
chip_gen: v5e
topology: v5e:2x2
jax: 0.10.0
libtpu: 0.0.40
codegen_flags: <defaults>
</compile_context>

<pallas_src>
import jax
import jax.numpy as jnp
from jax.experimental import pallas as pl
from jax.experimental.pallas import tpu as pltpu

# ---- scaled-down "bert-base-like" config (structure preserved) ----
VOCAB        = 64
HIDDEN       = 128    # bert-base: 768
N_LAYERS     = 2      # bert-base: 12
N_HEADS      = 2      # bert-base: 12
HEAD_DIM     = HIDDEN // N_HEADS
INTERMEDIATE = 512    # bert-base: 3072
MAX_POS      = 32
FC1_OUT      = 512    # module: nn.Linear(768, 512) -> here Linear(HIDDEN, 512)
N_CLASSES    = 2
CLS_PAD      = 128    # fc2 output padded to a full lane width
OUT_ROWS     = 8      # sublane-padded rows of the per-sequence output tile
LN_EPS       = 1e-12


# ----------------------------- kernel helpers -----------------------------
def _layernorm(x, g, b):
    mu = jnp.mean(x, axis=-1, keepdims=True)
    var = jnp.mean((x - mu) ** 2, axis=-1, keepdims=True)
    return (x - mu) * jax.lax.rsqrt(var + LN_EPS) * g + b


def _gelu(x):
    # TODO(synk): bert-base uses exact (erf) GELU; tanh approximation differs ~1e-3.
    c = 0.7978845608028654  # sqrt(2/pi)
    return 0.5 * x * (1.0 + jnp.tanh(c * (x + 0.044715 * x * x * x)))


def _bf16(x):
    return x.astype(jnp.bfloat16)


# ---------------- fused encoder (all layers) + pooler + classifier ----------------
def _make_fused_kernel(S):
    scale = 1.0 / (HEAD_DIM ** 0.5)

    def kernel(x_ref, bias_ref,
               wqkv_ref, bqkv_ref, wo_ref, bo_ref, ln1g_ref, ln1b_ref,
               wi_ref, bi_ref, wo2_ref, bo2_ref, ln2g_ref, ln2b_ref,
               wp_ref, bp_ref, w1_ref, b1_ref, w2_ref, b2_ref,
               out_ref, ctx_scr):
        bias = bias_ref[0]                      # (1, S) additive key mask (BERT-style)
        x = x_ref[...]                          # (S, H) f32 — one sequence per block

        # ----- all encoder layers, looped in-kernel (weights fully resident) -----
        for l in range(N_LAYERS):
            xb = _bf16(x)
            # fused QKV projection: one (S,H) @ (H,3H) matmul
            qkv = jnp.dot(xb, wqkv_ref[l],
                          preferred_element_type=jnp.float32) + bqkv_ref[l]

            for h in range(N_HEADS):
                q = _bf16(qkv[:, h * HEAD_DIM:(h + 1) * HEAD_DIM])
                k = _bf16(qkv[:, HIDDEN + h * HEAD_DIM: HIDDEN + (h + 1) * HEAD_DIM])
                v = _bf16(qkv[:, 2 * HIDDEN + h * HEAD_DIM: 2 * HIDDEN + (h + 1) * HEAD_DIM])
                s = jnp.einsum('qd,kd->qk', q, k,
                               preferred_element_type=jnp.float32) * scale + bias
                s = s - jnp.max(s, axis=-1, keepdims=True)
                p = jnp.exp(s)
                p = p / jnp.sum(p, axis=-1, keepdims=True)   # exact division
                # attention-prob dropout is identity in eval mode
                # per-head context written into the VMEM scratch (no concatenates)
                ctx_scr[:, h * HEAD_DIM:(h + 1) * HEAD_DIM] = jnp.dot(
                    _bf16(p), v, preferred_element_type=jnp.float32)

            attn = jnp.dot(_bf16(ctx_scr[...]), wo_ref[l],
                           preferred_element_type=jnp.float32) + bo_ref[l]
            h1 = _layernorm(x + attn, ln1g_ref[l], ln1b_ref[l])

            ffn = _gelu(jnp.dot(_bf16(h1), wi_ref[l],
                                preferred_element_type=jnp.float32) + bi_ref[l])
            ffn = jnp.dot(_bf16(ffn), wo2_ref[l],
                          preferred_element_type=jnp.float32) + bo2_ref[l]
            x = _layernorm(h1 + ffn, ln2g_ref[l], ln2b_ref[l])

        # ----- pooler + fc1/relu/(dropout=id)/fc2 + log-softmax -----
        # Row 0 of this sequence's block is the CLS token; run the head on the first
        # 8 rows (one sublane tile, zero extra cost) and keep only row 0 outside.
        cls = x[:OUT_ROWS, :]
        pooled = jnp.tanh(jnp.dot(_bf16(cls), wp_ref[...],
                                  preferred_element_type=jnp.float32) + bp_ref[...])
        # fc1 -> relu ; nn.Dropout(0.1) is identity in eval mode
        z = jnp.maximum(jnp.dot(_bf16(pooled), w1_ref[...],
                                preferred_element_type=jnp.float32) + b1_ref[...], 0.0)
        # fc2 (padded to 128 lanes; padded cols have bias -1e9 so exp()==0)
        logits = jnp.dot(_bf16(z), w2_ref[...],
                         preferred_element_type=jnp.float32) + b2_ref[...]
        # LogSoftmax(dim=1)
        logits = logits - jnp.max(logits, axis=-1, keepdims=True)
        out_ref[0] = logits - jnp.log(jnp.sum(jnp.exp(logits), axis=-1, keepdims=True))

    return kernel


def fused_encoder_and_head(x_flat, attn_bias, p):
    BT, H = x_flat.shape
    B = attn_bias.shape[0]
    S = attn_bias.shape[2]
    assert BT == B * S and H == HIDDEN and S >= OUT_ROWS

    kernel = _make_fused_kernel(S)

    layer_args = [p['wqkv'], p['bqkv'], p['wo'], p['bo'], p['ln1g'], p['ln1b'],
                  p['wi'], p['bi'], p['wo2'], p['bo2'], p['ln2g'], p['ln2b']]
    head_args = [p['wp'], p['bp'], p['w1'], p['b1'], p['w2p'], p['b2p']]

    # Constant-index full blocks: DMA'd once, reused across all grid steps.
    # (Could add pipeline_mode=pl.Buffered(1) to drop the idle second buffer; the
    #  whole weight set is ~1 MB here so the default is already well within VMEM.)
    const3 = lambda b: (0, 0, 0)
    const2 = lambda b: (0, 0)

    in_specs = (
        [pl.BlockSpec((S, H), lambda b: (b, 0)),            # one sequence of tokens
         pl.BlockSpec((1, 1, S), lambda b: (b, 0, 0))]      # its additive key mask
        + [pl.BlockSpec(a.shape, const3) for a in layer_args]
        + [pl.BlockSpec(a.shape, const2) for a in head_args])

    return pl.pallas_call(
        kernel,
        out_shape=jax.ShapeDtypeStruct((B, OUT_ROWS, CLS_PAD), jnp.float32),
        grid_spec=pltpu.PrefetchScalarGridSpec(
            num_scalar_prefetch=0,
            grid=(B,),                                       # real parallel extent (v7x: 2 TCs)
            in_specs=in_specs,
            out_specs=pl.BlockSpec((1, OUT_ROWS, CLS_PAD), lambda b: (b, 0, 0)),
            scratch_shapes=[pltpu.VMEM((S, HIDDEN), jnp.float32)]),   # per-layer ctx
        compiler_params=pltpu.CompilerParams(
            dimension_semantics=("parallel",)),
    )(x_flat, attn_bias, *layer_args, *head_args)


# ------------------------------ params & forward ------------------------------
def init_params(key):
    ks = iter(jax.random.split(key, 16))
    L, H, I = N_LAYERS, HIDDEN, INTERMEDIATE

    def w(shape, dtype=jnp.bfloat16):
        return (0.02 * jax.random.normal(next(ks), shape, jnp.float32)).astype(dtype)

    p = {
        'word_emb': w((VOCAB, H), jnp.float32),
        'pos_emb':  w((MAX_POS, H), jnp.float32),
        'type_emb': w((2, H), jnp.float32),
        'emb_ln_g': jnp.ones((H,), jnp.float32),
        'emb_ln_b': jnp.zeros((H,), jnp.float32),
        # stacked per-layer encoder weights (layer axis leading); matrices in bf16
        'wqkv': w((L, H, 3 * H)),
        'bqkv': jnp.zeros((L, 1, 3 * H), jnp.float32),
        'wo':   w((L, H, H)),
        'bo':   jnp.zeros((L, 1, H), jnp.float32),
        'ln1g': jnp.ones((L, 1, H), jnp.float32),
        'ln1b': jnp.zeros((L, 1, H), jnp.float32),
        'wi':   w((L, H, I)),
        'bi':   jnp.zeros((L, 1, I), jnp.float32),
        'wo2':  w((L, I, H)),
        'bo2':  jnp.zeros((L, 1, H), jnp.float32),
        'ln2g': jnp.ones((L, 1, H), jnp.float32),
        'ln2b': jnp.zeros((L, 1, H), jnp.float32),
        # pooler + classifier head
        'wp': w((H, H)),        'bp': jnp.zeros((1, H), jnp.float32),
        'w1': w((H, FC1_OUT)),  'b1': jnp.zeros((1, FC1_OUT), jnp.float32),
    }
    # fc2 padded to 128 lanes: real classes in cols [0, N_CLASSES); padded cols get
    # zero weights and a -1e9 bias (kept in f32) so they contribute exactly 0.
    w2 = 0.02 * jax.random.normal(next(ks), (FC1_OUT, N_CLASSES), jnp.float32)
    p['w2p'] = jnp.zeros((FC1_OUT, CLS_PAD), jnp.float32).at[:, :N_CLASSES].set(w2) \
                  .astype(jnp.bfloat16)
    p['b2p'] = jnp.full((1, CLS_PAD), -1e9, jnp.float32).at[:, :N_CLASSES].set(0.0)
    return p


def bert_arch_forward(params, sent_id, mask):
    B, S = sent_id.shape
    # Embeddings (gather + embedding LayerNorm are glue; heavy matmuls live in Pallas)
    x = (params['word_emb'][sent_id]
         + params['pos_emb'][:S][None, :, :]
         + params['type_emb'][0][None, None, :])     # token_type_ids implicitly all-zero
    mu = jnp.mean(x, -1, keepdims=True)
    var = jnp.mean((x - mu) ** 2, -1, keepdims=True)
    x = (x - mu) * jax.lax.rsqrt(var + LN_EPS) * params['emb_ln_g'] + params['emb_ln_b']
    # embedding dropout is identity in eval mode

    x_flat = x.reshape(B * S, HIDDEN).astype(jnp.float32)
    attn_bias = ((1.0 - mask.astype(jnp.float32)) * -1e4).reshape(B, 1, S)

    out_pad = fused_encoder_and_head(x_flat, attn_bias, params)
    # row 0 of each per-sequence tile is the CLS-token classifier output
    return out_pad[:, 0, :N_CLASSES]


# ----------------------------------- main -----------------------------------
if __name__ == "__main__":
    key = jax.random.PRNGKey(0)
    pkey, ikey = jax.random.split(key)

    params = init_params(pkey)

    B, S = 2, 8
    sent_id = jax.random.randint(ikey, (B, S), 0, VOCAB, dtype=jnp.int32)
    mask = jnp.ones((B, S), jnp.float32).at[1, S - 2:].set(0.0)   # pad last 2 tokens of row 1

    out = jax.jit(bert_arch_forward)(params, sent_id, mask)
    out = jax.block_until_ready(out)

    assert out.shape == (B, N_CLASSES)
    # rows of exp(log_softmax) must sum to 1
    assert bool(jnp.all(jnp.abs(jnp.sum(jnp.exp(out), axis=1) - 1.0) < 1e-3))
    print("KERNEL_OK")
</pallas_src>

<mosaic_0001>
module attributes {stable_mosaic.version = 11 : i64} {
  func.func @kernel(%arg0: i32, %arg1: memref<8x128xf32, #tpu.memory_space<vmem>>, %arg2: memref<1x1x8xf32, #tpu.memory_space<vmem>>, %arg3: memref<2x128x384xbf16, #tpu.memory_space<vmem>>, %arg4: memref<2x1x384xf32, #tpu.memory_space<vmem>>, %arg5: memref<2x128x128xbf16, #tpu.memory_space<vmem>>, %arg6: memref<2x1x128xf32, #tpu.memory_space<vmem>>, %arg7: memref<2x1x128xf32, #tpu.memory_space<vmem>>, %arg8: memref<2x1x128xf32, #tpu.memory_space<vmem>>, %arg9: memref<2x128x512xbf16, #tpu.memory_space<vmem>>, %arg10: memref<2x1x512xf32, #tpu.memory_space<vmem>>, %arg11: memref<2x512x128xbf16, #tpu.memory_space<vmem>>, %arg12: memref<2x1x128xf32, #tpu.memory_space<vmem>>, %arg13: memref<2x1x128xf32, #tpu.memory_space<vmem>>, %arg14: memref<2x1x128xf32, #tpu.memory_space<vmem>>, %arg15: memref<128x128xbf16, #tpu.memory_space<vmem>>, %arg16: memref<1x128xf32, #tpu.memory_space<vmem>>, %arg17: memref<128x512xbf16, #tpu.memory_space<vmem>>, %arg18: memref<1x512xf32, #tpu.memory_space<vmem>>, %arg19: memref<512x128xbf16, #tpu.memory_space<vmem>>, %arg20: memref<1x128xf32, #tpu.memory_space<vmem>>, %arg21: memref<1x8x128xf32, #tpu.memory_space<vmem>>, %arg22: memref<8x128xf32, #tpu.memory_space<vmem>>) attributes {dimension_semantics = [#tpu.dimension_semantics<parallel>], iteration_bounds = array<i64: 2>, scalar_prefetch = 0 : i64, scratch_operands = 1 : i64, tpu.core_type = #tpu.core_type<tc>, window_params = [{transform_indices = @transform_0, window_bounds = array<i64: 8, 128>}, {transform_indices = @transform_1, window_bounds = array<i64: 1, 1, 8>}, {pipeline_mode = #tpu.pipeline_mode<synchronous>, transform_indices = @transform_2, window_bounds = array<i64: 2, 128, 384>}, {pipeline_mode = #tpu.pipeline_mode<synchronous>, transform_indices = @transform_3, window_bounds = array<i64: 2, 1, 384>}, {pipeline_mode = #tpu.pipeline_mode<synchronous>, transform_indices = @transform_4, window_bounds = array<i64: 2, 128, 128>}, {pipeline_mode = #tpu.pipeline_mode<synchronous>, transform_indices = @transform_5, window_bounds = array<i64: 2, 1, 128>}, {pipeline_mode = #tpu.pipeline_mode<synchronous>, transform_indices = @transform_6, window_bounds = array<i64: 2, 1, 128>}, {pipeline_mode = #tpu.pipeline_mode<synchronous>, transform_indices = @transform_7, window_bounds = array<i64: 2, 1, 128>}, {pipeline_mode = #tpu.pipeline_mode<synchronous>, transform_indices = @transform_8, window_bounds = array<i64: 2, 128, 512>}, {pipeline_mode = #tpu.pipeline_mode<synchronous>, transform_indices = @transform_9, window_bounds = array<i64: 2, 1, 512>}, {pipeline_mode = #tpu.pipeline_mode<synchronous>, transform_indices = @transform_10, window_bounds = array<i64: 2, 512, 128>}, {pipeline_mode = #tpu.pipeline_mode<synchronous>, transform_indices = @transform_11, window_bounds = array<i64: 2, 1, 128>}, {pipeline_mode = #tpu.pipeline_mode<synchronous>, transform_indices = @transform_12, window_bounds = array<i64: 2, 1, 128>}, {pipeline_mode = #tpu.pipeline_mode<synchronous>, transform_indices = @transform_13, window_bounds = array<i64: 2, 1, 128>}, {pipeline_mode = #tpu.pipeline_mode<synchronous>, transform_indices = @transform_14, window_bounds = array<i64: 128, 128>}, {pipeline_mode = #tpu.pipeline_mode<synchronous>, transform_indices = @transform_15, window_bounds = array<i64: 1, 128>}, {pipeline_mode = #tpu.pipeline_mode<synchronous>, transform_indices = @transform_16, window_bounds = array<i64: 128, 512>}, {pipeline_mode = #tpu.pipeline_mode<synchronous>, transform_indices = @transform_17, window_bounds = array<i64: 1, 512>}, {pipeline_mode = #tpu.pipeline_mode<synchronous>, transform_indices = @transform_18, window_bounds = array<i64: 512, 128>}, {pipeline_mode = #tpu.pipeline_mode<synchronous>, transform_indices = @transform_19, window_bounds = array<i64: 1, 128>}, {transform_indices = @transform_20, window_bounds = array<i64: 1, 8, 128>}]} {
    %c0 = arith.constant 0 : index
    %c0_0 = arith.constant 0 : index
    %c0_1 = arith.constant 0 : index
    %0 = vector.load %arg2[%c0, %c0_0, %c0_1] : memref<1x1x8xf32, #tpu.memory_space<vmem>>, vector<1x1x8xf32>
    %1 = vector.shape_cast %0 : vector<1x1x8xf32> to vector<1x8xf32>
    %c0_2 = arith.constant 0 : index
    %c0_3 = arith.constant 0 : index
    %2 = vector.load %arg1[%c0_2, %c0_3] : memref<8x128xf32, #tpu.memory_space<vmem>>, vector<8x128xf32>
    %3 = arith.truncf %2 : vector<8x128xf32> to vector<8x128xbf16>
    %c0_4 = arith.constant 0 : index
    %c0_5 = arith.constant 0 : index
    %c0_6 = arith.constant 0 : index
    %4 = vector.load %arg3[%c0_4, %c0_5, %c0_6] : memref<2x128x384xbf16, #tpu.memory_space<vmem>>, vector<1x128x384xbf16>
    %5 = vector.shape_cast %4 : vector<1x128x384xbf16> to vector<128x384xbf16>
    %cst = arith.constant dense<0.000000e+00> : vector<8x384xf32>
    %6 = tpu.matmul %3, %5, %cst {dimension_numbers = #tpu.dot_dimension_numbers<[1], [0], [0], [1], [0, 0, 1, 1], [], []>} : vector<8x128xbf16>, vector<128x384xbf16>, vector<8x384xf32> -> vector<8x384xf32>
    %c0_7 = arith.constant 0 : index
    %c0_8 = arith.constant 0 : index
    %c0_9 = arith.constant 0 : index
    %7 = vector.load %arg4[%c0_7, %c0_8, %c0_9] : memref<2x1x384xf32, #tpu.memory_space<vmem>>, vector<1x1x384xf32>
    %8 = vector.shape_cast %7 : vector<1x1x384xf32> to vector<1x384xf32>
    %9 = vector.broadcast %8 : vector<1x384xf32> to vector<8x384xf32>
    %10 = arith.addf %6, %9 : vector<8x384xf32>
    %11 = vector.extract_strided_slice %10 {offsets = [0, 0], sizes = [8, 64], strides = [1, 1]} : vector<8x384xf32> to vector<8x64xf32>
    %12 = arith.truncf %11 : vector<8x64xf32> to vector<8x64xbf16>
    %13 = vector.extract_strided_slice %10 {offsets = [0, 128], sizes = [8, 64], strides = [1, 1]} : vector<8x384xf32> to vector<8x64xf32>
    %14 = arith.truncf %13 : vector<8x64xf32> to vector<8x64xbf16>
    %15 = vector.extract_strided_slice %10 {offsets = [0, 256], sizes = [8, 64], strides = [1, 1]} : vector<8x384xf32> to vector<8x64xf32>
    %16 = arith.truncf %15 : vector<8x64xf32> to vector<8x64xbf16>
    "tpu.trace_start"() <{level = 10 : i32, message = "qd,kd->qk"}> : () -> ()
    %cst_10 = arith.constant dense<0.000000e+00> : vector<8x8xf32>
    %17 = tpu.matmul %12, %14, %cst_10 {dimension_numbers = #tpu.dot_dimension_numbers<[1], [1], [0], [0], [0, 0, 1, 0], [], []>} : vector<8x64xbf16>, vector<8x64xbf16>, vector<8x8xf32> -> vector<8x8xf32>
    "tpu.trace_stop"() : () -> ()
    %cst_11 = arith.constant 1.250000e-01 : f32
    %18 = vector.broadcast %cst_11 : f32 to vector<8x8xf32>
    %19 = arith.mulf %17, %18 : vector<8x8xf32>
    %20 = vector.broadcast %1 : vector<1x8xf32> to vector<8x8xf32>
    %21 = arith.addf %19, %20 : vector<8x8xf32>
    %cst_12 = arith.constant dense<0xFF800000> : vector<8xf32>
    %22 = vector.multi_reduction <maximumf>, %21, %cst_12 [1] : vector<8x8xf32> to vector<8xf32>
    %23 = vector.shape_cast %22 : vector<8xf32> to vector<8x1xf32>
    %24 = vector.broadcast %23 : vector<8x1xf32> to vector<8x8xf32>
    %25 = arith.subf %21, %24 : vector<8x8xf32>
    %26 = math.exp %25 : vector<8x8xf32>
    %cst_13 = arith.constant dense<0.000000e+00> : vector<8xf32>
    %27 = vector.multi_reduction <add>, %26, %cst_13 [1] : vector<8x8xf32> to vector<8xf32>
    %28 = vector.shape_cast %27 : vector<8xf32> to vector<8x1xf32>
    %29 = vector.broadcast %28 : vector<8x1xf32> to vector<8x8xf32>
    %30 = arith.divf %26, %29 : vector<8x8xf32>
    %31 = arith.truncf %30 : vector<8x8xf32> to vector<8x8xbf16>
    %cst_14 = arith.constant dense<0.000000e+00> : vector<8x64xf32>
    %32 = tpu.matmul %31, %16, %cst_14 {dimension_numbers = #tpu.dot_dimension_numbers<[1], [0], [0], [1], [0, 0, 1, 1], [], []>} : vector<8x8xbf16>, vector<8x64xbf16>, vector<8x64xf32> -> vector<8x64xf32>
    %c0_15 = arith.constant 0 : index
    %c0_16 = arith.constant 0 : index
    %33 = vector.load %arg22[%c0_15, %c0_16] : memref<8x128xf32, #tpu.memory_space<vmem>>, vector<8x64xf32>
    tpu.vector_store %arg22[%c0_15, %c0_16], %32 {strides = array<i32>} : memref<8x128xf32, #tpu.memory_space<vmem>>, vector<8x64xf32>,
    %34 = vector.extract_strided_slice %10 {offsets = [0, 64], sizes = [8, 64], strides = [1, 1]} : vector<8x384xf32> to vector<8x64xf32>
    %35 = arith.truncf %34 : vector<8x64xf32> to vector<8x64xbf16>
    %36 = vector.extract_strided_slice %10 {offsets = [0, 192], sizes = [8, 64], strides = [1, 1]} : vector<8x384xf32> to vector<8x64xf32>
    %37 = arith.truncf %36 : vector<8x64xf32> to vector<8x64xbf16>
    %38 = vector.extract_strided_slice %10 {offsets = [0, 320], sizes = [8, 64], strides = [1, 1]} : vector<8x384xf32> to vector<8x64xf32>
    %39 = arith.truncf %38 : vector<8x64xf32> to vector<8x64xbf16>
    "tpu.trace_start"() <{level = 10 : i32, message = "qd,kd->qk"}> : () -> ()
    %cst_17 = arith.constant dense<0.000000e+00> : vector<8x8xf32>
    %40 = tpu.matmul %35, %37, %cst_17 {dimension_numbers = #tpu.dot_dimension_numbers<[1], [1], [0], [0], [0, 0, 1, 0], [], []>} : vector<8x64xbf16>, vector<8x64xbf16>, vector<8x8xf32> -> vector<8x8xf32>
    "tpu.trace_stop"() : () -> ()
    %cst_18 = arith.constant 1.250000e-01 : f32
    %41 = vector.broadcast %cst_18 : f32 to vector<8x8xf32>
    %42 = arith.mulf %40, %41 : vector<8x8xf32>
    %43 = vector.broadcast %1 : vector<1x8xf32> to vector<8x8xf32>
    %44 = arith.addf %42, %43 : vector<8x8xf32>
    %cst_19 = arith.constant dense<0xFF800000> : vector<8xf32>
    %45 = vector.multi_reduction <maximumf>, %44, %cst_19 [1] : vector<8x8xf32> to vector<8xf32>
    %46 = vector.shape_cast %45 : vector<8xf32> to vector<8x1xf32>
    %47 = vector.broadcast %46 : vector<8x1xf32> to vector<8x8xf32>
    %48 = arith.subf %44, %47 : vector<8x8xf32>
    %49 = math.exp %48 : vector<8x8xf32>
    %cst_20 = arith.constant dense<0.000000e+00> : vector<8xf32>
    %50 = vector.multi_reduction <add>, %49, %cst_20 [1] : vector<8x8xf32> to vector<8xf32>
    %51 = vector.shape_cast %50 : vector<8xf32> to vector<8x1xf32>
    %52 = vector.broadcast %51 : vector<8x1xf32> to vector<8x8xf32>
    %53 = arith.divf %49, %52 : vector<8x8xf32>
    %54 = arith.truncf %53 : vector<8x8xf32> to vector<8x8xbf16>
    %cst_21 = arith.constant dense<0.000000e+00> : vector<8x64xf32>
    %55 = tpu.matmul %54, %39, %cst_21 {dimension_numbers = #tpu.dot_dimension_numbers<[1], [0], [0], [1], [0, 0, 1, 1], [], []>} : vector<8x8xbf16>, vector<8x64xbf16>, vector<8x64xf32> -> vector<8x64xf32>
    %c0_22 = arith.constant 0 : index
    %c64 = arith.constant 64 : index
    %56 = vector.load %arg22[%c0_22, %c64] : memref<8x128xf32, #tpu.memory_space<vmem>>, vector<8x64xf32>
    tpu.vector_store %arg22[%c0_22, %c64], %55 {strides = array<i32>} : memref<8x128xf32, #tpu.memory_space<vmem>>, vector<8x64xf32>,
    %c0_23 = arith.constant 0 : index
    %c0_24 = arith.constant 0 : index
    %57 = vector.load %arg22[%c0_23, %c0_24] : memref<8x128xf32, #tpu.memory_space<vmem>>, vector<8x128xf32>
    %58 = arith.truncf %57 : vector<8x128xf32> to vector<8x128xbf16>
    %c0_25 = arith.constant 0 : index
    %c0_26 = arith.constant 0 : index
    %c0_27 = arith.constant 0 : index
    %59 = vector.load %arg5[%c0_25, %c0_26, %c0_27] : memref<2x128x128xbf16, #tpu.memory_space<vmem>>, vector<1x128x128xbf16>
    %60 = vector.shape_cast %59 : vector<1x128x128xbf16> to vector<128x128xbf16>
    %cst_28 = arith.constant dense<0.000000e+00> : vector<8x128xf32>
    %61 = tpu.matmul %58, %60, %cst_28 {dimension_numbers = #tpu.dot_dimension_numbers<[1], [0], [0], [1], [0, 0, 1, 1], [], []>} : vector<8x128xbf16>, vector<128x128xbf16>, vector<8x128xf32> -> vector<8x128xf32>
    %c0_29 = arith.constant 0 : index
    %c0_30 = arith.constant 0 : index
    %c0_31 = arith.constant 0 : index
    %62 = vector.load %arg6[%c0_29, %c0_30, %c0_31] : memref<2x1x128xf32, #tpu.memory_space<vmem>>, vector<1x1x128xf32>
    %63 = vector.shape_cast %62 : vector<1x1x128xf32> to vector<1x128xf32>
    %64 = vector.broadcast %63 : vector<1x128xf32> to vector<8x128xf32>
    %65 = arith.addf %61, %64 : vector<8x128xf32>
    %66 = arith.addf %2, %65 : vector<8x128xf32>
    %c0_32 = arith.constant 0 : index
    %c0_33 = arith.constant 0 : index
    %c0_34 = arith.constant 0 : index
    %67 = vector.load %arg7[%c0_32, %c0_33, %c0_34] : memref<2x1x128xf32, #tpu.memory_space<vmem>>, vector<1x1x128xf32>
    %68 = vector.shape_cast %67 : vector<1x1x128xf32> to vector<1x128xf32>
    %c0_35 = arith.constant 0 : index
    %c0_36 = arith.constant 0 : index
    %c0_37 = arith.constant 0 : index
    %69 = vector.load %arg8[%c0_35, %c0_36, %c0_37] : memref<2x1x128xf32, #tpu.memory_space<vmem>>, vector<1x1x128xf32>
    %70 = vector.shape_cast %69 : vector<1x1x128xf32> to vector<1x128xf32>
    %cst_38 = arith.constant dense<0.000000e+00> : vector<8xf32>
    %71 = vector.multi_reduction <add>, %66, %cst_38 [1] : vector<8x128xf32> to vector<8xf32>
    %72 = vector.shape_cast %71 : vector<8xf32> to vector<8x1xf32>
    %cst_39 = arith.constant 1.280000e+02 : f32
    %73 = vector.broadcast %cst_39 : f32 to vector<8x1xf32>
    %74 = arith.divf %72, %73 : vector<8x1xf32>
    %75 = vector.broadcast %74 : vector<8x1xf32> to vector<8x128xf32>
    %76 = arith.subf %66, %75 : vector<8x128xf32>
    %77 = arith.mulf %76, %76 : vector<8x128xf32>
    %cst_40 = arith.constant dense<0.000000e+00> : vector<8xf32>
    %78 = vector.multi_reduction <add>, %77, %cst_40 [1] : vector<8x128xf32> to vector<8xf32>
    %79 = vector.shape_cast %78 : vector<8xf32> to vector<8x1xf32>
    %cst_41 = arith.constant 1.280000e+02 : f32
    %80 = vector.broadcast %cst_41 : f32 to vector<8x1xf32>
    %81 = arith.divf %79, %80 : vector<8x1xf32>
    %82 = vector.broadcast %74 : vector<8x1xf32> to vector<8x128xf32>
    %83 = arith.subf %66, %82 : vector<8x128xf32>
    %cst_42 = arith.constant 9.99999996E-13 : f32
    %84 = vector.broadcast %cst_42 : f32 to vector<8x1xf32>
    %85 = arith.addf %81, %84 : vector<8x1xf32>
    %86 = math.rsqrt %85 : vector<8x1xf32>
    %87 = vector.broadcast %86 : vector<8x1xf32> to vector<8x128xf32>
    %88 = arith.mulf %83, %87 : vector<8x128xf32>
    %89 = vector.broadcast %68 : vector<1x128xf32> to vector<8x128xf32>
    %90 = arith.mulf %88, %89 : vector<8x128xf32>
    %91 = vector.broadcast %70 : vector<1x128xf32> to vector<8x128xf32>
    %92 = arith.addf %90, %91 : vector<8x128xf32>
    %93 = arith.truncf %92 : vector<8x128xf32> to vector<8x128xbf16>
    %c0_43 = arith.constant 0 : index
    %c0_44 = arith.constant 0 : index
    %c0_45 = arith.constant 0 : index
    %94 = vector.load %arg9[%c0_43, %c0_44, %c0_45] : memref<2x128x512xbf16, #tpu.memory_space<vmem>>, vector<1x128x512xbf16>
    %95 = vector.shape_cast %94 : vector<1x128x512xbf16> to vector<128x512xbf16>
    %cst_46 = arith.constant dense<0.000000e+00> : vector<8x512xf32>
    %96 = tpu.matmul %93, %95, %cst_46 {dimension_numbers = #tpu.dot_dimension_numbers<[1], [0], [0], [1], [0, 0, 1, 1], [], []>} : vector<8x128xbf16>, vector<128x512xbf16>, vector<8x512xf32> -> vector<8x512xf32>
    %c0_47 = arith.constant 0 : index
    %c0_48 = arith.constant 0 : index
    %c0_49 = arith.constant 0 : index
    %97 = vector.load %arg10[%c0_47, %c0_48, %c0_49] : memref<2x1x512xf32, #tpu.memory_space<vmem>>, vector<1x1x512xf32>
    %98 = vector.shape_cast %97 : vector<1x1x512xf32> to vector<1x512xf32>
    %99 = vector.broadcast %98 : vector<1x512xf32> to vector<8x512xf32>
    %100 = arith.addf %96, %99 : vector<8x512xf32>
    %cst_50 = arith.constant 5.000000e-01 : f32
    %101 = vector.broadcast %cst_50 : f32 to vector<8x512xf32>
    %102 = arith.mulf %101, %100 : vector<8x512xf32>
    %cst_51 = arith.constant 4.471500e-02 : f32
    %103 = vector.broadcast %cst_51 : f32 to vector<8x512xf32>
    %104 = arith.mulf %103, %100 : vector<8x512xf32>
    %105 = arith.mulf %104, %100 : vector<8x512xf32>
    %106 = arith.mulf %105, %100 : vector<8x512xf32>
    %107 = arith.addf %100, %106 : vector<8x512xf32>
    %cst_52 = arith.constant 0.797884583 : f32
    %108 = vector.broadcast %cst_52 : f32 to vector<8x512xf32>
    %109 = arith.mulf %108, %107 : vector<8x512xf32>
    %110 = math.tanh %109 : vector<8x512xf32>
    %cst_53 = arith.constant 1.000000e+00 : f32
    %111 = vector.broadcast %cst_53 : f32 to vector<8x512xf32>
    %112 = arith.addf %111, %110 : vector<8x512xf32>
    %113 = arith.mulf %102, %112 : vector<8x512xf32>
    %114 = arith.truncf %113 : vector<8x512xf32> to vector<8x512xbf16>
    %c0_54 = arith.constant 0 : index
    %c0_55 = arith.constant 0 : index
    %c0_56 = arith.constant 0 : index
    %115 = vector.load %arg11[%c0_54, %c0_55, %c0_56] : memref<2x512x128xbf16, #tpu.memory_space<vmem>>, vector<1x512x128xbf16>
    %116 = vector.shape_cast %115 : vector<1x512x128xbf16> to vector<512x128xbf16>
    %cst_57 = arith.constant dense<0.000000e+00> : vector<8x128xf32>
    %117 = tpu.matmul %114, %116, %cst_57 {dimension_numbers = #tpu.dot_dimension_numbers<[1], [0], [0], [1], [0, 0, 1, 1], [], []>} : vector<8x512xbf16>, vector<512x128xbf16>, vector<8x128xf32> -> vector<8x128xf32>
    %c0_58 = arith.constant 0 : index
    %c0_59 = arith.constant 0 : index
    %c0_60 = arith.constant 0 : index
    %118 = vector.load %arg12[%c0_58, %c0_59, %c0_60] : memref<2x1x128xf32, #tpu.memory_space<vmem>>, vector<1x1x128xf32>
    %119 = vector.shape_cast %118 : vector<1x1x128xf32> to vector<1x128xf32>
    %120 = vector.broadcast %119 : vector<1x128xf32> to vector<8x128xf32>
    %121 = arith.addf %117, %120 : vector<8x128xf32>
    %122 = arith.addf %92, %121 : vector<8x128xf32>
    %c0_61 = arith.constant 0 : index
    %c0_62 = arith.constant 0 : index
    %c0_63 = arith.constant 0 : index
    %123 = vector.load %arg13[%c0_61, %c0_62, %c0_63] : memref<2x1x128xf32, #tpu.memory_space<vmem>>, vector<1x1x128xf32>
    %124 = vector.shape_cast %123 : vector<1x1x128xf32> to vector<1x128xf32>
    %c0_64 = arith.constant 0 : index
    %c0_65 = arith.constant 0 : index
    %c0_66 = arith.constant 0 : index
    %125 = vector.load %arg14[%c0_64, %c0_65, %c0_66] : memref<2x1x128xf32, #tpu.memory_space<vmem>>, vector<1x1x128xf32>
    %126 = vector.shape_cast %125 : vector<1x1x128xf32> to vector<1x128xf32>
    %cst_67 = arith.constant dense<0.000000e+00> : vector<8xf32>
    %127 = vector.multi_reduction <add>, %122, %cst_67 [1] : vector<8x128xf32> to vector<8xf32>
    %128 = vector.shape_cast %127 : vector<8xf32> to vector<8x1xf32>
    %cst_68 = arith.constant 1.280000e+02 : f32
    %129 = vector.broadcast %cst_68 : f32 to vector<8x1xf32>
    %130 = arith.divf %128, %129 : vector<8x1xf32>
    %131 = vector.broadcast %130 : vector<8x1xf32> to vector<8x128xf32>
    %132 = arith.subf %122, %131 : vector<8x128xf32>
    %133 = arith.mulf %132, %132 : vector<8x128xf32>
    %cst_69 = arith.constant dense<0.000000e+00> : vector<8xf32>
    %134 = vector.multi_reduction <add>, %133, %cst_69 [1] : vector<8x128xf32> to vector<8xf32>
    %135 = vector.shape_cast %134 : vector<8xf32> to vector<8x1xf32>
    %cst_70 = arith.constant 1.280000e+02 : f32
    %136 = vector.broadcast %cst_70 : f32 to vector<8x1xf32>
    %137 = arith.divf %135, %136 : vector<8x1xf32>
    %138 = vector.broadcast %130 : vector<8x1xf32> to vector<8x128xf32>
    %139 = arith.subf %122, %138 : vector<8x128xf32>
    %cst_71 = arith.constant 9.99999996E-13 : f32
    %140 = vector.broadcast %cst_71 : f32 to vector<8x1xf32>
    %141 = arith.addf %137, %140 : vector<8x1xf32>
    %142 = math.rsqrt %141 : vector<8x1xf32>
    %143 = vector.broadcast %142 : vector<8x1xf32> to vector<8x128xf32>
    %144 = arith.mulf %139, %143 : vector<8x128xf32>
    %145 = vector.broadcast %124 : vector<1x128xf32> to vector<8x128xf32>
    %146 = arith.mulf %144, %145 : vector<8x128xf32>
    %147 = vector.broadcast %126 : vector<1x128xf32> to vector<8x128xf32>
    %148 = arith.addf %146, %147 : vector<8x128xf32>
    %149 = arith.truncf %148 : vector<8x128xf32> to vector<8x128xbf16>
    %c1 = arith.constant 1 : index
    %c0_72 = arith.constant 0 : index
    %c0_73 = arith.constant 0 : index
    %150 = vector.load %arg3[%c1, %c0_72, %c0_73] : memref<2x128x384xbf16, #tpu.memory_space<vmem>>, vector<1x128x384xbf16>
    %151 = vector.shape_cast %150 : vector<1x128x384xbf16> to vector<128x384xbf16>
    %cst_74 = arith.constant dense<0.000000e+00> : vector<8x384xf32>
    %152 = tpu.matmul %149, %151, %cst_74 {dimension_numbers = #tpu.dot_dimension_numbers<[1], [0], [0], [1], [0, 0, 1, 1], [], []>} : vector<8x128xbf16>, vector<128x384xbf16>, vector<8x384xf32> -> vector<8x384xf32>
    %c1_75 = arith.constant 1 : index
    %c0_76 = arith.constant 0 : index
    %c0_77 = arith.constant 0 : index
    %153 = vector.load %arg4[%c1_75, %c0_76, %c0_77] : memref<2x1x384xf32, #tpu.memory_space<vmem>>, vector<1x1x384xf32>
    %154 = vector.shape_cast %153 : vector<1x1x384xf32> to vector<1x384xf32>
    %155 = vector.broadcast %154 : vector<1x384xf32> to vector<8x384xf32>
    %156 = arith.addf %152, %155 : vector<8x384xf32>
    %157 = vector.extract_strided_slice %156 {offsets = [0, 0], sizes = [8, 64], strides = [1, 1]} : vector<8x384xf32> to vector<8x64xf32>
    %158 = arith.truncf %157 : vector<8x64xf32> to vector<8x64xbf16>
    %159 = vector.extract_strided_slice %156 {offsets = [0, 128], sizes = [8, 64], strides = [1, 1]} : vector<8x384xf32> to vector<8x64xf32>
    %160 = arith.truncf %159 : vector<8x64xf32> to vector<8x64xbf16>
    %161 = vector.extract_strided_slice %156 {offsets = [0, 256], sizes = [8, 64], strides = [1, 1]} : vector<8x384xf32> to vector<8x64xf32>
    %162 = arith.truncf %161 : vector<8x64xf32> to vector<8x64xbf16>
    "tpu.trace_start"() <{level = 10 : i32, message = "qd,kd->qk"}> : () -> ()
    %cst_78 = arith.constant dense<0.000000e+00> : vector<8x8xf32>
    %163 = tpu.matmul %158, %160, %cst_78 {dimension_numbers = #tpu.dot_dimension_numbers<[1], [1], [0], [0], [0, 0, 1, 0], [], []>} : vector<8x64xbf16>, vector<8x64xbf16>, vector<8x8xf32> -> vector<8x8xf32>
    "tpu.trace_stop"() : () -> ()
    %cst_79 = arith.constant 1.250000e-01 : f32
    %164 = vector.broadcast %cst_79 : f32 to vector<8x8xf32>
    %165 = arith.mulf %163, %164 : vector<8x8xf32>
    %166 = vector.broadcast %1 : vector<1x8xf32> to vector<8x8xf32>
    %167 = arith.addf %165, %166 : vector<8x8xf32>
    %cst_80 = arith.constant dense<0xFF800000> : vector<8xf32>
    %168 = vector.multi_reduction <maximumf>, %167, %cst_80 [1] : vector<8x8xf32> to vector<8xf32>
    %169 = vector.shape_cast %168 : vector<8xf32> to vector<8x1xf32>
    %170 = vector.broadcast %169 : vector<8x1xf32> to vector<8x8xf32>
    %171 = arith.subf %167, %170 : vector<8x8xf32>
    %172 = math.exp %171 : vector<8x8xf32>
    %cst_81 = arith.constant dense<0.000000e+00> : vector<8xf32>
    %173 = vector.multi_reduction <add>, %172, %cst_81 [1] : vector<8x8xf32> to vector<8xf32>
    %174 = vector.shape_cast %173 : vector<8xf32> to vector<8x1xf32>
    %175 = vector.broadcast %174 : vector<8x1xf32> to vector<8x8xf32>
    %176 = arith.divf %172, %175 : vector<8x8xf32>
    %177 = arith.truncf %176 : vector<8x8xf32> to vector<8x8xbf16>
    %cst_82 = arith.constant dense<0.000000e+00> : vector<8x64xf32>
    %178 = tpu.matmul %177, %162, %cst_82 {dimension_numbers = #tpu.dot_dimension_numbers<[1], [0], [0], [1], [0, 0, 1, 1], [], []>} : vector<8x8xbf16>, vector<8x64xbf16>, vector<8x64xf32> -> vector<8x64xf32>
    %c0_83 = arith.constant 0 : index
    %c0_84 = arith.constant 0 : index
    %179 = vector.load %arg22[%c0_83, %c0_84] : memref<8x128xf32, #tpu.memory_space<vmem>>, vector<8x64xf32>
    tpu.vector_store %arg22[%c0_83, %c0_84], %178 {strides = array<i32>} : memref<8x128xf32, #tpu.memory_space<vmem>>, vector<8x64xf32>,
    %180 = vector.extract_strided_slice %156 {offsets = [0, 64], sizes = [8, 64], strides = [1, 1]} : vector<8x384xf32> to vector<8x64xf32>
    %181 = arith.truncf %180 : vector<8x64xf32> to vector<8x64xbf16>
    %182 = vector.extract_strided_slice %156 {offsets = [0, 192], sizes = [8, 64], strides = [1, 1]} : vector<8x384xf32> to vector<8x64xf32>
    %183 = arith.truncf %182 : vector<8x64xf32> to vector<8x64xbf16>
    %184 = vector.extract_strided_slice %156 {offsets = [0, 320], sizes = [8, 64], strides = [1, 1]} : vector<8x384xf32> to vector<8x64xf32>
    %185 = arith.truncf %184 : vector<8x64xf32> to vector<8x64xbf16>
    "tpu.trace_start"() <{level = 10 : i32, message = "qd,kd->qk"}> : () -> ()
    %cst_85 = arith.constant dense<0.000000e+00> : vector<8x8xf32>
    %186 = tpu.matmul %181, %183, %cst_85 {dimension_numbers = #tpu.dot_dimension_numbers<[1], [1], [0], [0], [0, 0, 1, 0], [], []>} : vector<8x64xbf16>, vector<8x64xbf16>, vector<8x8xf32> -> vector<8x8xf32>
    "tpu.trace_stop"() : () -> ()
    %cst_86 = arith.constant 1.250000e-01 : f32
    %187 = vector.broadcast %cst_86 : f32 to vector<8x8xf32>
    %188 = arith.mulf %186, %187 : vector<8x8xf32>
    %189 = vector.broadcast %1 : vector<1x8xf32> to vector<8x8xf32>
    %190 = arith.addf %188, %189 : vector<8x8xf32>
    %cst_87 = arith.constant dense<0xFF800000> : vector<8xf32>
    %191 = vector.multi_reduction <maximumf>, %190, %cst_87 [1] : vector<8x8xf32> to vector<8xf32>
    %192 = vector.shape_cast %191 : vector<8xf32> to vector<8x1xf32>
    %193 = vector.broadcast %192 : vector<8x1xf32> to vector<8x8xf32>
    %194 = arith.subf %190, %193 : vector<8x8xf32>
    %195 = math.exp %194 : vector<8x8xf32>
    %cst_88 = arith.constant dense<0.000000e+00> : vector<8xf32>
    %196 = vector.multi_reduction <add>, %195, %cst_88 [1] : vector<8x8xf32> to vector<8xf32>
    %197 = vector.shape_cast %196 : vector<8xf32> to vector<8x1xf32>
    %198 = vector.broadcast %197 : vector<8x1xf32> to vector<8x8xf32>
    %199 = arith.divf %195, %198 : vector<8x8xf32>
    %200 = arith.truncf %199 : vector<8x8xf32> to vector<8x8xbf16>
    %cst_89 = arith.constant dense<0.000000e+00> : vector<8x64xf32>
    %201 = tpu.matmul %200, %185, %cst_89 {dimension_numbers = #tpu.dot_dimension_numbers<[1], [0], [0], [1], [0, 0, 1, 1], [], []>} : vector<8x8xbf16>, vector<8x64xbf16>, vector<8x64xf32> -> vector<8x64xf32>
    %c0_90 = arith.constant 0 : index
    %c64_91 = arith.constant 64 : index
    %202 = vector.load %arg22[%c0_90, %c64_91] : memref<8x128xf32, #tpu.memory_space<vmem>>, vector<8x64xf32>
    tpu.vector_store %arg22[%c0_90, %c64_91], %201 {strides = array<i32>} : memref<8x128xf32, #tpu.memory_space<vmem>>, vector<8x64xf32>,
    %c0_92 = arith.constant 0 : index
    %c0_93 = arith.constant 0 : index
    %203 = vector.load %arg22[%c0_92, %c0_93] : memref<8x128xf32, #tpu.memory_space<vmem>>, vector<8x128xf32>
    %204 = arith.truncf %203 : vector<8x128xf32> to vector<8x128xbf16>
    %c1_94 = arith.constant 1 : index
    %c0_95 = arith.constant 0 : index
    %c0_96 = arith.constant 0 : index
    %205 = vector.load %arg5[%c1_94, %c0_95, %c0_96] : memref<2x128x128xbf16, #tpu.memory_space<vmem>>, vector<1x128x128xbf16>
    %206 = vector.shape_cast %205 : vector<1x128x128xbf16> to vector<128x128xbf16>
    %cst_97 = arith.constant dense<0.000000e+00> : vector<8x128xf32>
    %207 = tpu.matmul %204, %206, %cst_97 {dimension_numbers = #tpu.dot_dimension_numbers<[1], [0], [0], [1], [0, 0, 1, 1], [], []>} : vector<8x128xbf16>, vector<128x128xbf16>, vector<8x128xf32> -> vector<8x128xf32>
    %c1_98 = arith.constant 1 : index
    %c0_99 = arith.constant 0 : index
    %c0_100 = arith.constant 0 : index
    %208 = vector.load %arg6[%c1_98, %c0_99, %c0_100] : memref<2x1x128xf32, #tpu.memory_space<vmem>>, vector<1x1x128xf32>
    %209 = vector.shape_cast %208 : vector<1x1x128xf32> to vector<1x128xf32>
    %210 = vector.broadcast %209 : vector<1x128xf32> to vector<8x128xf32>
    %211 = arith.addf %207, %210 : vector<8x128xf32>
    %212 = arith.addf %148, %211 : vector<8x128xf32>
    %c1_101 = arith.constant 1 : index
    %c0_102 = arith.constant 0 : index
    %c0_103 = arith.constant 0 : index
    %213 = vector.load %arg7[%c1_101, %c0_102, %c0_103] : memref<2x1x128xf32, #tpu.memory_space<vmem>>, vector<1x1x128xf32>
    %214 = vector.shape_cast %213 : vector<1x1x128xf32> to vector<1x128xf32>
    %c1_104 = arith.constant 1 : index
    %c0_105 = arith.constant 0 : index
    %c0_106 = arith.constant 0 : index
    %215 = vector.load %arg8[%c1_104, %c0_105, %c0_106] : memref<2x1x128xf32, #tpu.memory_space<vmem>>, vector<1x1x128xf32>
    %216 = vector.shape_cast %215 : vector<1x1x128xf32> to vector<1x128xf32>
    %cst_107 = arith.constant dense<0.000000e+00> : vector<8xf32>
    %217 = vector.multi_reduction <add>, %212, %cst_107 [1] : vector<8x128xf32> to vector<8xf32>
    %218 = vector.shape_cast %217 : vector<8xf32> to vector<8x1xf32>
    %cst_108 = arith.constant 1.280000e+02 : f32
    %219 = vector.broadcast %cst_108 : f32 to vector<8x1xf32>
    %220 = arith.divf %218, %219 : vector<8x1xf32>
    %221 = vector.broadcast %220 : vector<8x1xf32> to vector<8x128xf32>
    %222 = arith.subf %212, %221 : vector<8x128xf32>
    %223 = arith.mulf %222, %222 : vector<8x128xf32>
    %cst_109 = arith.constant dense<0.000000e+00> : vector<8xf32>
    %224 = vector.multi_reduction <add>, %223, %cst_109 [1] : vector<8x128xf32> to vector<8xf32>
    %225 = vector.shape_cast %224 : vector<8xf32> to vector<8x1xf32>
    %cst_110 = arith.constant 1.280000e+02 : f32
    %226 = vector.broadcast %cst_110 : f32 to vector<8x1xf32>
    %227 = arith.divf %225, %226 : vector<8x1xf32>
    %228 = vector.broadcast %220 : vector<8x1xf32> to vector<8x128xf32>
    %229 = arith.subf %212, %228 : vector<8x128xf32>
    %cst_111 = arith.constant 9.99999996E-13 : f32
    %230 = vector.broadcast %cst_111 : f32 to vector<8x1xf32>
    %231 = arith.addf %227, %230 : vector<8x1xf32>
    %232 = math.rsqrt %231 : vector<8x1xf32>
    %233 = vector.broadcast %232 : vector<8x1xf32> to vector<8x128xf32>
    %234 = arith.mulf %229, %233 : vector<8x128xf32>
    %235 = vector.broadcast %214 : vector<1x128xf32> to vector<8x128xf32>
    %236 = arith.mulf %234, %235 : vector<8x128xf32>
    %237 = vector.broadcast %216 : vector<1x128xf32> to vector<8x128xf32>
    %238 = arith.addf %236, %237 : vector<8x128xf32>
    %239 = arith.truncf %238 : vector<8x128xf32> to vector<8x128xbf16>
    %c1_112 = arith.constant 1 : index
    %c0_113 = arith.constant 0 : index
    %c0_114 = arith.constant 0 : index
    %240 = vector.load %arg9[%c1_112, %c0_113, %c0_114] : memref<2x128x512xbf16, #tpu.memory_space<vmem>>, vector<1x128x512xbf16>
    %241 = vector.shape_cast %240 : vector<1x128x512xbf16> to vector<128x512xbf16>
    %cst_115 = arith.constant dense<0.000000e+00> : vector<8x512xf32>
    %242 = tpu.matmul %239, %241, %cst_115 {dimension_numbers = #tpu.dot_dimension_numbers<[1], [0], [0], [1], [0, 0, 1, 1], [], []>} : vector<8x128xbf16>, vector<128x512xbf16>, vector<8x512xf32> -> vector<8x512xf32>
    %c1_116 = arith.constant 1 : index
    %c0_117 = arith.constant 0 : index
    %c0_118 = arith.constant 0 : index
    %243 = vector.load %arg10[%c1_116, %c0_117, %c0_118] : memref<2x1x512xf32, #tpu.memory_space<vmem>>, vector<1x1x512xf32>
    %244 = vector.shape_cast %243 : vector<1x1x512xf32> to vector<1x512xf32>
    %245 = vector.broadcast %244 : vector<1x512xf32> to vector<8x512xf32>
    %246 = arith.addf %242, %245 : vector<8x512xf32>
    %cst_119 = arith.constant 5.000000e-01 : f32
    %247 = vector.broadcast %cst_119 : f32 to vector<8x512xf32>
    %248 = arith.mulf %247, %246 : vector<8x512xf32>
    %cst_120 = arith.constant 4.471500e-02 : f32
    %249 = vector.broadcast %cst_120 : f32 to vector<8x512xf32>
    %250 = arith.mulf %249, %246 : vector<8x512xf32>
    %251 = arith.mulf %250, %246 : vector<8x512xf32>
    %252 = arith.mulf %251, %246 : vector<8x512xf32>
    %253 = arith.addf %246, %252 : vector<8x512xf32>
    %cst_121 = arith.constant 0.797884583 : f32
    %254 = vector.broadcast %cst_121 : f32 to vector<8x512xf32>
    %255 = arith.mulf %254, %253 : vector<8x512xf32>
    %256 = math.tanh %255 : vector<8x512xf32>
    %cst_122 = arith.constant 1.000000e+00 : f32
    %257 = vector.broadcast %cst_122 : f32 to vector<8x512xf32>
    %258 = arith.addf %257, %256 : vector<8x512xf32>
    %259 = arith.mulf %248, %258 : vector<8x512xf32>
    %260 = arith.truncf %259 : vector<8x512xf32> to vector<8x512xbf16>
    %c1_123 = arith.constant 1 : index
    %c0_124 = arith.constant 0 : index
    %c0_125 = arith.constant 0 : index
    %261 = vector.load %arg11[%c1_123, %c0_124, %c0_125] : memref<2x512x128xbf16, #tpu.memory_space<vmem>>, vector<1x512x128xbf16>
    %262 = vector.shape_cast %261 : vector<1x512x128xbf16> to vector<512x128xbf16>
    %cst_126 = arith.constant dense<0.000000e+00> : vector<8x128xf32>
    %263 = tpu.matmul %260, %262, %cst_126 {dimension_numbers = #tpu.dot_dimension_numbers<[1], [0], [0], [1], [0, 0, 1, 1], [], []>} : vector<8x512xbf16>, vector<512x128xbf16>, vector<8x128xf32> -> vector<8x128xf32>
    %c1_127 = arith.constant 1 : index
    %c0_128 = arith.constant 0 : index
    %c0_129 = arith.constant 0 : index
    %264 = vector.load %arg12[%c1_127, %c0_128, %c0_129] : memref<2x1x128xf32, #tpu.memory_space<vmem>>, vector<1x1x128xf32>
    %265 = vector.shape_cast %264 : vector<1x1x128xf32> to vector<1x128xf32>
    %266 = vector.broadcast %265 : vector<1x128xf32> to vector<8x128xf32>
    %267 = arith.addf %263, %266 : vector<8x128xf32>
    %268 = arith.addf %238, %267 : vector<8x128xf32>
    %c1_130 = arith.constant 1 : index
    %c0_131 = arith.constant 0 : index
    %c0_132 = arith.constant 0 : index
    %269 = vector.load %arg13[%c1_130, %c0_131, %c0_132] : memref<2x1x128xf32, #tpu.memory_space<vmem>>, vector<1x1x128xf32>
    %270 = vector.shape_cast %269 : vector<1x1x128xf32> to vector<1x128xf32>
    %c1_133 = arith.constant 1 : index
    %c0_134 = arith.constant 0 : index
    %c0_135 = arith.constant 0 : index
    %271 = vector.load %arg14[%c1_133, %c0_134, %c0_135] : memref<2x1x128xf32, #tpu.memory_space<vmem>>, vector<1x1x128xf32>
    %272 = vector.shape_cast %271 : vector<1x1x128xf32> to vector<1x128xf32>
    %cst_136 = arith.constant dense<0.000000e+00> : vector<8xf32>
    %273 = vector.multi_reduction <add>, %268, %cst_136 [1] : vector<8x128xf32> to vector<8xf32>
    %274 = vector.shape_cast %273 : vector<8xf32> to vector<8x1xf32>
    %cst_137 = arith.constant 1.280000e+02 : f32
    %275 = vector.broadcast %cst_137 : f32 to vector<8x1xf32>
    %276 = arith.divf %274, %275 : vector<8x1xf32>
    %277 = vector.broadcast %276 : vector<8x1xf32> to vector<8x128xf32>
    %278 = arith.subf %268, %277 : vector<8x128xf32>
    %279 = arith.mulf %278, %278 : vector<8x128xf32>
    %cst_138 = arith.constant dense<0.000000e+00> : vector<8xf32>
    %280 = vector.multi_reduction <add>, %279, %cst_138 [1] : vector<8x128xf32> to vector<8xf32>
    %281 = vector.shape_cast %280 : vector<8xf32> to vector<8x1xf32>
    %cst_139 = arith.constant 1.280000e+02 : f32
    %282 = vector.broadcast %cst_139 : f32 to vector<8x1xf32>
    %283 = arith.divf %281, %282 : vector<8x1xf32>
    %284 = vector.broadcast %276 : vector<8x1xf32> to vector<8x128xf32>
    %285 = arith.subf %268, %284 : vector<8x128xf32>
    %cst_140 = arith.constant 9.99999996E-13 : f32
    %286 = vector.broadcast %cst_140 : f32 to vector<8x1xf32>
    %287 = arith.addf %283, %286 : vector<8x1xf32>
    %288 = math.rsqrt %287 : vector<8x1xf32>
    %289 = vector.broadcast %288 : vector<8x1xf32> to vector<8x128xf32>
    %290 = arith.mulf %285, %289 : vector<8x128xf32>
    %291 = vector.broadcast %270 : vector<1x128xf32> to vector<8x128xf32>
    %292 = arith.mulf %290, %291 : vector<8x128xf32>
    %293 = vector.broadcast %272 : vector<1x128xf32> to vector<8x128xf32>
    %294 = arith.addf %292, %293 : vector<8x128xf32>
    %295 = arith.truncf %294 : vector<8x128xf32> to vector<8x128xbf16>
    %c0_141 = arith.constant 0 : index
    %c0_142 = arith.constant 0 : index
    %296 = vector.load %arg15[%c0_141, %c0_142] : memref<128x128xbf16, #tpu.memory_space<vmem>>, vector<128x128xbf16>
    %cst_143 = arith.constant dense<0.000000e+00> : vector<8x128xf32>
    %297 = tpu.matmul %295, %296, %cst_143 {dimension_numbers = #tpu.dot_dimension_numbers<[1], [0], [0], [1], [0, 0, 1, 1], [], []>} : vector<8x128xbf16>, vector<128x128xbf16>, vector<8x128xf32> -> vector<8x128xf32>
    %c0_144 = arith.constant 0 : index
    %c0_145 = arith.constant 0 : index
    %298 = vector.load %arg16[%c0_144, %c0_145] : memref<1x128xf32, #tpu.memory_space<vmem>>, vector<1x128xf32>
    %299 = vector.broadcast %298 : vector<1x128xf32> to vector<8x128xf32>
    %300 = arith.addf %297, %299 : vector<8x128xf32>
    %301 = math.tanh %300 : vector<8x128xf32>
    %302 = arith.truncf %301 : vector<8x128xf32> to vector<8x128xbf16>
    %c0_146 = arith.constant 0 : index
    %c0_147 = arith.constant 0 : index
    %303 = vector.load %arg17[%c0_146, %c0_147] : memref<128x512xbf16, #tpu.memory_space<vmem>>, vector<128x512xbf16>
    %cst_148 = arith.constant dense<0.000000e+00> : vector<8x512xf32>
    %304 = tpu.matmul %302, %303, %cst_148 {dimension_numbers = #tpu.dot_dimension_numbers<[1], [0], [0], [1], [0, 0, 1, 1], [], []>} : vector<8x128xbf16>, vector<128x512xbf16>, vector<8x512xf32> -> vector<8x512xf32>
    %c0_149 = arith.constant 0 : index
    %c0_150 = arith.constant 0 : index
    %305 = vector.load %arg18[%c0_149, %c0_150] : memref<1x512xf32, #tpu.memory_space<vmem>>, vector<1x512xf32>
    %306 = vector.broadcast %305 : vector<1x512xf32> to vector<8x512xf32>
    %307 = arith.addf %304, %306 : vector<8x512xf32>
    %cst_151 = arith.constant 0.000000e+00 : f32
    %308 = vector.broadcast %cst_151 : f32 to vector<8x512xf32>
    %309 = arith.maximumf %307, %308 : vector<8x512xf32>
    %310 = arith.truncf %309 : vector<8x512xf32> to vector<8x512xbf16>
    %c0_152 = arith.constant 0 : index
    %c0_153 = arith.constant 0 : index
    %311 = vector.load %arg19[%c0_152, %c0_153] : memref<512x128xbf16, #tpu.memory_space<vmem>>, vector<512x128xbf16>
    %cst_154 = arith.constant dense<0.000000e+00> : vector<8x128xf32>
    %312 = tpu.matmul %310, %311, %cst_154 {dimension_numbers = #tpu.dot_dimension_numbers<[1], [0], [0], [1], [0, 0, 1, 1], [], []>} : vector<8x512xbf16>, vector<512x128xbf16>, vector<8x128xf32> -> vector<8x128xf32>
    %c0_155 = arith.constant 0 : index
    %c0_156 = arith.constant 0 : index
    %313 = vector.load %arg20[%c0_155, %c0_156] : memref<1x128xf32, #tpu.memory_space<vmem>>, vector<1x128xf32>
    %314 = vector.broadcast %313 : vector<1x128xf32> to vector<8x128xf32>
    %315 = arith.addf %312, %314 : vector<8x128xf32>
    %cst_157 = arith.constant dense<0xFF800000> : vector<8xf32>
    %316 = vector.multi_reduction <maximumf>, %315, %cst_157 [1] : vector<8x128xf32> to vector<8xf32>
    %317 = vector.shape_cast %316 : vector<8xf32> to vector<8x1xf32>
    %318 = vector.broadcast %317 : vector<8x1xf32> to vector<8x128xf32>
    %319 = arith.subf %315, %318 : vector<8x128xf32>
    %320 = math.exp %319 : vector<8x128xf32>
    %cst_158 = arith.constant dense<0.000000e+00> : vector<8xf32>
    %321 = vector.multi_reduction <add>, %320, %cst_158 [1] : vector<8x128xf32> to vector<8xf32>
    %322 = vector.shape_cast %321 : vector<8xf32> to vector<8x1xf32>
    %323 = math.log %322 : vector<8x1xf32>
    %324 = vector.broadcast %323 : vector<8x1xf32> to vector<8x128xf32>
    %325 = arith.subf %319, %324 : vector<8x128xf32>
    %c0_159 = arith.constant 0 : index
    %c0_160 = arith.constant 0 : index
    %c0_161 = arith.constant 0 : index
    %326 = vector.load %arg21[%c0_159, %c0_160, %c0_161] : memref<1x8x128xf32, #tpu.memory_space<vmem>>, vector<1x8x128xf32>
    %327 = vector.shape_cast %326 : vector<1x8x128xf32> to vector<8x128xf32>
    %328 = vector.shape_cast %325 : vector<8x128xf32> to vector<1x8x128xf32>
    tpu.vector_store %arg21[%c0_159, %c0_160, %c0_161], %328 {strides = array<i32>} : memref<1x8x128xf32, #tpu.memory_space<vmem>>, vector<1x8x128xf32>,
    return
  }
  func.func @transform_0(%arg0: i32) -> (i32, i32) {
    %c0_i32 = arith.constant 0 : i32
    %c0_i32_0 = arith.constant 0 : i32
    return %arg0, %c0_i32 : i32, i32
  }
  func.func @transform_1(%arg0: i32) -> (i32, i32, i32) {
    %c0_i32 = arith.constant 0 : i32
    %c0_i32_0 = arith.constant 0 : i32
    %c0_i32_1 = arith.constant 0 : i32
    return %arg0, %c0_i32, %c0_i32_0 : i32, i32, i32
  }
  func.func @transform_2(%arg0: i32) -> (i32, i32, i32) {
    %c0_i32 = arith.constant 0 : i32
    %c0_i32_0 = arith.constant 0 : i32
    %c0_i32_1 = arith.constant 0 : i32
    %c0_i32_2 = arith.constant 0 : i32
    return %c0_i32, %c0_i32_0, %c0_i32_1 : i32, i32, i32
  }
  func.func @transform_3(%arg0: i32) -> (i32, i32, i32) {
    %c0_i32 = arith.constant 0 : i32
    %c0_i32_0 = arith.constant 0 : i32
    %c0_i32_1 = arith.constant 0 : i32
    %c0_i32_2 = arith.constant 0 : i32
    return %c0_i32, %c0_i32_0, %c0_i32_1 : i32, i32, i32
  }
  func.func @transform_4(%arg0: i32) -> (i32, i32, i32) {
    %c0_i32 = arith.constant 0 : i32
    %c0_i32_0 = arith.constant 0 : i32
    %c0_i32_1 = arith.constant 0 : i32
    %c0_i32_2 = arith.constant 0 : i32
    return %c0_i32, %c0_i32_0, %c0_i32_1 : i32, i32, i32
  }
  func.func @transform_5(%arg0: i32) -> (i32, i32, i32) {
    %c0_i32 = arith.constant 0 : i32
    %c0_i32_0 = arith.constant 0 : i32
    %c0_i32_1 = arith.constant 0 : i32
    %c0_i32_2 = arith.constant 0 : i32
    return %c0_i32, %c0_i32_0, %c0_i32_1 : i32, i32, i32
  }
  func.func @transform_6(%arg0: i32) -> (i32, i32, i32) {
    %c0_i32 = arith.constant 0 : i32
    %c0_i32_0 = arith.constant 0 : i32
    %c0_i32_1 = arith.constant 0 : i32
    %c0_i32_2 = arith.constant 0 : i32
    return %c0_i32, %c0_i32_0, %c0_i32_1 : i32, i32, i32
  }
  func.func @transform_7(%arg0: i32) -> (i32, i32, i32) {
    %c0_i32 = arith.constant 0 : i32
    %c0_i32_0 = arith.constant 0 : i32
    %c0_i32_1 = arith.constant 0 : i32
    %c0_i32_2 = arith.constant 0 : i32
    return %c0_i32, %c0_i32_0, %c0_i32_1 : i32, i32, i32
  }
  func.func @transform_8(%arg0: i32) -> (i32, i32, i32) {
    %c0_i32 = arith.constant 0 : i32
    %c0_i32_0 = arith.constant 0 : i32
    %c0_i32_1 = arith.constant 0 : i32
    %c0_i32_2 = arith.constant 0 : i32
    return %c0_i32, %c0_i32_0, %c0_i32_1 : i32, i32, i32
  }
  func.func @transform_9(%arg0: i32) -> (i32, i32, i32) {
    %c0_i32 = arith.constant 0 : i32
    %c0_i32_0 = arith.constant 0 : i32
    %c0_i32_1 = arith.constant 0 : i32
    %c0_i32_2 = arith.constant 0 : i32
    return %c0_i32, %c0_i32_0, %c0_i32_1 : i32, i32, i32
  }
  func.func @transform_10(%arg0: i32) -> (i32, i32, i32) {
    %c0_i32 = arith.constant 0 : i32
    %c0_i32_0 = arith.constant 0 : i32
    %c0_i32_1 = arith.constant 0 : i32
    %c0_i32_2 = arith.constant 0 : i32
    return %c0_i32, %c0_i32_0, %c0_i32_1 : i32, i32, i32
  }
  func.func @transform_11(%arg0: i32) -> (i32, i32, i32) {
    %c0_i32 = arith.constant 0 : i32
    %c0_i32_0 = arith.constant 0 : i32
    %c0_i32_1 = arith.constant 0 : i32
    %c0_i32_2 = arith.constant 0 : i32
    return %c0_i32, %c0_i32_0, %c0_i32_1 : i32, i32, i32
  }
  func.func @transform_12(%arg0: i32) -> (i32, i32, i32) {
    %c0_i32 = arith.constant 0 : i32
    %c0_i32_0 = arith.constant 0 : i32
    %c0_i32_1 = arith.constant 0 : i32
    %c0_i32_2 = arith.constant 0 : i32
    return %c0_i32, %c0_i32_0, %c0_i32_1 : i32, i32, i32
  }
  func.func @transform_13(%arg0: i32) -> (i32, i32, i32) {
    %c0_i32 = arith.constant 0 : i32
    %c0_i32_0 = arith.constant 0 : i32
    %c0_i32_1 = arith.constant 0 : i32
    %c0_i32_2 = arith.constant 0 : i32
    return %c0_i32, %c0_i32_0, %c0_i32_1 : i32, i32, i32
  }
  func.func @transform_14(%arg0: i32) -> (i32, i32) {
    %c0_i32 = arith.constant 0 : i32
    %c0_i32_0 = arith.constant 0 : i32
    %c0_i32_1 = arith.constant 0 : i32
    return %c0_i32, %c0_i32_0 : i32, i32
  }
  func.func @transform_15(%arg0: i32) -> (i32, i32) {
    %c0_i32 = arith.constant 0 : i32
    %c0_i32_0 = arith.constant 0 : i32
    %c0_i32_1 = arith.constant 0 : i32
    return %c0_i32, %c0_i32_0 : i32, i32
  }
  func.func @transform_16(%arg0: i32) -> (i32, i32) {
    %c0_i32 = arith.constant 0 : i32
    %c0_i32_0 = arith.constant 0 : i32
    %c0_i32_1 = arith.constant 0 : i32
    return %c0_i32, %c0_i32_0 : i32, i32
  }
  func.func @transform_17(%arg0: i32) -> (i32, i32) {
    %c0_i32 = arith.constant 0 : i32
    %c0_i32_0 = arith.constant 0 : i32
    %c0_i32_1 = arith.constant 0 : i32
    return %c0_i32, %c0_i32_0 : i32, i32
  }
  func.func @transform_18(%arg0: i32) -> (i32, i32) {
    %c0_i32 = arith.constant 0 : i32
    %c0_i32_0 = arith.constant 0 : i32
    %c0_i32_1 = arith.constant 0 : i32
    return %c0_i32, %c0_i32_0 : i32, i32
  }
  func.func @transform_19(%arg0: i32) -> (i32, i32) {
    %c0_i32 = arith.constant 0 : i32
    %c0_i32_0 = arith.constant 0 : i32
    %c0_i32_1 = arith.constant 0 : i32
    return %c0_i32, %c0_i32_0 : i32, i32
  }
  func.func @transform_20(%arg0: i32) -> (i32, i32, i32) {
    %c0_i32 = arith.constant 0 : i32
    %c0_i32_0 = arith.constant 0 : i32
    %c0_i32_1 = arith.constant 0 : i32
    return %arg0, %c0_i32, %c0_i32_0 : i32, i32, i32
  }
}

</mosaic_0001>

<bundles_post_ra>
// kernel: bert_arch_forward.1
= control target key start
LH: loop header
LB: loop body
LE: loop exit
PB: predicated region body
PF: predicated region fallthrough
CT: control target
= control target key end

     0   :  { %s5850_s0 = inlined_call_operand.vmem [shape: f32[16,128], index: 0, kind: input, shape index: {}]   ;;  %s5851_s1 = inlined_call_operand.vmem [shape: f32[2,1,8], index: 1, kind: input, shape index: {}]   ;;  %s5852_s2 = inlined_call_operand.hbm [shape: bf16[2,128,384], index: 2, kind: input, shape index: {}]   ;;  %s5853_s3 = inlined_call_operand.vmem [shape: f32[2,1,384], index: 3, kind: input, shape index: {}]   ;;  %s5854_s4 = inlined_call_operand.vmem [shape: bf16[2,128,128], index: 4, kind: input, shape index: {}]   ;;  %s5855_s5 = inlined_call_operand.vmem [shape: f32[2,1,128], index: 5, kind: input, shape index: {}]   ;;  %s5856_s6 = inlined_call_operand.vmem [shape: f32[2,1,128], index: 6, kind: input, shape index: {}]   ;;  %s5857_s7 = inlined_call_operand.vmem [shape: f32[2,1,128], index: 7, kind: input, shape index: {}]   ;;  %s5858_s8 = inlined_call_operand.hbm [shape: bf16[2,128,512], index: 8, kind: input, shape index: {}]   ;;  %s5859_s9 = inlined_call_operand.vmem [shape: f32[2,1,512], index: 9, kind: input, shape index: {}]   ;;  %s5860_s10 = inlined_call_operand.hbm [shape: bf16[2,512,128], index: 10, kind: input, shape index: {}]   ;;  %s5861_s11 = inlined_call_operand.vmem [shape: f32[2,1,128], index: 11, kind: input, shape index: {}]   ;;  %s5862_s12 = inlined_call_operand.vmem [shape: f32[2,1,128], index: 12, kind: input, shape index: {}]   ;;  %s5863_s13 = inlined_call_operand.vmem [shape: f32[2,1,128], index: 13, kind: input, shape index: {}]   ;;  %s5864_s14 = inlined_call_operand.vmem [shape: bf16[128,128], index: 14, kind: input, shape index: {}]   ;;  %s5865_s15 = inlined_call_operand.vmem [shape: f32[1,128], index: 15, kind: input, shape index: {}]   ;;  %s5866_s16 = inlined_call_operand.hbm [shape: bf16[128,512], index: 16, kind: input, shape index: {}]   ;;  %s5867_s17 = inlined_call_operand.vmem [shape: f32[1,512], index: 17, kind: input, shape index: {}]   ;;  %s5868_s18 = inlined_call_operand.hbm [shape: bf16[512,128], index: 18, kind: input, shape index: {}]   ;;  %s5869_s19 = inlined_call_operand.vmem [shape: f32[1,128], index: 19, kind: input, shape index: {}]   ;;  %s5870_s20 = inlined_call_operand.vmem [shape: f32[2,8,128], index: 20, kind: output, shape index: {}]  }
   0x1   :  { %5874 = sst [smem:[#allocation15_spill]] %s5850_s0 }
   0x2   :  { %5875 = sst [smem:[#allocation16_spill]] %s5851_s1 }
   0x3   :  { %5876 = sst [smem:[#allocation17_spill]] %s5852_s2 }
   0x4   :  { %5877 = sst [smem:[#allocation18_spill]] %s5853_s3 }
   0x5   :  { %5878 = sst [smem:[#allocation19_spill]] %s5854_s4 }
   0x6   :  { %5879 = sst [smem:[#allocation20_spill]] %s5858_s8 }
   0x7   :  { %5880 = sst [smem:[#allocation21_spill]] %s5866_s16 }
   0x8   :  { %5881 = sst [smem:[#allocation22_spill]] %s5869_s19 }
   0x9   :  { %5882 = sst [smem:[#allocation23_spill]] %s5870_s20 }
   0xa   :  { %25 = vsyncpa [#allocation4], 0 }
   0xb   :  { %26 = vsyncpa [#allocation6], 0 }
   0xc   :  { %27 = vsyncpa [#allocation9], 0  ;;  %s5538_s1 = smov 0  }
   0xd LB: > { %5883 = sst [smem:[#allocation14_spill]] %s5418_s1  ;;  %s5547_s2 = sadd.s32 4294967295, %s5418_s1   ;;  %s5418_s1 = sphi %s5538_s1, %s33_s1  }
   0xe   : > { %s5884_s8 = sld [smem:[#allocation20_spill]]  ;;  %p3750_p0 = scmp.ge.s32.totalorder %s5418_s1, 1 }
   0xf   : > { %p494_p1 = scmp.lt.s32.totalorder %s5418_s1, 3  ;;  %p5155_p2 = scmp.eq.s32.totalorder %s5547_s2, 0 }
  0x10   : > { %s5420_s3 = smov [#allocation5]   ;;  %s5886_s16 = sld [smem:[#allocation21_spill]] }
  0x11   : > { %p5552_p3 = pnand %p3750_p0, %p494_p1  ;;  %s536_s26 = sshll.u32 %s5420_s3, 4  ;;  %s537_s26 = int_to_ptr.vmem [resolvable:$true] %s536_s26 }
  0x12   : > { %s5421_s30 = smov [#allocation8]   ;;  %s5888_s23 = sld [smem:[#allocation17_spill]] }
  0x13   : > { %p5139_p4 = pneg %p5552_p3  ;;  %s582_s0 = sshll.u32 %s5421_s30, 4  ;;  %s583_s0 = int_to_ptr.vmem [resolvable:$true] %s582_s0 }
  0x14   : > { %s534_s24 = sshll.u32 %s5884_s8, 4  ;;  %s5422_s8 = smov 256   ;;  %s535_s24 = int_to_ptr.hbm [resolvable:$true] %s534_s24 }
  0x15   : > { %p5563_p5 = pnand %p5155_p2, %p5139_p4  ;;  %s5423_s1 = smov 16  }
  0x16   : > { %s580_s4 = sshll.u32 %s5886_s16, 4  ;;  %s5424_s27 = smov [#allocation3]   ;;  %s581_s4 = int_to_ptr.hbm [resolvable:$true] %s580_s4 }
  0x17   : > { %5145 = dma.hbm_to_vmem [thread:$0]  (!%p5563_p5), %s535_s24, 8192, %s537_s26, [#allocation6], %s5422_s8, %s5422_s8, %s5423_s1  }
  0x18   : > { %s505_s3 = sshll.u32 %s5888_s23, 4  ;;  %s507_s28 = sshll.u32 %s5424_s27, 4  ;;  %s506_s3 = int_to_ptr.hbm [resolvable:$true] %s505_s3  ;;  %s508_s28 = int_to_ptr.vmem [resolvable:$true] %s507_s28 }
  0x19   : > { %5151 = dma.hbm_to_vmem [thread:$0]  (!%p5563_p5), %s581_s4, 4096, %s583_s0, [#allocation9], %s5422_s8, %s5422_s8, %s5423_s1  }
  0x1a   : > { %s5425_s16 = smov 192   ;;  %s5426_s20 = smov 12  }
  0x1b   : > { %5142 = dma.hbm_to_vmem [thread:$0]  (!%p5563_p5), %s506_s3, 6144, %s508_s28, [#allocation4], %s5425_s16, %s5425_s16, %s5426_s20  }
  0x1c   : > { %s551_s22 = sshll.u32 %s5860_s10, 4  ;;  %s5427_s23 = smov [#allocation7]   ;;  %s552_s22 = int_to_ptr.hbm [resolvable:$true] %s551_s22 }
  0x1d   : > { %s553_s19 = sshll.u32 %s5427_s23, 4  ;;  %s597_s1 = sshll.u32 %s5868_s18, 4  ;;  %s554_s19 = int_to_ptr.vmem [resolvable:$true] %s553_s19  ;;  %s598_s1 = int_to_ptr.hbm [resolvable:$true] %s597_s1 }
  0x1e   : > { %s5428_s26 = smov 64   ;;  %s5429_s4 = smov 4  }
  0x1f   : > { %5148 = dma.hbm_to_vmem [thread:$0]  (!%p5563_p5), %s552_s22, 8192, %s554_s19, [#allocation6], %s5428_s26, %s5428_s26, %s5429_s4  }
  0x20   : > { %s5430_s0 = smov [#allocation10]   ;;  %631 = sbr.rel (%p5552_p3) target bundleno = 4811 (0x12cb), region = 100 }
  0x21   : > { %s599_s27 = sshll.u32 %s5430_s0, 4  ;;  %s600_s27 = int_to_ptr.vmem [resolvable:$true] %s599_s27 }
  0x22   : > { %5154 = dma.hbm_to_vmem [thread:$0]  (!%p5563_p5), %s598_s1, 4096, %s600_s27, [#allocation9], %s5428_s26, %s5428_s26, %s5429_s4  }
  0x25   : > { %5405 = dma.done.wait (%p5155_p2), [#allocation4], 6144  }
  0x26   : > { %5407 = vsyncadd (%p5155_p2), [#allocation4], 4294961152 }
  0x27   : > { %5409 = dma.done.wait (%p5155_p2), [#allocation6], 16384  }
  0x28   : > { %5411 = vsyncadd (%p5155_p2), [#allocation6], 4294950912 }
  0x29   : > { %5413 = dma.done.wait (%p5155_p2), [#allocation9], 8192  }
  0x2a   : > { %5415 = vsyncadd (%p5155_p2), [#allocation9], 4294959104  ;;  %v3851_v0 = vld [vmem:[#allocation3 + $0xa8] sm:$0xf]  ;;  %v4877_v1 = vld [vmem:[#allocation3 + $0xb0] sm:$0xf0] }
  0x2b   : > { %v4876_v2 = vld [vmem:[#allocation3 + $0xac] sm:$0xf]  ;;  %v3852_v3 = vor.u32 %v4877_v1, %v3851_v0  ;;  %v3853_v4 = vld [vmem:[#allocation3 + $0xb4] sm:$0xf0]  ;;  %v3839_v5 = vld [vmem:[#allocation3 + $0x90] sm:$0xf] }
  0x2c   : > { %v4874_v6 = vld [vmem:[#allocation3 + $0x98] sm:$0xf0]  ;;  %v3856_v7 = vor.u32 %v4876_v2, %v3853_v4  ;;  %v4873_v8 = vld [vmem:[#allocation3 + $0x94] sm:$0xf]  ;;  %v3841_v9 = vld [vmem:[#allocation3 + $0x9c] sm:$0xf0] }
  0x2d   : > { %894 = vmatpush.bf16.msra.mxu0 %v3852_v3  ;;  %v3840_v10 = vor.u32 %v4874_v6, %v3839_v5  ;;  %v3844_v11 = vor.u32 %v4873_v8, %v3841_v9  ;;  %v3827_v12 = vld [vmem:[#allocation3 + $0x78] sm:$0xf]  ;;  %v4871_v13 = vld [vmem:[#allocation3 + $0x80] sm:$0xf0]  ;;  %v4870_v14 = vld [vmem:[#allocation3 + $0x7c] sm:$0xf] }
  0x2e   : > { %907 = vmatpush.bf16.msra.mxu1 %v3856_v7  ;;  %v3829_v15 = vld [vmem:[#allocation3 + $0x84] sm:$0xf0]  ;;  %p711_p6 = scmp.lt.s32.totalorder %s5547_s2, 1  ;;  %v3828_v16 = vor.u32 %v4871_v13, %v3827_v12  ;;  %v3815_v18 = vld [vmem:[#allocation3 + $0x60] sm:$0xf]  ;;  %s5889_s25 = sld [smem:[#allocation15_spill]] }
  0x2f   : > { %v3832_v17 = vor.u32 %v4870_v14, %v3829_v15  ;;  %v4868_v19 = vld [vmem:[#allocation3 + $0x68] sm:$0xf0]  ;;  %v4867_v20 = vld [vmem:[#allocation3 + $0x64] sm:$0xf]  ;;  %v3817_v21 = vld [vmem:[#allocation3 + $0x6c] sm:$0xf0] }
  0x30   : > { %s5897_s2 = smov (!%p711_p6, %s5547_s2), 1  ;;  %v3816_v22 = vor.u32 %v4868_v19, %v3815_v18  ;;  %v3859_v23 = vld [vmem:[#allocation3 + $0xb0] sm:$0xf]  ;;  %v4878_v24 = vld [vmem:[#allocation3 + $0xb8] sm:$0xf0]  ;;  %v3820_v26 = vor.u32 %v4867_v20, %v3817_v21  ;;  %s5890_s30 = sld [smem:[#allocation18_spill]] }
  0x31   : > { %895 = vmatpush.bf16.msra.mxu0 %v3840_v10  ;;  %v3847_v25 = vld [vmem:[#allocation3 + $0x98] sm:$0xf]  ;;  %v3803_v27 = vld [vmem:[#allocation3 + $0x48] sm:$0xf]  ;;  %v4865_v28 = vld [vmem:[#allocation3 + $0x50] sm:$0xf0]  ;;  %v3860_v29 = vor.u32 %v4878_v24, %v3859_v23 }
  0x32   : > { %908 = vmatpush.bf16.msra.mxu1 %v3844_v11  ;;  %v4875_v30 = vld [vmem:[#allocation3 + $0xa0] sm:$0xf0]  ;;  %v4864_v31 = vld [vmem:[#allocation3 + $0x4c] sm:$0xf]  ;;  %v3805_v32 = vld [vmem:[#allocation3 + $0x54] sm:$0xf0]  ;;  %v3804_v35 = vor.u32 %v4865_v28, %v3803_v27 }
  0x33   : > { %v3791_v33 = vld [vmem:[#allocation3 + $0x30] sm:$0xf]  ;;  %s3763_s16 = sshll.u32 %s5897_s2, 3  ;;  %920 = vmatpush.bf16.msra.mxu2 %v3860_v29  ;;  %v3848_v34 = vor.u32 %v4875_v30, %v3847_v25  ;;  %v4862_v36 = vld [vmem:[#allocation3 + $0x38] sm:$0xf0]  ;;  %v3808_v39 = vor.u32 %v4864_v31, %v3805_v32  ;;  %vm936_vm0 = vcmask 523264  }
  0x34   : > { %v3835_v37 = vld [vmem:[#allocation3 + $0x80] sm:$0xf]  ;;  %v4872_v38 = vld [vmem:[#allocation3 + $0x88] sm:$0xf0]  ;;  %v4861_v40 = vld [vmem:[#allocation3 + $0x34] sm:$0xf]  ;;  %v3792_v47 = vor.u32 %v4862_v36, %v3791_v33  ;;  %s714_s29 = scalar_lea.vmem %s5889_s25, %s3763_s16 }
  0x35   : > { %896 = vmatpush.bf16.msra.mxu0 %v3828_v16  ;;  %v3793_v41 = vld [vmem:[#allocation3 + $0x3c] sm:$0xf0]  ;;  %v3823_v42 = vld [vmem:[#allocation3 + $0x68] sm:$0xf]  ;;  %v4869_v43 = vld [vmem:[#allocation3 + $0x70] sm:$0xf0]  ;;  %v3836_v46 = vor.u32 %v4872_v38, %v3835_v37 }
  0x36   : > { %909 = vmatpush.bf16.msra.mxu1 %v3832_v17  ;;  %v3779_v44 = vld [vmem:[#allocation3 + $0x18] sm:$0xf]  ;;  %v4859_v45 = vld [vmem:[#allocation3 + $0x20] sm:$0xf0]  ;;  %v4858_v48 = vld [vmem:[#allocation3 + $0x1c] sm:$0xf]  ;;  %v3796_v49 = vor.u32 %v4861_v40, %v3793_v41  ;;  %v3824_v51 = vor.u32 %v4869_v43, %v3823_v42 }
  0x37   : > { %921 = vmatpush.bf16.msra.mxu2 %v3848_v34  ;;  %v3781_v50 = vld [vmem:[#allocation3 + $0x24] sm:$0xf0]  ;;  %v3780_v52 = vor.u32 %v4859_v45, %v3779_v44  ;;  %v3811_v53 = vld [vmem:[#allocation3 + $0x50] sm:$0xf]  ;;  %v4866_v54 = vld [vmem:[#allocation3 + $0x58] sm:$0xf0] }
  0x38   : > { %v3784_v55 = vor.u32 %v4858_v48, %v3781_v50  ;;  %v3767_v56 = vld [vmem:[#allocation3] sm:$0xf]  ;;  %v4856_v57 = vld [vmem:[#allocation3 + $0x8] sm:$0xf0]  ;;  %v4855_v58 = vld [vmem:[#allocation3 + $0x4] sm:$0xf]  ;;  %v3812_v60 = vor.u32 %v4866_v54, %v3811_v53 }
  0x39   : > { %897 = vmatpush.bf16.msra.mxu0 %v3816_v22  ;;  %v3769_v59 = vld [vmem:[#allocation3 + $0xc] sm:$0xf0]  ;;  %v3768_v61 = vor.u32 %v4856_v57, %v3767_v56  ;;  %v5610_v62 = vld [vmem:[%s714_s29] sm:$0xff]  ;;  %v4863_v0 = vld [vmem:[#allocation3 + $0x40] sm:$0xf0]  ;;  %s5431_s21 = smov 64  }
  0x3a   : > { %910 = vmatpush.bf16.msra.mxu1 %v3820_v26  ;;  %v3799_v63 = vld [vmem:[#allocation3 + $0x38] sm:$0xf]  ;;  %v3772_v1 = vor.u32 %v4855_v58, %v3769_v59  ;;  %v725_v2 = vpack.c.bf16 %v5610_v62, %v5610_v62  ;;  %v3787_v4 = vld [vmem:[#allocation3 + $0x20] sm:$0xf]  ;;  %v4860_v5 = vld [vmem:[#allocation3 + $0x28] sm:$0xf0] }
  0x3b   : > { %922 = vmatpush.bf16.msra.mxu2 %v3836_v46  ;;  %v3800_v3 = vor.u32 %v4863_v0, %v3799_v63  ;;  %v3788_v6 = vor.u32 %v4860_v5, %v3787_v4  ;;  %v3775_v7 = vld [vmem:[#allocation3 + $0x8] sm:$0xf]  ;;  %v4857_v8 = vld [vmem:[#allocation3 + $0x10] sm:$0xf0]  ;;  %v758_v10 = vld [vmem:[%s5890_s30] sm:$0x7] }
  0x3c   : > { %v3776_v9 = vor.u32 %v4857_v8, %v3775_v7  ;;  %v761_v11 = vperm.slane %v758_v10, 1  ;;  %v760_v14 = vperm.slane %v758_v10, 0  ;;  %s5891_s24 = sld [smem:[#allocation16_spill]]  ;;  %v762_v24 = vperm.slane %v758_v10, 2 }
  0x3d   : > { %898 = vmatpush.bf16.msra.mxu0 %v3804_v35  ;;  %vm990_vm1 = vcmask 1043456   ;;  %vm961_vm2 = vcmask 64512   ;;  %s5892_s4 = sld [smem:[#allocation19_spill]]  ;;  %vm1086_vm11 = vcmask 1048064  }
  0x3e   : > { %911 = vmatpush.bf16.msra.mxu1 %v3808_v39  ;;  %s5894_s0 = sld [smem:[#allocation23_spill]] }
  0x3f   : > { %923 = vmatpush.bf16.msra.mxu2 %v3824_v51 }
  0x41   : > { %899 = vmatpush.bf16.msra.mxu0 %v3792_v47 }
  0x42   : > { %912 = vmatpush.bf16.msra.mxu1 %v3796_v49  ;;  %s5625_s8 = scalar_lea.vmem %s5891_s24, %s5897_s2  ;;  %s5893_s24 = sld [smem:[#allocation22_spill]] }
  0x43   : > { %924 = vmatpush.bf16.msra.mxu2 %v3812_v60  ;;  %v5186_v30 = vld [vmem:[%s5625_s8] ss:$0 sm:$0xff] }
  0x44   : > { %s721_s27 = scalar_lea.vmem %s5894_s0, %s3763_s16 }
  0x45   : > { %900 = vmatpush.bf16.msra.mxu0 %v3780_v52 }
  0x46   : > { %913 = vmatpush.bf16.msra.mxu1 %v3784_v55 }
  0x47   : > { %925 = vmatpush.bf16.msra.mxu2 %v3800_v3 }
  0x49   : > { %901 = vmatpush.bf16.msra.mxu0 %v3768_v61 }
  0x4a   : > { %914 = vmatpush.bf16.msra.mxu1 %v3772_v1 }
  0x4b   : > { %926 = vmatpush.bf16.msra.mxu2 %v3788_v6 }
  0x4c   : > { %902 = vmatmul.bf16.vlgmr.msra.gmra.mxu0 %v725_v2 }
  0x4d   : > { %915 = vmatmul.bf16.vlgmr.msra.gmra.mxu1 %v725_v2 }
  0x4f   : > { %927 = vmatpush.bf16.msra.mxu2 %v3776_v9 }
  0x52   : > { %928 = vmatmul.bf16.vlgmr.msra.gmra.mxu2 %v725_v2 }
  0xc9   : > { %v903_v12 = vpop.f32.mrf.mxu0 }
  0xca   : > { %v916_v13 = vpop.f32.mrf.mxu1  ;;  %v904_v17 = vadd.f32 %v903_v12, %v760_v14 }
  0xcb   : > { %v917_v15 = vadd.f32 %v916_v13, %v761_v11 }
  0xcc   : > { %v933_v21 = vpack.c.bf16 %v904_v17, %v904_v17 }
  0xcd   : > { %v934_v16 = vpack.c.bf16 %v917_v15, %v917_v15 }
  0xcf   : > { %1012 = vrot.lane.b32.xlu1 %v934_v16, %s5431_s21  ;;  %v941_v18 = vsel %vm936_vm0, %v934_v16, 0 }
  0xd0   : > { %950 = vmatpush.bf16.xpose.msra.mxu3 %v941_v18 }
  0xd1   : > { %v905_v19 = vpop.f32.mrf.mxu0 }
  0xd2   : > { %v918_v20 = vpop.f32.mrf.mxu1  ;;  %v4886_v19 = vld [vmem:[%s5892_s4 + $0x38] sm:$0xff] }
  0xd3   : > { %1158 = vmatpush.bf16.msrb.mxu1 %v4886_v19  ;;  %v4885_v20 = vld [vmem:[%s5892_s4 + $0x30] sm:$0xff] }
  0xd5   : > { %v929_v22 = vpop.f32.mrf.mxu2 }
  0xd6   : > { %v930_v25 = vadd.f32 %v929_v22, %v762_v24  ;;  %v4883_v22 = vld [vmem:[%s5892_s4 + $0x20] sm:$0xff]  ;;  %v4881_v24 = vld [vmem:[%s5892_s4 + $0x10] sm:$0xff] }
  0xd7   : > { %1009 = vrot.lane.b32.xlu1 %v933_v21, %s5431_s21  ;;  %3861 = vmatmul.msk.bf16.vlgmr.msra.gmra.mxu3 %vm936_vm0, %v933_v21  ;;  %v4884_v21 = vld [vmem:[%s5892_s4 + $0x28] sm:$0xff] }
  0xd8   : > { %v935_v26 = vpack.c.bf16 %v930_v25, %v930_v25  ;;  %1159 = vmatpush.bf16.msrb.mxu1 %v4885_v20  ;;  %v3963_v20 = vld [vmem:[#allocation5 + $0x80] sm:$0xf] }
  0xda   : > { %v992_v27 = vsel %vm990_vm1, %v935_v26, 0 }
  0xdb   : > { %1001 = vmatpush.bf16.msrb.mxu3 %v992_v27  ;;  %v4880_v27 = vld [vmem:[%s5892_s4 + $0x8] sm:$0xff] }
  0xdc   : > { %1160 = vmatpush.bf16.msrb.mxu1 %v4884_v21  ;;  %v4905_v21 = vld [vmem:[#allocation5 + $0x8c] sm:$0xf0] }
  0xdd   : > { %v931_v23 = vpop.f32.mrf.mxu2 }
  0xde   : > { %v4882_v23 = vld [vmem:[%s5892_s4 + $0x18] sm:$0xff] }
  0xe0   : > { %1161 = vmatpush.bf16.msrb.mxu1 %v4883_v22  ;;  %v4903_v22 = vld [vmem:[#allocation5 + $0x84] sm:$0xf] }
  0xe4   : > { %1162 = vmatpush.bf16.msrb.mxu1 %v4882_v23  ;;  %v3964_v23 = vor.u32 %v4905_v21, %v3963_v20  ;;  %v4950_v20 = vld [vmem:[#allocation7 + $0xf8] sm:$0xff] }
  0xe8   : > { %1163 = vmatpush.bf16.msrb.mxu1 %v4881_v24  ;;  %v3965_v24 = vld [vmem:[#allocation5 + $0x90] sm:$0xf0] }
  0xec   : > { %1164 = vmatpush.bf16.msrb.mxu1 %v4880_v27  ;;  %v3968_v27 = vor.u32 %v4903_v22, %v3965_v24  ;;  %v4941_v22 = vld [vmem:[#allocation7 + $0xb0] sm:$0xff] }
 0x141   : > { %v1013_v28 = vpop.permute.xlu1 %1012 }
 0x142   : > { %v1018_v29 = vsel %vm936_vm0, %v1013_v28, 0  ;;  %v4879_v28 = vld [vmem:[%s5892_s4] sm:$0xff] }
 0x143   : > { %1027 = vmatpush.bf16.xpose.msra.mxu3 %v1018_v29  ;;  %1165 = vmatpush.bf16.msrb.mxu1 %v4879_v28 }
 0x149   : > { %v1010_v56 = vpop.permute.xlu1 %1009 }
 0x15a   : > { %v952_v31 = vpop.f32.mrf.mxu3 }
 0x15b   : > { %v956_v32 = vmul.f32 0.125, %v952_v31 }
 0x15d   : > { %v960_v33 = vadd.f32 %v5186_v30, %v956_v32  ;;  %v5187_v32 = vld [vmem:[%s5855_s5] ss:$0 sm:$0xff] }
 0x15f   : > { %v962_v34 = vsel %vm961_vm2, %v960_v33, -inf }
 0x160   : > { %963 = vmax.xlane.f32.xlu0 %v962_v34 }
 0x162   : > { %v954_v35 = vpop.f32.mrf.mxu3 }
 0x1d3   : > { %v964_v36 = vpop.xlane.xlu0 %963 }
 0x1d4   : > { %v965_v37 = vsub.f32 %v960_v33, %v964_v36 }
 0x1d6   : > { %v966_v38 = vmul.f32 1.442695, %v965_v37  ;;  %v5432_v37 = vmov 128.0  }
 0x1d8   : > { %5201 = vpow2.f32 %v966_v38  ;;  %v4011_v38 = vld [vmem:[#allocation5 + $0xe0] sm:$0xf] }
 0x1de   : > { %v5202_v39 = vpop.eup %5201 }
 0x1df   : > { %v968_v40 = vsel %vm961_vm2, %v5202_v39, 0.0 }
 0x1e0   : > { %969 = vadd.xlane.f32.xlu0 %v968_v40  ;;  %v4915_v40 = vld [vmem:[#allocation5 + $0xe4] sm:$0xf] }
 0x1f4   : > { %1061 = vrot.lane.b32.xlu0 %v935_v26, %s5431_s21 }
 0x253   : > { %v970_v41 = vpop.xlane.xlu0 %969 }
 0x254   : > { %5203 = vrcp.f32 %v970_v41  ;;  %v982_v45 = vand.u32 2147483648, %v970_v41  ;;  %v980_v47 = vand.u32 2147483647, %v970_v41  ;;  %vm976_vm4 = vweird.f32 %v970_v41 }
 0x256   : > { %v983_v49 = vor.u32 1.1754944e-38, %v982_v45  ;;  %vm981_vm6 = vcmp.eq.f32.partialorder %v980_v47, 8.507059e+37  ;;  %v4916_v47 = vld [vmem:[#allocation5 + $0xec] sm:$0xf] }
 0x25a   : > { %v5204_v42 = vpop.eup %5203 }
 0x25b   : > { %v972_v43 = vmul.f32 %v5204_v42, %v970_v41  ;;  %vm977_vm3 = vweird.f32 %v5204_v42 }
 0x25c   : > { %vm978_vm5 = vmor %vm976_vm4, %vm977_vm3 }
 0x25d   : > { %v973_v44 = vsub.f32 1.0, %v972_v43  ;;  %v4019_v43 = vld [vmem:[#allocation5 + $0xe8] sm:$0xf] }
 0x25f   : > { %v974_v46 = vmul.f32 %v5204_v42, %v973_v44  ;;  %v4918_v44 = vld [vmem:[#allocation5 + $0xf4] sm:$0xf0] }
 0x261   : > { %v975_v48 = vadd.f32 %v5204_v42, %v974_v46  ;;  %v4020_v46 = vor.u32 %v4918_v44, %v4019_v43  ;;  %v3931_v44 = vld [vmem:[#allocation5 + $0x40] sm:$0xf] }
 0x263   : > { %v979_v50 = vsel %vm978_vm5, %v5204_v42, %v975_v48  ;;  %v4013_v42 = vld [vmem:[#allocation5 + $0xf0] sm:$0xf0]  ;;  %v4021_v48 = vld [vmem:[#allocation5 + $0xf8] sm:$0xf0] }
 0x264   : > { %v984_v51 = vsel %vm981_vm6, %v983_v49, %v979_v50  ;;  %v4016_v45 = vor.u32 %v4915_v40, %v4013_v42  ;;  %v4024_v49 = vor.u32 %v4916_v47, %v4021_v48  ;;  %v3957_v42 = vld [vmem:[#allocation5 + $0x78] sm:$0xf0]  ;;  %v3933_v48 = vld [vmem:[#allocation5 + $0x50] sm:$0xf0] }
 0x265   : > { %v985_v52 = vmul.f32 %v5202_v39, %v984_v51  ;;  %v4917_v39 = vld [vmem:[#allocation5 + $0xec] sm:$0xf0] }
 0x266   : > { %v1062_v53 = vpop.permute.xlu0 %1061  ;;  %v4012_v41 = vor.u32 %v4917_v39, %v4011_v38  ;;  %1451 = vmatpush.bf16.msra.mxu1 %v4024_v49  ;;  %v4902_v38 = vld [vmem:[#allocation5 + $0x74] sm:$0xf0]  ;;  %v3939_v49 = vld [vmem:[#allocation5 + $0x48] sm:$0xf] }
 0x267   : > { %v986_v54 = vpack.c.bf16 %v985_v52, %v985_v52  ;;  %v1067_v55 = vsel %vm990_vm1, %v1062_v53, 0 }
 0x268   : > { %1076 = vmatpush.bf16.msrb.mxu0 %v1067_v55  ;;  %1412 = vmatpush.bf16.msrb.mxu2 %v4012_v41  ;;  %v4900_v41 = vld [vmem:[#allocation5 + $0x6c] sm:$0xf] }
 0x269   : > { %3862 = vmatmul.msk.bf16.vlgmr.msrb.gmra.mxu3 %vm961_vm2, %v986_v54  ;;  %v3960_v43 = vor.u32 %v4900_v41, %v3957_v42  ;;  %v4925_v41 = vld [vmem:[#allocation7 + $0x30] sm:$0xff] }
 0x26a   : > { %1425 = vmatpush.bf16.msrb.mxu3 %v4016_v45  ;;  %v4897_v45 = vld [vmem:[#allocation5 + $0x4c] sm:$0xf0] }
 0x26b   : > { %v3932_v47 = vor.u32 %v4897_v45, %v3931_v44  ;;  %v4933_v42 = vld [vmem:[#allocation7 + $0x70] sm:$0xff]  ;;  %v4947_v44 = vld [vmem:[#allocation7 + $0xe0] sm:$0xff]  ;;  %v4924_v45 = vld [vmem:[#allocation7 + $0x28] sm:$0xff] }
 0x26c   : > { %1438 = vmatpush.bf16.msra.mxu0 %v4020_v46  ;;  %v4895_v46 = vld [vmem:[#allocation5 + $0x44] sm:$0xf] }
 0x279   : > { %3863 = vmatmul.msk.bf16.vlgmr.msra.gmra.mxu3 %vm936_vm0, %v1010_v56 }
 0x2ec   : > { %v1003_v57 = vpop.f32.mrf.mxu3 }
 0x2ed   : > { %1007 = vst.msk [vmem:[#allocation2] sm:$0xff] %vm936_vm0, %v1003_v57 }
 0x2f4   : > { %v1005_v58 = vpop.f32.mrf.mxu3 }
 0x2fc   : > { %v1029_v59 = vpop.f32.mrf.mxu3 }
 0x2fd   : > { %v1033_v60 = vmul.f32 0.125, %v1029_v59  ;;  %v3995_v59 = vld [vmem:[#allocation5 + $0xc0] sm:$0xf] }
 0x2ff   : > { %v1034_v61 = vadd.f32 %v5186_v30, %v1033_v60  ;;  %v4913_v60 = vld [vmem:[#allocation5 + $0xcc] sm:$0xf0] }
 0x301   : > { %v1035_v63 = vsel %vm961_vm2, %v1034_v61, -inf }
 0x302   : > { %1036 = vmax.xlane.f32.xlu2 %v1035_v63  ;;  %v3996_v63 = vor.u32 %v4913_v60, %v3995_v59  ;;  %v4891_v59 = vld [vmem:[#allocation5 + $0x24] sm:$0xf] }
 0x304   : > { %v1031_v0 = vpop.f32.mrf.mxu3  ;;  %1413 = vmatpush.bf16.msrb.mxu2 %v3996_v63  ;;  %v3923_v63 = vld [vmem:[#allocation5 + $0x28] sm:$0xf] }
 0x305   : > { %v3997_v0 = vld [vmem:[#allocation5 + $0xd0] sm:$0xf0] }
 0x375   : > { %v1037_v1 = vpop.xlane.xlu2 %1036 }
 0x376   : > { %v1038_v2 = vsub.f32 %v1034_v61, %v1037_v1  ;;  %v4911_v61 = vld [vmem:[#allocation5 + $0xc4] sm:$0xf]  ;;  %v4003_v1 = vld [vmem:[#allocation5 + $0xc8] sm:$0xf] }
 0x378   : > { %v1039_v3 = vmul.f32 1.442695, %v1038_v2  ;;  %v4914_v2 = vld [vmem:[#allocation5 + $0xd4] sm:$0xf0] }
 0x37a   : > { %5205 = vpow2.f32 %v1039_v3  ;;  %v4000_v3 = vor.u32 %v4911_v61, %v3997_v0  ;;  %v3917_v61 = vld [vmem:[#allocation5 + $0x30] sm:$0xf0]  ;;  %v4894_v0 = vld [vmem:[#allocation5 + $0x34] sm:$0xf0] }
 0x37c   : > { %1426 = vmatpush.bf16.msrb.mxu3 %v4000_v3  ;;  %v4892_v3 = vld [vmem:[#allocation5 + $0x2c] sm:$0xf] }
 0x380   : > { %v5206_v4 = vpop.eup %5205 }
 0x381   : > { %v1041_v5 = vsel %vm961_vm2, %v5206_v4, 0.0 }
 0x382   : > { %1042 = vadd.xlane.f32.xlu2 %v1041_v5  ;;  %v4912_v5 = vld [vmem:[#allocation5 + $0xcc] sm:$0xf] }
 0x3f5   : > { %v1043_v6 = vpop.xlane.xlu2 %1042 }
 0x3f6   : > { %5207 = vrcp.f32 %v1043_v6  ;;  %v1055_v10 = vand.u32 2147483648, %v1043_v6  ;;  %v1053_v12 = vand.u32 2147483647, %v1043_v6  ;;  %vm1049_vm8 = vweird.f32 %v1043_v6 }
 0x3f7   : > { %5209 = vrcp.f32 %v5432_v37  ;;  %v3955_v37 = vld [vmem:[#allocation5 + $0x68] sm:$0xf] }
 0x3f8   : > { %v1056_v14 = vor.u32 1.1754944e-38, %v1055_v10  ;;  %vm1054_vm10 = vcmp.eq.f32.partialorder %v1053_v12, 8.507059e+37  ;;  %v4907_v10 = vld [vmem:[#allocation5 + $0xa4] sm:$0xf]  ;;  %v3981_v12 = vld [vmem:[#allocation5 + $0xb0] sm:$0xf0]  ;;  %v3956_v40 = vor.u32 %v4902_v38, %v3955_v37 }
 0x3f9   : > { %v4926_v38 = vld [vmem:[#allocation7 + $0x38] sm:$0xff] }
 0x3fc   : > { %v5208_v7 = vpop.eup %5207 }
 0x3fd   : > { %v1045_v8 = vmul.f32 %v5208_v7, %v1043_v6  ;;  %vm1050_vm7 = vweird.f32 %v5208_v7  ;;  %v5210_v50 = vpop.eup %5209  ;;  %v4005_v6 = vld [vmem:[#allocation5 + $0xd8] sm:$0xf0] }
 0x3fe   : > { %vm1051_vm9 = vmor %vm1049_vm8, %vm1050_vm7  ;;  %vm1181_vm12 = vweird.f32 %v5210_v50 }
 0x3ff   : > { %v1046_v9 = vsub.f32 1.0, %v1045_v8  ;;  %v3979_v8 = vld [vmem:[#allocation5 + $0xa0] sm:$0xf] }
 0x401   : > { %v1047_v11 = vmul.f32 %v5208_v7, %v1046_v9  ;;  %v4909_v9 = vld [vmem:[#allocation5 + $0xac] sm:$0xf0] }
 0x403   : > { %v1048_v13 = vadd.f32 %v5208_v7, %v1047_v11  ;;  %v3980_v11 = vor.u32 %v4909_v9, %v3979_v8  ;;  %v4887_v8 = vld [vmem:[#allocation5 + $0x4] sm:$0xf]  ;;  %v3901_v9 = vld [vmem:[#allocation5 + $0x10] sm:$0xf0] }
 0x405   : > { %v1052_v15 = vsel %vm1051_vm9, %v5208_v7, %v1048_v13  ;;  %v4008_v7 = vor.u32 %v4912_v5, %v4005_v6  ;;  %v3987_v13 = vld [vmem:[#allocation5 + $0xa8] sm:$0xf]  ;;  %1414 = vmatpush.bf16.msrb.mxu2 %v3980_v11  ;;  %v3899_v5 = vld [vmem:[#allocation5] sm:$0xf]  ;;  %v3904_v11 = vor.u32 %v4887_v8, %v3901_v9 }
 0x406   : > { %v1057_v16 = vsel %vm1054_vm10, %v1056_v14, %v1052_v15  ;;  %v4910_v14 = vld [vmem:[#allocation5 + $0xb4] sm:$0xf0]  ;;  %v3984_v15 = vor.u32 %v4907_v10, %v3981_v12  ;;  %v3907_v12 = vld [vmem:[#allocation5 + $0x8] sm:$0xf] }
 0x407   : > { %v1058_v17 = vmul.f32 %v5206_v4, %v1057_v16  ;;  %v4004_v4 = vor.u32 %v4914_v2, %v4003_v1  ;;  %1452 = vmatpush.bf16.msra.mxu1 %v4008_v7  ;;  %v3988_v16 = vor.u32 %v4910_v14, %v3987_v13  ;;  %v3920_v1 = vor.u32 %v4891_v59, %v3917_v61  ;;  %v4889_v7 = vld [vmem:[#allocation5 + $0xc] sm:$0xf0]  ;;  %v4890_v13 = vld [vmem:[#allocation5 + $0x14] sm:$0xf0]  ;;  %v4888_v14 = vld [vmem:[#allocation5 + $0xc] sm:$0xf] }
 0x408   : > { %1427 = vmatpush.bf16.msrb.mxu3 %v3984_v15  ;;  %v3924_v2 = vor.u32 %v4894_v0, %v3923_v63  ;;  %v3900_v10 = vor.u32 %v4889_v7, %v3899_v5  ;;  %v3908_v15 = vor.u32 %v4890_v13, %v3907_v12  ;;  %v4929_v59 = vld [vmem:[#allocation7 + $0x50] sm:$0xff]  ;;  %v4943_v61 = vld [vmem:[#allocation7 + $0xc0] sm:$0xff]  ;;  %v4920_v63 = vld [vmem:[#allocation7 + $0x8] sm:$0xff] }
 0x409   : > { %v1059_v18 = vpack.c.bf16 %v1058_v17, %v1058_v17  ;;  %1439 = vmatpush.bf16.msra.mxu0 %v4004_v4  ;;  %v4908_v17 = vld [vmem:[#allocation5 + $0xac] sm:$0xf]  ;;  %1415 = vmatpush.bf16.msrb.mxu2 %v3964_v23  ;;  %v3925_v4 = vld [vmem:[#allocation5 + $0x38] sm:$0xf0]  ;;  %v4949_v23 = vld [vmem:[#allocation7 + $0xf0] sm:$0xff] }
 0x40a   : > { %v3928_v6 = vor.u32 %v4892_v3, %v3925_v4  ;;  %v4928_v0 = vld [vmem:[#allocation7 + $0x48] sm:$0xff]  ;;  %v4927_v3 = vld [vmem:[#allocation7 + $0x40] sm:$0xff] }
 0x40b   : > { %3864 = vmatmul.msk.bf16.vlgmr.msrb.gmra.mxu0 %vm961_vm2, %v1059_v18  ;;  %v3989_v18 = vld [vmem:[#allocation5 + $0xb8] sm:$0xf0] }
 0x40c   : > { %v3992_v19 = vor.u32 %v4908_v17, %v3989_v18  ;;  %1428 = vmatpush.bf16.msrb.mxu3 %v3968_v27 }
 0x40d   : > { %1440 = vmatpush.bf16.msra.mxu0 %v3988_v16  ;;  %v3909_v16 = vld [vmem:[#allocation5 + $0x18] sm:$0xf0] }
 0x40e   : > { %1453 = vmatpush.bf16.msra.mxu1 %v3992_v19  ;;  %v3912_v17 = vor.u32 %v4888_v14, %v3909_v16  ;;  %v4942_v19 = vld [vmem:[#allocation7 + $0xb8] sm:$0xff] }
 0x488   : > { %v1078_v25 = vpop.f32.mrf.mxu0 }
 0x489   : > { %1083 = vrot.lane.b32.xlu1 %v1078_v25, %s5431_s21  ;;  %v3971_v25 = vld [vmem:[#allocation5 + $0x88] sm:$0xf] }
 0x490   : > { %v1080_v26 = vpop.f32.mrf.mxu0 }
 0x491   : > { %v4906_v26 = vld [vmem:[#allocation5 + $0x94] sm:$0xf0] }
 0x492   : > { %v3972_v28 = vor.u32 %v4906_v26, %v3971_v25 }
 0x494   : > { %1441 = vmatpush.bf16.msra.mxu0 %v3972_v28 }
 0x498   : > { %1442 = vmatpush.bf16.msra.mxu0 %v3956_v40  ;;  %v4940_v40 = vld [vmem:[#allocation7 + $0xa8] sm:$0xff] }
 0x4fb   : > { %v1084_v29 = vpop.permute.xlu1 %1083 }
 0x4fc   : > { %1087 = vst.msk [vmem:[#allocation2] sm:$0xff] %vm1086_vm11, %v1084_v29  ;;  %v4904_v29 = vld [vmem:[#allocation5 + $0x8c] sm:$0xf] }
 0x503   : > { %v1088_v30 = vld [vmem:[#allocation2] sm:$0xff] }
 0x504   : > { %v1089_v31 = vpack.c.bf16 %v1088_v30, %v1088_v30  ;;  %v3973_v30 = vld [vmem:[#allocation5 + $0x98] sm:$0xf0] }
 0x506   : > { %1166 = vmatmul.bf16.vlgmr.msrb.gmra.mxu1 %v1089_v31  ;;  %v3976_v31 = vor.u32 %v4904_v29, %v3973_v30 }
 0x508   : > { %1454 = vmatpush.bf16.msra.mxu1 %v3976_v31  ;;  %v5188_v31 = vld [vmem:[%s5856_s6] ss:$0 sm:$0xff] }
 0x50c   : > { %1455 = vmatpush.bf16.msra.mxu1 %v3960_v43  ;;  %v4939_v43 = vld [vmem:[#allocation7 + $0xa0] sm:$0xff] }
 0x583   : > { %v1167_v33 = vpop.f32.mrf.mxu1 }
 0x584   : > { %v1168_v34 = vadd.f32 %v5187_v32, %v1167_v33  ;;  %v3947_v32 = vld [vmem:[#allocation5 + $0x60] sm:$0xf]  ;;  %v4901_v33 = vld [vmem:[#allocation5 + $0x6c] sm:$0xf0] }
 0x586   : > { %v1171_v35 = vadd.f32 %v1168_v34, %v5610_v62  ;;  %v1177_v62 = vmul.f32 128.0, %v5210_v50  ;;  %v4899_v34 = vld [vmem:[#allocation5 + $0x64] sm:$0xf] }
 0x588   : > { %1174 = vadd.xlane.f32.xlu2 %v1171_v35  ;;  %v1178_v51 = vsub.f32 1.0, %v1177_v62  ;;  %v3936_v62 = vor.u32 %v4895_v46, %v3933_v48  ;;  %v4932_v46 = vld [vmem:[#allocation7 + $0x68] sm:$0xff]  ;;  %v4946_v48 = vld [vmem:[#allocation7 + $0xd8] sm:$0xff] }
 0x58a   : > { %v1179_v52 = vmul.f32 %v5210_v50, %v1178_v51 }
 0x58b   : > { %v1169_v36 = vpop.f32.mrf.mxu1 }
 0x58c   : > { %v1180_v53 = vadd.f32 %v5210_v50, %v1179_v52  ;;  %v3949_v36 = vld [vmem:[#allocation5 + $0x70] sm:$0xf0]  ;;  %v4896_v52 = vld [vmem:[#allocation5 + $0x4c] sm:$0xf] }
 0x58d   : > { %v3952_v39 = vor.u32 %v4899_v34, %v3949_v36  ;;  %v5189_v34 = vld [vmem:[%s5857_s7] ss:$0 sm:$0xff] }
 0x58e   : > { %v5670_v54 = vsel %vm1181_vm12, %v5210_v50, %v1180_v53  ;;  %v4898_v50 = vld [vmem:[#allocation5 + $0x54] sm:$0xf0]  ;;  %v3941_v53 = vld [vmem:[#allocation5 + $0x58] sm:$0xf0] }
 0x58f   : > { %1429 = vmatpush.bf16.msrb.mxu3 %v3952_v39  ;;  %v3940_v51 = vor.u32 %v4898_v50, %v3939_v49  ;;  %v4934_v39 = vld [vmem:[#allocation7 + $0x78] sm:$0xff]  ;;  %v4923_v49 = vld [vmem:[#allocation7 + $0x20] sm:$0xff] }
 0x590   : > { %v4931_v50 = vld [vmem:[#allocation7 + $0x60] sm:$0xff] }
 0x591   : > { %1443 = vmatpush.bf16.msra.mxu0 %v3940_v51  ;;  %v4945_v51 = vld [vmem:[#allocation7 + $0xd0] sm:$0xff] }
 0x593   : > { %1430 = vmatpush.bf16.msrb.mxu3 %v3936_v62  ;;  %v4937_v62 = vld [vmem:[#allocation7 + $0x90] sm:$0xff] }
 0x595   : > { %1444 = vmatpush.bf16.msra.mxu0 %v3924_v2  ;;  %v4919_v2 = vld [vmem:[#allocation7] sm:$0xff] }
 0x597   : > { %1431 = vmatpush.bf16.msrb.mxu3 %v3920_v1  ;;  %v1242_v1 = vld [vmem:[%s5859_s9] sm:$0xf] }
 0x598   : > { %v1246_v4 = vperm.slane %v1242_v1, 2  ;;  %v1247_v5 = vperm.slane %v1242_v1, 3 }
 0x599   : > { %1445 = vmatpush.bf16.msra.mxu0 %v3908_v15 }
 0x59b   : > { %1432 = vmatpush.bf16.msrb.mxu3 %v3904_v11  ;;  %v1245_v11 = vperm.slane %v1242_v1, 1 }
 0x59d   : > { %1790 = vmatpush.bf16.msrb.mxu0 %v4942_v19 }
 0x59f   : > { %1777 = vmatpush.bf16.msra.mxu3 %v4934_v39 }
 0x5a1   : > { %1791 = vmatpush.bf16.msrb.mxu0 %v4941_v22 }
 0x5a3   : > { %1778 = vmatpush.bf16.msra.mxu3 %v4933_v42 }
 0x5a5   : > { %1792 = vmatpush.bf16.msrb.mxu0 %v4940_v40 }
 0x5a7   : > { %1779 = vmatpush.bf16.msra.mxu3 %v4932_v46 }
 0x5a9   : > { %1793 = vmatpush.bf16.msrb.mxu0 %v4939_v43 }
 0x5ab   : > { %1780 = vmatpush.bf16.msra.mxu3 %v4931_v50 }
 0x5fb   : > { %v1175_v55 = vpop.xlane.xlu2 %1174 }
 0x5fc   : > { %v1183_v56 = vmul.f32 %v5670_v54, %v1175_v55  ;;  %v3944_v55 = vor.u32 %v4896_v52, %v3941_v53  ;;  %v4922_v52 = vld [vmem:[#allocation7 + $0x18] sm:$0xff] }
 0x5fd   : > { %v4930_v53 = vld [vmem:[#allocation7 + $0x58] sm:$0xff] }
 0x5fe   : > { %v5673_v57 = vsub.f32 %v1171_v35, %v1183_v56  ;;  %v3948_v35 = vor.u32 %v4901_v33, %v3947_v32  ;;  %v3915_v56 = vld [vmem:[#allocation5 + $0x20] sm:$0xf]  ;;  %1456 = vmatpush.bf16.msra.mxu1 %v3944_v55  ;;  %v4936_v55 = vld [vmem:[#allocation7 + $0x88] sm:$0xff]  ;;  %1781 = vmatpush.bf16.msra.mxu3 %v4930_v53 }
 0x600   : > { %v1185_v58 = vmul.f32 %v5673_v57, %v5673_v57  ;;  %1416 = vmatpush.bf16.msrb.mxu2 %v3948_v35 }
 0x602   : > { %1186 = vadd.xlane.f32.xlu1 %v1185_v58  ;;  %v4893_v58 = vld [vmem:[#allocation5 + $0x2c] sm:$0xf0]  ;;  %1457 = vmatpush.bf16.msra.mxu1 %v3928_v6 }
 0x603   : > { %v3916_v60 = vor.u32 %v4893_v58, %v3915_v56  ;;  %v4944_v56 = vld [vmem:[#allocation7 + $0xc8] sm:$0xff]  ;;  %v4921_v58 = vld [vmem:[#allocation7 + $0x10] sm:$0xff]  ;;  %1782 = vmatpush.bf16.msra.mxu3 %v4929_v59 }
 0x604   : > { %1417 = vmatpush.bf16.msrb.mxu2 %v3932_v47  ;;  %v4938_v47 = vld [vmem:[#allocation7 + $0x98] sm:$0xff] }
 0x605   : > { %1794 = vmatpush.bf16.msrb.mxu0 %v4938_v47 }
 0x606   : > { %1458 = vmatpush.bf16.msra.mxu1 %v3912_v17 }
 0x607   : > { %1783 = vmatpush.bf16.msra.mxu3 %v4928_v0 }
 0x608   : > { %1418 = vmatpush.bf16.msrb.mxu2 %v3916_v60  ;;  %v4935_v60 = vld [vmem:[#allocation7 + $0x80] sm:$0xff] }
 0x609   : > { %1795 = vmatpush.bf16.msrb.mxu0 %v4937_v62 }
 0x60a   : > { %1803 = vmatpush.bf16.msrb.mxu1 %v4950_v20 }
 0x60b   : > { %1784 = vmatpush.bf16.msra.mxu3 %v4927_v3 }
 0x60c   : > { %1419 = vmatpush.bf16.msrb.mxu2 %v3900_v10  ;;  %v1244_v10 = vperm.slane %v1242_v1, 0  ;;  %v5190_v1 = vld [vmem:[%s5861_s11] ss:$0 sm:$0xff] }
 0x60d   : > { %1796 = vmatpush.bf16.msrb.mxu0 %v4936_v55 }
 0x60e   : > { %1804 = vmatpush.bf16.msrb.mxu1 %v4949_v23 }
 0x610   : > { %1764 = vmatpush.bf16.msra.mxu2 %v4926_v38 }
 0x611   : > { %1797 = vmatpush.bf16.msrb.mxu0 %v4935_v60 }
 0x614   : > { %1765 = vmatpush.bf16.msra.mxu2 %v4925_v41 }
 0x618   : > { %1766 = vmatpush.bf16.msra.mxu2 %v4924_v45 }
 0x61c   : > { %1767 = vmatpush.bf16.msra.mxu2 %v4923_v49 }
 0x620   : > { %1768 = vmatpush.bf16.msra.mxu2 %v4922_v52 }
 0x624   : > { %1769 = vmatpush.bf16.msra.mxu2 %v4921_v58 }
 0x628   : > { %1770 = vmatpush.bf16.msra.mxu2 %v4920_v63 }
 0x62c   : > { %1771 = vmatpush.bf16.msra.mxu2 %v4919_v2 }
 0x675   : > { %v1187_v18 = vpop.xlane.xlu1 %1186 }
 0x676   : > { %v1188_v21 = vmul.f32 %v1187_v18, %v5670_v54 }
 0x678   : > { %v1189_v24 = vadd.f32 1e-12, %v1188_v21 }
 0x67a   : > { %5211 = vrsqrt.f32 %v1189_v24  ;;  %vm1196_vm14 = vweird.f32 %v1189_v24 }
 0x680   : > { %v5212_v25 = vpop.eup %5211 }
 0x681   : > { %v1191_v26 = vmul.f32 %v5212_v25, %v1189_v24  ;;  %vm1197_vm13 = vweird.f32 %v5212_v25 }
 0x682   : > { %vm1198_vm15 = vmor %vm1196_vm14, %vm1197_vm13 }
 0x683   : > { %v1192_v27 = vmul.f32 %v5212_v25, %v1191_v26 }
 0x685   : > { %v1193_v28 = vmul.f32 0.5, %v1192_v27 }
 0x687   : > { %v1194_v29 = vsub.f32 1.5, %v1193_v28 }
 0x689   : > { %v1195_v30 = vmul.f32 %v5212_v25, %v1194_v29 }
 0x68b   : > { %v1199_v32 = vsel %vm1198_vm15, %v5212_v25, %v1195_v30 }
 0x68c   : > { %v1200_v33 = vmul.f32 %v1199_v32, %v5673_v57  ;;  %v4948_v57 = vld [vmem:[#allocation7 + $0xe8] sm:$0xff] }
 0x68d   : > { %1805 = vmatpush.bf16.msrb.mxu1 %v4948_v57 }
 0x68e   : > { %v1204_v35 = vmul.f32 %v5188_v31, %v1200_v33 }
 0x690   : > { %v5685_v36 = vadd.f32 %v5189_v34, %v1204_v35 }
 0x691   : > { %1806 = vmatpush.bf16.msrb.mxu1 %v4947_v44 }
 0x692   : > { %v1209_v37 = vpack.c.bf16 %v5685_v36, %v5685_v36 }
 0x694   : > { %1420 = vmatmul.bf16.vlgmr.msrb.gmra.mxu2 %v1209_v37  ;;  %1433 = vmatmul.bf16.vlgmr.msrb.gmra.mxu3 %v1209_v37 }
 0x695   : > { %1446 = vmatmul.bf16.vlgmr.msra.gmra.mxu0 %v1209_v37  ;;  %1459 = vmatmul.bf16.vlgmr.msra.gmra.mxu1 %v1209_v37 }
 0x696   : > { %1807 = vmatpush.bf16.msrb.mxu1 %v4946_v48 }
 0x69a   : > { %1808 = vmatpush.bf16.msrb.mxu1 %v4945_v51 }
 0x69e   : > { %1809 = vmatpush.bf16.msrb.mxu1 %v4944_v56 }
 0x6a2   : > { %1810 = vmatpush.bf16.msrb.mxu1 %v4943_v61 }
 0x712   : > { %v1447_v6 = vpop.f32.mrf.mxu0  ;;  %v1460_v7 = vpop.f32.mrf.mxu1 }
 0x713   : > { %v1448_v8 = vadd.f32 %v1447_v6, %v1246_v4  ;;  %v1461_v9 = vadd.f32 %v1460_v7, %v1247_v5 }
 0x715   : > { %v1470_v12 = vmul.f32 0.044715, %v1448_v8  ;;  %v1471_v13 = vmul.f32 0.044715, %v1461_v9  ;;  %v1466_v42 = vmul.f32 0.5, %v1448_v8  ;;  %v1467_v44 = vmul.f32 0.5, %v1461_v9 }
 0x717   : > { %v1474_v14 = vmul.f32 %v1470_v12, %v1448_v8  ;;  %v1475_v15 = vmul.f32 %v1471_v13, %v1461_v9  ;;  %v1421_v16 = vpop.f32.mrf.mxu2  ;;  %v1434_v17 = vpop.f32.mrf.mxu3  ;;  %v4240_v12 = vld [vmem:[#allocation3 + $0x168] sm:$0xf]  ;;  %v4973_v13 = vld [vmem:[#allocation3 + $0x170] sm:$0xf0] }
 0x718   : > { %v1422_v18 = vadd.f32 %v1421_v16, %v1244_v10  ;;  %v1435_v19 = vadd.f32 %v1434_v17, %v1245_v11  ;;  %v4242_v16 = vld [vmem:[#allocation3 + $0x174] sm:$0xf0]  ;;  %v4248_v17 = vld [vmem:[#allocation3 + $0x170] sm:$0xf] }
 0x719   : > { %v1478_v20 = vmul.f32 %v1474_v14, %v1448_v8  ;;  %v1479_v21 = vmul.f32 %v1475_v15, %v1461_v9  ;;  %v4972_v14 = vld [vmem:[#allocation3 + $0x16c] sm:$0xf]  ;;  %v4241_v15 = vor.u32 %v4973_v13, %v4240_v12  ;;  %v4176_v12 = vld [vmem:[#allocation3 + $0xe0] sm:$0xf] }
 0x71a   : > { %v1468_v22 = vmul.f32 0.044715, %v1422_v18  ;;  %v1469_v23 = vmul.f32 0.044715, %v1435_v19  ;;  %v1449_v24 = vpop.f32.mrf.mxu0  ;;  %v1462_v25 = vpop.f32.mrf.mxu1  ;;  %v1464_v51 = vmul.f32 0.5, %v1422_v18  ;;  %v1465_v53 = vmul.f32 0.5, %v1435_v19 }
 0x71b   : > { %v1482_v26 = vadd.f32 %v1478_v20, %v1448_v8  ;;  %v1483_v27 = vadd.f32 %v1479_v21, %v1461_v9  ;;  %2018 = vmatpush.bf16.msrb.mxu2 %v4241_v15  ;;  %v4228_v24 = vld [vmem:[#allocation3 + $0x150] sm:$0xf]  ;;  %v4970_v25 = vld [vmem:[#allocation3 + $0x158] sm:$0xf0]  ;;  %v4956_v13 = vld [vmem:[#allocation3 + $0xe8] sm:$0xf0] }
 0x71c   : > { %v1472_v28 = vmul.f32 %v1468_v22, %v1422_v18  ;;  %v1473_v29 = vmul.f32 %v1469_v23, %v1435_v19  ;;  %v4177_v15 = vor.u32 %v4956_v13, %v4176_v12 }
 0x71d   : > { %v1486_v30 = vmul.f32 0.7978846, %v1482_v26  ;;  %v1487_v31 = vmul.f32 0.7978846, %v1483_v27  ;;  %v4969_v26 = vld [vmem:[#allocation3 + $0x154] sm:$0xf]  ;;  %v4229_v27 = vor.u32 %v4970_v25, %v4228_v24 }
 0x71e   : > { %v1476_v32 = vmul.f32 %v1472_v28, %v1422_v18  ;;  %v1477_v33 = vmul.f32 %v1473_v29, %v1435_v19  ;;  %v4230_v28 = vld [vmem:[#allocation3 + $0x15c] sm:$0xf0]  ;;  %v4236_v29 = vld [vmem:[#allocation3 + $0x158] sm:$0xf] }
 0x71f   : > { %v1423_v34 = vpop.f32.mrf.mxu2  ;;  %v1436_v35 = vpop.f32.mrf.mxu3  ;;  %5213 = vtanh.f32 %v1486_v30  ;;  %v4971_v30 = vld [vmem:[#allocation3 + $0x160] sm:$0xf0]  ;;  %2019 = vmatpush.bf16.msrb.mxu2 %v4229_v27 }
 0x720   : > { %5215 = vtanh.f32 %v1487_v31  ;;  %v1480_v37 = vadd.f32 %v1476_v32, %v1422_v18  ;;  %v1481_v38 = vadd.f32 %v1477_v33, %v1435_v19  ;;  %v4974_v18 = vld [vmem:[#allocation3 + $0x178] sm:$0xf0]  ;;  %v4245_v19 = vor.u32 %v4972_v14, %v4242_v16  ;;  %v4216_v33 = vld [vmem:[#allocation3 + $0x138] sm:$0xf]  ;;  %v4967_v34 = vld [vmem:[#allocation3 + $0x140] sm:$0xf0] }
 0x721   : > { %v4249_v20 = vor.u32 %v4974_v18, %v4248_v17  ;;  %v4233_v31 = vor.u32 %v4969_v26, %v4230_v28  ;;  %v4237_v32 = vor.u32 %v4971_v30, %v4236_v29  ;;  %v4966_v35 = vld [vmem:[#allocation3 + $0x13c] sm:$0xf]  ;;  %v4156_v16 = vld [vmem:[#allocation3 + $0xc0] sm:$0xf]  ;;  %v4952_v17 = vld [vmem:[#allocation3 + $0xc8] sm:$0xf0] }
 0x722   : > { %v1484_v39 = vmul.f32 0.7978846, %v1480_v37  ;;  %v1485_v40 = vmul.f32 0.7978846, %v1481_v38  ;;  %2031 = vmatpush.bf16.msrb.mxu3 %v4245_v19  ;;  %v4217_v37 = vor.u32 %v4967_v34, %v4216_v33  ;;  %v4218_v38 = vld [vmem:[#allocation3 + $0x144] sm:$0xf0]  ;;  %v4157_v19 = vor.u32 %v4952_v17, %v4156_v16 }
 0x723   : > { %2044 = vmatpush.bf16.msra.mxu0 %v4249_v20  ;;  %v4951_v18 = vld [vmem:[#allocation3 + $0xc4] sm:$0xf]  ;;  %v4158_v20 = vld [vmem:[#allocation3 + $0xcc] sm:$0xf0]  ;;  %v5191_v34 = vld [vmem:[%s5862_s12] ss:$0 sm:$0xff] }
 0x724   : > { %5217 = vtanh.f32 %v1484_v39  ;;  %v4224_v39 = vld [vmem:[#allocation3 + $0x140] sm:$0xf]  ;;  %2020 = vmatpush.bf16.msrb.mxu2 %v4217_v37 }
 0x725   : > { %v5214_v57 = vpop.eup %5213  ;;  %5219 = vtanh.f32 %v1485_v40  ;;  %v4968_v40 = vld [vmem:[#allocation3 + $0x148] sm:$0xf0] }
 0x726   : > { %v5216_v41 = vpop.eup %5215  ;;  %v1494_v43 = vadd.f32 1.0, %v5214_v57  ;;  %2032 = vmatpush.bf16.msrb.mxu3 %v4233_v31  ;;  %v4221_v57 = vor.u32 %v4966_v35, %v4218_v38  ;;  %v5192_v38 = vld [vmem:[%s5863_s13] ss:$0 sm:$0xff] }
 0x727   : > { %v1495_v45 = vadd.f32 1.0, %v5216_v41  ;;  %2045 = vmatpush.bf16.msra.mxu0 %v4237_v32  ;;  %v4225_v41 = vor.u32 %v4968_v40, %v4224_v39 }
 0x728   : > { %v1498_v46 = vmul.f32 %v1494_v43, %v1466_v42  ;;  %v4204_v42 = vld [vmem:[#allocation3 + $0x120] sm:$0xf]  ;;  %v4964_v43 = vld [vmem:[#allocation3 + $0x128] sm:$0xf0] }
 0x729   : > { %v1499_v47 = vmul.f32 %v1495_v45, %v1467_v44  ;;  %v4963_v44 = vld [vmem:[#allocation3 + $0x124] sm:$0xf]  ;;  %v4205_v45 = vor.u32 %v4964_v43, %v4204_v42 }
 0x72a   : > { %v5218_v48 = vpop.eup %5217  ;;  %v1502_v49 = vpack.c.bf16 %v1498_v46, %v1498_v46  ;;  %2033 = vmatpush.bf16.msrb.mxu3 %v4221_v57  ;;  %v4206_v46 = vld [vmem:[#allocation3 + $0x12c] sm:$0xf0] }
 0x72b   : > { %v5220_v50 = vpop.eup %5219  ;;  %v1503_v62 = vpack.c.bf16 %v1499_v47, %v1499_v47  ;;  %v1492_v52 = vadd.f32 1.0, %v5218_v48  ;;  %2046 = vmatpush.bf16.msra.mxu0 %v4225_v41  ;;  %v4212_v47 = vld [vmem:[#allocation3 + $0x128] sm:$0xf]  ;;  %v4965_v48 = vld [vmem:[#allocation3 + $0x130] sm:$0xf0]  ;;  %2021 = vmatpush.bf16.msrb.mxu2 %v4205_v45 }
 0x72c   : > { %1798 = vmatmul.bf16.vlgmr.msrb.gmra.mxu0 %v1502_v49  ;;  %v1493_v55 = vadd.f32 1.0, %v5220_v50  ;;  %v4209_v49 = vor.u32 %v4963_v44, %v4206_v46  ;;  %v4213_v50 = vor.u32 %v4965_v48, %v4212_v47  ;;  %v4153_v41 = vld [vmem:[%s5890_s30 + $0x3] sm:$0x7] }
 0x72d   : > { %1811 = vmatmul.bf16.vlgmr.msrb.gmra.mxu1 %v1503_v62  ;;  %v1496_v56 = vmul.f32 %v1492_v52, %v1464_v51  ;;  %v4192_v62 = vld [vmem:[#allocation3 + $0x108] sm:$0xf]  ;;  %v4961_v51 = vld [vmem:[#allocation3 + $0x110] sm:$0xf0]  ;;  %v4960_v52 = vld [vmem:[#allocation3 + $0x10c] sm:$0xf] }
 0x72e   : > { %v1497_v58 = vmul.f32 %v1493_v55, %v1465_v53  ;;  %2034 = vmatpush.bf16.msrb.mxu3 %v4209_v49  ;;  %v4193_v53 = vor.u32 %v4961_v51, %v4192_v62  ;;  %v4194_v55 = vld [vmem:[#allocation3 + $0x114] sm:$0xf0]  ;;  %v1886_v42 = vperm.slane %v4153_v41, 2  ;;  %v1884_v44 = vperm.slane %v4153_v41, 0 }
 0x72f   : > { %v1500_v59 = vpack.c.bf16 %v1496_v56, %v1496_v56  ;;  %2047 = vmatpush.bf16.msra.mxu0 %v4213_v50  ;;  %v4200_v56 = vld [vmem:[#allocation3 + $0x110] sm:$0xf]  ;;  %v1885_v45 = vperm.slane %v4153_v41, 1 }
 0x730   : > { %v1501_v60 = vpack.c.bf16 %v1497_v58, %v1497_v58  ;;  %v4962_v58 = vld [vmem:[#allocation3 + $0x118] sm:$0xf0]  ;;  %2022 = vmatpush.bf16.msrb.mxu2 %v4193_v53 }
 0x731   : > { %1772 = vmatmul.bf16.vlgmr.msra.gmra.mxu2 %v1500_v59  ;;  %v4197_v59 = vor.u32 %v4960_v52, %v4194_v55 }
 0x732   : > { %1785 = vmatmul.bf16.vlgmr.msra.gmra.mxu3 %v1501_v60  ;;  %v4201_v60 = vor.u32 %v4962_v58, %v4200_v56 }
 0x733   : > { %2035 = vmatpush.bf16.msrb.mxu3 %v4197_v59 }
 0x734   : > { %2048 = vmatpush.bf16.msra.mxu0 %v4201_v60 }
 0x7a9   : > { %v1799_v61 = vpop.f32.mrf.mxu0 }
 0x7aa   : > { %v1812_v63 = vpop.f32.mrf.mxu1 }
 0x7b1   : > { %v1801_v0 = vpop.f32.mrf.mxu0 }
 0x7b2   : > { %v1814_v2 = vpop.f32.mrf.mxu1  ;;  %v4957_v0 = vld [vmem:[#allocation3 + $0xf4] sm:$0xf] }
 0x7b3   : > { %v4182_v2 = vld [vmem:[#allocation3 + $0xfc] sm:$0xf0] }
 0x7b4   : > { %v1773_v3 = vpop.f32.mrf.mxu2 }
 0x7b5   : > { %v1774_v4 = vadd.f32 %v5190_v1, %v1773_v3  ;;  %v1786_v5 = vpop.f32.mrf.mxu3  ;;  %v4188_v3 = vld [vmem:[#allocation3 + $0xf8] sm:$0xf] }
 0x7b7   : > { %v1787_v6 = vadd.f32 %v1786_v5, %v1774_v4  ;;  %v4959_v4 = vld [vmem:[#allocation3 + $0x100] sm:$0xf0]  ;;  %v4185_v5 = vor.u32 %v4957_v0, %v4182_v2 }
 0x7b9   : > { %v1800_v7 = vadd.f32 %v1799_v61, %v1787_v6  ;;  %v4180_v61 = vld [vmem:[#allocation3 + $0xf0] sm:$0xf]  ;;  %v4189_v6 = vor.u32 %v4959_v4, %v4188_v3  ;;  %2036 = vmatpush.bf16.msrb.mxu3 %v4185_v5 }
 0x7bb   : > { %v1813_v8 = vadd.f32 %v1812_v63, %v1800_v7  ;;  %v4958_v63 = vld [vmem:[#allocation3 + $0xf8] sm:$0xf0]  ;;  %2049 = vmatpush.bf16.msra.mxu0 %v4189_v6  ;;  %v4168_v7 = vld [vmem:[#allocation3 + $0xd8] sm:$0xf] }
 0x7bc   : > { %v1775_v9 = vpop.f32.mrf.mxu2  ;;  %v4181_v1 = vor.u32 %v4958_v63, %v4180_v61 }
 0x7bd   : > { %v1788_v10 = vpop.f32.mrf.mxu3  ;;  %v1816_v11 = vadd.f32 %v1813_v8, %v5685_v36  ;;  %v4955_v8 = vld [vmem:[#allocation3 + $0xe0] sm:$0xf0]  ;;  %v4954_v9 = vld [vmem:[#allocation3 + $0xdc] sm:$0xf] }
 0x7be   : > { %2023 = vmatpush.bf16.msrb.mxu2 %v4181_v1  ;;  %v4169_v10 = vor.u32 %v4955_v8, %v4168_v7  ;;  %v5249_v1 = vld [vmem:[%s5625_s8] ss:$0 sm:$0xff] }
 0x7bf   : > { %1819 = vadd.xlane.f32.xlu2 %v1816_v11  ;;  %2050 = vmatpush.bf16.msra.mxu0 %v4177_v15 }
 0x7c2   : > { %2024 = vmatpush.bf16.msrb.mxu2 %v4169_v10 }
 0x7c6   : > { %2025 = vmatpush.bf16.msrb.mxu2 %v4157_v19 }
 0x832   : > { %v1820_v21 = vpop.xlane.xlu2 %1819 }
 0x833   : > { %v1821_v22 = vmul.f32 %v1820_v21, %v5670_v54  ;;  %v4164_v21 = vld [vmem:[#allocation3 + $0xc8] sm:$0xf] }
 0x835   : > { %v5697_v23 = vsub.f32 %v1816_v11, %v1821_v22  ;;  %v4170_v11 = vld [vmem:[#allocation3 + $0xe4] sm:$0xf0]  ;;  %v4953_v22 = vld [vmem:[#allocation3 + $0xd0] sm:$0xf0] }
 0x836   : > { %v4173_v14 = vor.u32 %v4954_v9, %v4170_v11  ;;  %v4165_v24 = vor.u32 %v4953_v22, %v4164_v21 }
 0x837   : > { %v1823_v36 = vmul.f32 %v5697_v23, %v5697_v23 }
 0x838   : > { %2037 = vmatpush.bf16.msrb.mxu3 %v4173_v14  ;;  %2051 = vmatpush.bf16.msra.mxu0 %v4165_v24 }
 0x839   : > { %1824 = vadd.xlane.f32.xlu2 %v1823_v36  ;;  %v4161_v36 = vor.u32 %v4951_v18, %v4158_v20 }
 0x83c   : > { %2038 = vmatpush.bf16.msrb.mxu3 %v4161_v36 }
 0x8ac   : > { %v1825_v25 = vpop.xlane.xlu2 %1824 }
 0x8ad   : > { %v1826_v26 = vmul.f32 %v1825_v25, %v5670_v54 }
 0x8af   : > { %v1827_v27 = vadd.f32 1e-12, %v1826_v26 }
 0x8b1   : > { %5221 = vrsqrt.f32 %v1827_v27  ;;  %vm1834_vm4 = vweird.f32 %v1827_v27 }
 0x8b7   : > { %v5222_v28 = vpop.eup %5221 }
 0x8b8   : > { %v1829_v29 = vmul.f32 %v5222_v28, %v1827_v27  ;;  %vm1835_vm3 = vweird.f32 %v5222_v28 }
 0x8b9   : > { %vm1836_vm5 = vmor %vm1834_vm4, %vm1835_vm3 }
 0x8ba   : > { %v1830_v30 = vmul.f32 %v5222_v28, %v1829_v29 }
 0x8bc   : > { %v1831_v31 = vmul.f32 0.5, %v1830_v30 }
 0x8be   : > { %v1832_v32 = vsub.f32 1.5, %v1831_v31 }
 0x8c0   : > { %v1833_v33 = vmul.f32 %v5222_v28, %v1832_v32 }
 0x8c2   : > { %v1837_v35 = vsel %vm1836_vm5, %v5222_v28, %v1833_v33 }
 0x8c3   : > { %v1838_v37 = vmul.f32 %v1837_v35, %v5697_v23 }
 0x8c5   : > { %v1842_v39 = vmul.f32 %v5191_v34, %v1838_v37 }
 0x8c7   : > { %v5709_v40 = vadd.f32 %v5192_v38, %v1842_v39 }
 0x8c9   : > { %v1847_v57 = vpack.c.bf16 %v5709_v40, %v5709_v40 }
 0x8cb   : > { %2026 = vmatmul.bf16.vlgmr.msrb.gmra.mxu2 %v1847_v57  ;;  %2039 = vmatmul.bf16.vlgmr.msrb.gmra.mxu3 %v1847_v57 }
 0x8cc   : > { %2052 = vmatmul.bf16.vlgmr.msra.gmra.mxu0 %v1847_v57 }
 0x949   : > { %v2053_v43 = vpop.f32.mrf.mxu0 }
 0x94a   : > { %v2054_v23 = vadd.f32 %v2053_v43, %v1886_v42 }
 0x94c   : > { %v5716_v46 = vpack.c.bf16 %v2054_v23, %v2054_v23 }
 0x94e   : > { %v2110_v47 = vsel %vm990_vm1, %v5716_v46, 0  ;;  %v2027_v48 = vpop.f32.mrf.mxu2  ;;  %v2040_v49 = vpop.f32.mrf.mxu3 }
 0x94f   : > { %v2028_v50 = vadd.f32 %v2027_v48, %v1884_v44  ;;  %v2041_v62 = vadd.f32 %v2040_v49, %v1885_v45  ;;  %2119 = vmatpush.bf16.msra.mxu2 %v2110_v47 }
 0x951   : > { %v2057_v51 = vpack.c.bf16 %v2028_v50, %v2028_v50  ;;  %v2058_v52 = vpack.c.bf16 %v2041_v62, %v2041_v62  ;;  %v2055_v53 = vpop.f32.mrf.mxu0  ;;  %v4982_v50 = vld [vmem:[%s5892_s4 + $0x78] sm:$0xff]  ;;  %v4981_v62 = vld [vmem:[%s5892_s4 + $0x70] sm:$0xff] }
 0x952   : > { %2277 = vmatpush.bf16.msra.mxu1 %v4982_v50  ;;  %v4978_v53 = vld [vmem:[%s5892_s4 + $0x58] sm:$0xff]  ;;  %v4380_v50 = vld [vmem:[#allocation5 + $0x188] sm:$0xf] }
 0x953   : > { %v2064_v55 = vsel %vm936_vm0, %v2058_v52, 0  ;;  %2130 = vrot.lane.b32.xlu0 %v2058_v52, %s5431_s21  ;;  %2127 = vrot.lane.b32.xlu2 %v2057_v51, %s5431_s21  ;;  %v4979_v52 = vld [vmem:[%s5892_s4 + $0x60] sm:$0xff] }
 0x954   : > { %2073 = vmatpush.bf16.xpose.msra.mxu3 %v2064_v55  ;;  %v4977_v55 = vld [vmem:[%s5892_s4 + $0x50] sm:$0xff] }
 0x956   : > { %v2029_v56 = vpop.f32.mrf.mxu2  ;;  %v2042_v58 = vpop.f32.mrf.mxu3  ;;  %2278 = vmatpush.bf16.msra.mxu1 %v4981_v62  ;;  %v5002_v62 = vld [vmem:[#allocation5 + $0x194] sm:$0xf0] }
 0x95b   : > { %4250 = vmatmul.msk.bf16.vlgmr.msra.gmra.mxu3 %vm936_vm0, %v2057_v51  ;;  %v4980_v51 = vld [vmem:[%s5892_s4 + $0x68] sm:$0xff] }
 0x95c   : > { %2279 = vmatpush.bf16.msra.mxu1 %v4980_v51 }
 0x960   : > { %2280 = vmatpush.bf16.msra.mxu1 %v4979_v52  ;;  %v4381_v52 = vor.u32 %v5002_v62, %v4380_v50 }
 0x964   : > { %2281 = vmatpush.bf16.msra.mxu1 %v4978_v53  ;;  %v5000_v53 = vld [vmem:[#allocation5 + $0x18c] sm:$0xf] }
 0x968   : > { %2282 = vmatpush.bf16.msra.mxu1 %v4977_v55  ;;  %v4382_v55 = vld [vmem:[#allocation5 + $0x198] sm:$0xf0] }
 0x9ad   : > { %v2128_v61 = vpop.permute.xlu2 %2127 }
 0x9c5   : > { %v2131_v59 = vpop.permute.xlu0 %2130 }
 0x9c6   : > { %v2136_v60 = vsel %vm936_vm0, %v2131_v59, 0  ;;  %v4976_v59 = vld [vmem:[%s5892_s4 + $0x48] sm:$0xff] }
 0x9c7   : > { %2145 = vmatpush.bf16.xpose.msrb.mxu3 %v2136_v60  ;;  %2283 = vmatpush.bf16.msra.mxu1 %v4976_v59  ;;  %v4975_v60 = vld [vmem:[%s5892_s4 + $0x40] sm:$0xff]  ;;  %v4997_v59 = vld [vmem:[#allocation5 + $0x16c] sm:$0xf0] }
 0x9cb   : > { %2284 = vmatpush.bf16.msra.mxu1 %v4975_v60  ;;  %v4995_v60 = vld [vmem:[#allocation5 + $0x164] sm:$0xf] }
 0x9ce   : > { %4252 = vmatmul.msk.bf16.vlgmr.msrb.gmra.mxu3 %vm936_vm0, %v2128_v61 }
 0x9de   : > { %v2075_v63 = vpop.f32.mrf.mxu3 }
 0x9df   : > { %v2079_v0 = vmul.f32 0.125, %v2075_v63 }
 0x9e1   : > { %v2080_v2 = vadd.f32 %v5249_v1, %v2079_v0 }
 0x9e3   : > { %v2081_v3 = vsel %vm961_vm2, %v2080_v2, -inf }
 0x9e4   : > { %2082 = vmax.xlane.f32.xlu2 %v2081_v3 }
 0x9e6   : > { %v2077_v4 = vpop.f32.mrf.mxu3 }
 0xa51   : > { %v2147_v5 = vpop.f32.mrf.mxu3 }
 0xa52   : > { %v2151_v6 = vmul.f32 0.125, %v2147_v5 }
 0xa54   : > { %v2152_v7 = vadd.f32 %v5249_v1, %v2151_v6  ;;  %v5193_v1 = vld [vmem:[%s5855_s5 + $0x1] ss:$0 sm:$0xff]  ;;  %v4420_v6 = vld [vmem:[#allocation5 + $0x1e0] sm:$0xf] }
 0xa56   : > { %v2153_v8 = vsel %vm961_vm2, %v2152_v7, -inf }
 0xa57   : > { %v2083_v9 = vpop.xlane.xlu2 %2082  ;;  %2154 = vmax.xlane.f32.xlu0 %v2153_v8  ;;  %v5011_v8 = vld [vmem:[#allocation5 + $0x1e4] sm:$0xf] }
 0xa58   : > { %v2084_v10 = vsub.f32 %v2080_v2, %v2083_v9 }
 0xa59   : > { %v2149_v11 = vpop.f32.mrf.mxu3 }
 0xa5a   : > { %v2085_v12 = vmul.f32 1.442695, %v2084_v10  ;;  %v4422_v10 = vld [vmem:[#allocation5 + $0x1f0] sm:$0xf0]  ;;  %v4428_v11 = vld [vmem:[#allocation5 + $0x1e8] sm:$0xf] }
 0xa5c   : > { %5223 = vpow2.f32 %v2085_v12  ;;  %v5014_v12 = vld [vmem:[#allocation5 + $0x1f4] sm:$0xf0] }
 0xa62   : > { %v5224_v13 = vpop.eup %5223 }
 0xa63   : > { %v2087_v14 = vsel %vm961_vm2, %v5224_v13, 0.0 }
 0xa64   : > { %2088 = vadd.xlane.f32.xlu0 %v2087_v14  ;;  %v4429_v14 = vor.u32 %v5014_v12, %v4428_v11  ;;  %v4342_v11 = vld [vmem:[#allocation5 + $0x150] sm:$0xf0]  ;;  %v4348_v12 = vld [vmem:[#allocation5 + $0x148] sm:$0xf] }
 0xaca   : > { %v2155_v15 = vpop.xlane.xlu0 %2154 }
 0xacb   : > { %v2156_v16 = vsub.f32 %v2152_v7, %v2155_v15  ;;  %v5013_v7 = vld [vmem:[#allocation5 + $0x1ec] sm:$0xf0]  ;;  %v5012_v15 = vld [vmem:[#allocation5 + $0x1ec] sm:$0xf] }
 0xacc   : > { %v4421_v9 = vor.u32 %v5013_v7, %v4420_v6  ;;  %v4340_v7 = vld [vmem:[#allocation5 + $0x140] sm:$0xf] }
 0xacd   : > { %v2157_v17 = vmul.f32 1.442695, %v2156_v16  ;;  %v4430_v16 = vld [vmem:[#allocation5 + $0x1f8] sm:$0xf0] }
 0xace   : > { %2528 = vmatpush.bf16.msrb.mxu2 %v4421_v9  ;;  %v4991_v9 = vld [vmem:[#allocation5 + $0x144] sm:$0xf] }
 0xacf   : > { %5225 = vpow2.f32 %v2157_v17  ;;  %v4433_v17 = vor.u32 %v5012_v15, %v4430_v16  ;;  %v4992_v16 = vld [vmem:[#allocation5 + $0x14c] sm:$0xf] }
 0xad1   : > { %2567 = vmatpush.bf16.msrb.mxu1 %v4433_v17  ;;  %v4350_v17 = vld [vmem:[#allocation5 + $0x158] sm:$0xf0] }
 0xad5   : > { %v5226_v18 = vpop.eup %5225 }
 0xad6   : > { %v2159_v19 = vsel %vm961_vm2, %v5226_v18, 0.0 }
 0xad7   : > { %2160 = vadd.xlane.f32.xlu1 %v2159_v19  ;;  %v2089_v20 = vpop.xlane.xlu0 %2088 }
 0xad8   : > { %5227 = vrcp.f32 %v2089_v20  ;;  %v2101_v24 = vand.u32 2147483648, %v2089_v20  ;;  %v2099_v26 = vand.u32 2147483647, %v2089_v20  ;;  %vm2095_vm7 = vweird.f32 %v2089_v20 }
 0xada   : > { %v2102_v28 = vor.u32 1.1754944e-38, %v2101_v24  ;;  %vm2100_vm9 = vcmp.eq.f32.partialorder %v2099_v26, 8.507059e+37  ;;  %v4412_v26 = vld [vmem:[#allocation5 + $0x1c8] sm:$0xf] }
 0xade   : > { %v5228_v21 = vpop.eup %5227 }
 0xadf   : > { %v2091_v22 = vmul.f32 %v5228_v21, %v2089_v20  ;;  %vm2096_vm6 = vweird.f32 %v5228_v21 }
 0xae0   : > { %vm2097_vm8 = vmor %vm2095_vm7, %vm2096_vm6 }
 0xae1   : > { %v2092_v36 = vsub.f32 1.0, %v2091_v22  ;;  %v5009_v22 = vld [vmem:[#allocation5 + $0x1cc] sm:$0xf0] }
 0xae3   : > { %v2093_v25 = vmul.f32 %v5228_v21, %v2092_v36  ;;  %v5007_v36 = vld [vmem:[#allocation5 + $0x1c4] sm:$0xf] }
 0xae5   : > { %v2094_v27 = vadd.f32 %v5228_v21, %v2093_v25  ;;  %v4406_v25 = vld [vmem:[#allocation5 + $0x1d0] sm:$0xf0] }
 0xae7   : > { %v2098_v29 = vsel %vm2097_vm8, %v5228_v21, %v2094_v27  ;;  %v4404_v21 = vld [vmem:[#allocation5 + $0x1c0] sm:$0xf]  ;;  %v5010_v27 = vld [vmem:[#allocation5 + $0x1d4] sm:$0xf0] }
 0xae8   : > { %v2103_v30 = vsel %vm2100_vm9, %v2102_v28, %v2098_v29  ;;  %v4405_v24 = vor.u32 %v5009_v22, %v4404_v21  ;;  %v4409_v28 = vor.u32 %v5007_v36, %v4406_v25  ;;  %v4413_v29 = vor.u32 %v5010_v27, %v4412_v26  ;;  %v4987_v21 = vld [vmem:[#allocation5 + $0x124] sm:$0xf]  ;;  %v4326_v36 = vld [vmem:[#allocation5 + $0x130] sm:$0xf0]  ;;  %v4990_v25 = vld [vmem:[#allocation5 + $0x134] sm:$0xf0] }
 0xae9   : > { %v2104_v31 = vmul.f32 %v5224_v13, %v2103_v30  ;;  %v4425_v13 = vor.u32 %v5011_v8, %v4422_v10  ;;  %v5008_v30 = vld [vmem:[#allocation5 + $0x1cc] sm:$0xf]  ;;  %v4993_v8 = vld [vmem:[#allocation5 + $0x14c] sm:$0xf0]  ;;  %v4329_v26 = vor.u32 %v4987_v21, %v4326_v36  ;;  %v5039_v36 = vld [vmem:[#allocation7 + $0x1c0] sm:$0xff] }
 0xaea   : > { %2529 = vmatpush.bf16.msrb.mxu2 %v4405_v24  ;;  %v4341_v10 = vor.u32 %v4993_v8, %v4340_v7  ;;  %v4332_v24 = vld [vmem:[#allocation5 + $0x128] sm:$0xf]  ;;  %v5043_v7 = vld [vmem:[#allocation7 + $0x1e0] sm:$0xff]  ;;  %v5025_v21 = vld [vmem:[#allocation7 + $0x150] sm:$0xff] }
 0xaeb   : > { %v2105_v32 = vpack.c.bf16 %v2104_v31, %v2104_v31  ;;  %2541 = vmatpush.bf16.msra.mxu3 %v4425_v13  ;;  %v4414_v31 = vld [vmem:[#allocation5 + $0x1d8] sm:$0xf0]  ;;  %v4994_v13 = vld [vmem:[#allocation5 + $0x154] sm:$0xf0]  ;;  %v4333_v27 = vor.u32 %v4990_v25, %v4332_v24  ;;  %v5020_v8 = vld [vmem:[#allocation7 + $0x128] sm:$0xff] }
 0xaec   : > { %v4349_v15 = vor.u32 %v4994_v13, %v4348_v12  ;;  %v5019_v12 = vld [vmem:[#allocation7 + $0x120] sm:$0xff]  ;;  %v5016_v24 = vld [vmem:[#allocation7 + $0x108] sm:$0xff] }
 0xaed   : > { %4251 = vmatmul.msk.bf16.vlgmr.msra.gmra.mxu2 %vm961_vm2, %v2105_v32  ;;  %v4417_v32 = vor.u32 %v5008_v30, %v4414_v31  ;;  %v4308_v30 = vld [vmem:[#allocation5 + $0x100] sm:$0xf]  ;;  %v5024_v25 = vld [vmem:[#allocation7 + $0x148] sm:$0xff] }
 0xaee   : > { %v5027_v13 = vld [vmem:[#allocation7 + $0x160] sm:$0xff] }
 0xaef   : > { %2542 = vmatpush.bf16.msra.mxu3 %v4409_v28  ;;  %2568 = vmatpush.bf16.msrb.mxu1 %v4417_v32  ;;  %v4988_v28 = vld [vmem:[#allocation5 + $0x12c] sm:$0xf]  ;;  %v4985_v32 = vld [vmem:[#allocation5 + $0x10c] sm:$0xf0] }
 0xaf0   : > { %2179 = vrot.lane.b32.xlu1 %v5716_v46, %s5431_s21 }
 0xb4a   : > { %v2161_v33 = vpop.xlane.xlu1 %2160 }
 0xb4b   : > { %5229 = vrcp.f32 %v2161_v33  ;;  %v2173_v57 = vand.u32 2147483648, %v2161_v33  ;;  %vm2167_vm12 = vweird.f32 %v2161_v33  ;;  %v2171_v41 = vand.u32 2147483647, %v2161_v33 }
 0xb4d   : > { %v2174_v43 = vor.u32 1.1754944e-38, %v2173_v57  ;;  %vm2172_vm14 = vcmp.eq.f32.partialorder %v2171_v41, 8.507059e+37  ;;  %v5006_v57 = vld [vmem:[#allocation5 + $0x1b4] sm:$0xf0] }
 0xb51   : > { %v5230_v34 = vpop.eup %5229 }
 0xb52   : > { %v2163_v35 = vmul.f32 %v5230_v34, %v2161_v33  ;;  %vm2168_vm10 = vweird.f32 %v5230_v34  ;;  %v4388_v33 = vld [vmem:[#allocation5 + $0x1a0] sm:$0xf] }
 0xb53   : > { %vm2169_vm13 = vmor %vm2167_vm12, %vm2168_vm10 }
 0xb54   : > { %v2164_v37 = vsub.f32 1.0, %v2163_v35  ;;  %v5003_v35 = vld [vmem:[#allocation5 + $0x1a4] sm:$0xf] }
 0xb56   : > { %v2165_v38 = vmul.f32 %v5230_v34, %v2164_v37 }
 0xb58   : > { %v2166_v39 = vadd.f32 %v5230_v34, %v2165_v38  ;;  %v4390_v38 = vld [vmem:[#allocation5 + $0x1b0] sm:$0xf0] }
 0xb59   : > { %v4393_v41 = vor.u32 %v5003_v35, %v4390_v38  ;;  %v4309_v35 = vor.u32 %v4985_v32, %v4308_v30  ;;  %v4316_v38 = vld [vmem:[#allocation5 + $0x108] sm:$0xf] }
 0xb5a   : > { %v2170_v42 = vsel %vm2169_vm13, %v5230_v34, %v2166_v39  ;;  %v5005_v34 = vld [vmem:[#allocation5 + $0x1ac] sm:$0xf0]  ;;  %v4396_v39 = vld [vmem:[#allocation5 + $0x1a8] sm:$0xf] }
 0xb5b   : > { %v2175_v23 = vsel %vm2172_vm14, %v2174_v43, %v2170_v42  ;;  %v4389_v37 = vor.u32 %v5005_v34, %v4388_v33  ;;  %v4397_v42 = vor.u32 %v5006_v57, %v4396_v39  ;;  %v5004_v43 = vld [vmem:[#allocation5 + $0x1ac] sm:$0xf]  ;;  %2543 = vmatpush.bf16.msra.mxu3 %v4393_v41  ;;  %v4983_v33 = vld [vmem:[#allocation5 + $0x104] sm:$0xf]  ;;  %v4310_v34 = vld [vmem:[#allocation5 + $0x110] sm:$0xf0] }
 0xb5c   : > { %v2176_v44 = vmul.f32 %v5226_v18, %v2175_v23  ;;  %v4398_v23 = vld [vmem:[#allocation5 + $0x1b8] sm:$0xf0]  ;;  %v4986_v39 = vld [vmem:[#allocation5 + $0x114] sm:$0xf0]  ;;  %v4984_v57 = vld [vmem:[#allocation5 + $0x10c] sm:$0xf] }
 0xb5d   : > { %2530 = vmatpush.bf16.msrb.mxu2 %v4389_v37  ;;  %v4313_v37 = vor.u32 %v4983_v33, %v4310_v34  ;;  %v4317_v41 = vor.u32 %v4986_v39, %v4316_v38 }
 0xb5e   : > { %v2177_v47 = vpack.c.bf16 %v2176_v44, %v2176_v44  ;;  %v4401_v44 = vor.u32 %v5004_v43, %v4398_v23 }
 0xb60   : > { %2569 = vmatpush.bf16.msrb.mxu1 %v4401_v44  ;;  %v5038_v44 = vld [vmem:[#allocation7 + $0x1b8] sm:$0xff] }
 0xb62   : > { %v2180_v45 = vpop.permute.xlu1 %2179 }
 0xb63   : > { %v2185_v46 = vsel %vm990_vm1, %v2180_v45, 0  ;;  %v4372_v45 = vld [vmem:[#allocation5 + $0x180] sm:$0xf] }
 0xb64   : > { %2194 = vmatpush.bf16.msrb.mxu0 %v2185_v46  ;;  %v5001_v46 = vld [vmem:[#allocation5 + $0x18c] sm:$0xf0] }
 0xb67   : > { %4253 = vmatmul.msk.bf16.vlgmr.msrb.gmra.mxu0 %vm961_vm2, %v2177_v47  ;;  %v4999_v47 = vld [vmem:[#allocation5 + $0x184] sm:$0xf] }
 0xb68   : > { %2554 = vmatpush.bf16.msra.mxu0 %v4429_v14  ;;  %v4345_v14 = vor.u32 %v4991_v9, %v4342_v11  ;;  %v5028_v9 = vld [vmem:[#allocation7 + $0x168] sm:$0xff]  ;;  %v5042_v11 = vld [vmem:[#allocation7 + $0x1d8] sm:$0xff] }
 0xb6c   : > { %2555 = vmatpush.bf16.msra.mxu0 %v4413_v29  ;;  %v4334_v29 = vld [vmem:[#allocation5 + $0x138] sm:$0xf0] }
 0xb6d   : > { %v4337_v31 = vor.u32 %v4988_v28, %v4334_v29  ;;  %v5023_v28 = vld [vmem:[#allocation7 + $0x140] sm:$0xff] }
 0xb70   : > { %v2121_v48 = vpop.f32.mrf.mxu2  ;;  %2556 = vmatpush.bf16.msra.mxu0 %v4397_v42  ;;  %v4318_v42 = vld [vmem:[#allocation5 + $0x118] sm:$0xf0] }
 0xb71   : > { %2125 = vst.msk [vmem:[#allocation2] sm:$0xff] %vm936_vm0, %v2121_v48  ;;  %v4373_v48 = vor.u32 %v5001_v46, %v4372_v45  ;;  %v4321_v43 = vor.u32 %v4984_v57, %v4318_v42  ;;  %v5046_v45 = vld [vmem:[#allocation7 + $0x1f8] sm:$0xff] }
 0xb73   : > { %2531 = vmatpush.bf16.msrb.mxu2 %v4373_v48  ;;  %v5045_v48 = vld [vmem:[#allocation7 + $0x1f0] sm:$0xff] }
 0xb74   : > { %2557 = vmatpush.bf16.msra.mxu0 %v4381_v52 }
 0xb78   : > { %v2123_v49 = vpop.f32.mrf.mxu2 }
 0xb79   : > { %v4374_v49 = vld [vmem:[#allocation5 + $0x190] sm:$0xf0] }
 0xb7a   : > { %v4377_v51 = vor.u32 %v4999_v47, %v4374_v49  ;;  %v5037_v47 = vld [vmem:[#allocation7 + $0x1b0] sm:$0xff] }
 0xb7c   : > { %2544 = vmatpush.bf16.msra.mxu3 %v4377_v51 }
 0xbe4   : > { %v2196_v56 = vpop.f32.mrf.mxu0 }
 0xbe5   : > { %2201 = vrot.lane.b32.xlu0 %v2196_v56, %s5431_s21  ;;  %v4385_v56 = vor.u32 %v5000_v53, %v4382_v55 }
 0xbe7   : > { %2570 = vmatpush.bf16.msrb.mxu1 %v4385_v56  ;;  %v5194_v56 = vld [vmem:[%s5856_s6 + $0x1] ss:$0 sm:$0xff] }
 0xbec   : > { %v2198_v58 = vpop.f32.mrf.mxu0 }
 0xbed   : > { %v4356_v58 = vld [vmem:[#allocation5 + $0x160] sm:$0xf] }
 0xc57   : > { %v2202_v61 = vpop.permute.xlu0 %2201 }
 0xc58   : > { %2204 = vst.msk [vmem:[#allocation2] sm:$0xff] %vm1086_vm11, %v2202_v61  ;;  %v4357_v61 = vor.u32 %v4997_v59, %v4356_v58 }
 0xc5a   : > { %2532 = vmatpush.bf16.msrb.mxu2 %v4357_v61 }
 0xc5e   : > { %2533 = vmatpush.bf16.msrb.mxu2 %v4341_v10  ;;  %v5034_v10 = vld [vmem:[#allocation7 + $0x198] sm:$0xff] }
 0xc5f   : > { %v2205_v63 = vld [vmem:[#allocation2] sm:$0xff] }
 0xc60   : > { %v2206_v0 = vpack.c.bf16 %v2205_v63, %v2205_v63  ;;  %v4358_v63 = vld [vmem:[#allocation5 + $0x170] sm:$0xf0] }
 0xc62   : > { %2285 = vmatmul.bf16.vlgmr.msra.gmra.mxu1 %v2206_v0  ;;  %v4364_v0 = vld [vmem:[#allocation5 + $0x168] sm:$0xf] }
 0xcdf   : > { %v2286_v2 = vpop.f32.mrf.mxu1 }
 0xce0   : > { %v2287_v3 = vadd.f32 %v5193_v1, %v2286_v2  ;;  %v4998_v1 = vld [vmem:[#allocation5 + $0x174] sm:$0xf0]  ;;  %v4361_v2 = vor.u32 %v4995_v60, %v4358_v63 }
 0xce1   : > { %v5195_v60 = vld [vmem:[%s5857_s7 + $0x1] ss:$0 sm:$0xff] }
 0xce2   : > { %v2290_v4 = vadd.f32 %v2287_v3, %v5709_v40  ;;  %v4365_v3 = vor.u32 %v4998_v1, %v4364_v0  ;;  %2545 = vmatpush.bf16.msra.mxu3 %v4361_v2  ;;  %v5022_v1 = vld [vmem:[#allocation7 + $0x138] sm:$0xff] }
 0xce3   : > { %v5030_v2 = vld [vmem:[#allocation7 + $0x178] sm:$0xff] }
 0xce4   : > { %2295 = vadd.xlane.f32.xlu1 %v2290_v4  ;;  %2558 = vmatpush.bf16.msra.mxu0 %v4365_v3  ;;  %v5036_v3 = vld [vmem:[#allocation7 + $0x1a8] sm:$0xff] }
 0xce6   : > { %2546 = vmatpush.bf16.msra.mxu3 %v4345_v14  ;;  %v5033_v14 = vld [vmem:[#allocation7 + $0x190] sm:$0xff] }
 0xce7   : > { %v2288_v5 = vpop.f32.mrf.mxu1 }
 0xce8   : > { %v4366_v5 = vld [vmem:[#allocation5 + $0x178] sm:$0xf0]  ;;  %2559 = vmatpush.bf16.msra.mxu0 %v4349_v15  ;;  %v5041_v15 = vld [vmem:[#allocation7 + $0x1d0] sm:$0xff] }
 0xcea   : > { %2547 = vmatpush.bf16.msra.mxu3 %v4329_v26  ;;  %v4305_v26 = vld [vmem:[%s5859_s9 + $0x4] sm:$0xf] }
 0xceb   : > { %v2362_v29 = vperm.slane %v4305_v26, 2  ;;  %v2363_v30 = vperm.slane %v4305_v26, 3 }
 0xcec   : > { %2560 = vmatpush.bf16.msra.mxu0 %v4333_v27  ;;  %v5015_v27 = vld [vmem:[#allocation7 + $0x100] sm:$0xff] }
 0xcee   : > { %2548 = vmatpush.bf16.msra.mxu3 %v4313_v37  ;;  %v2361_v37 = vperm.slane %v4305_v26, 1 }
 0xcf0   : > { %2561 = vmatpush.bf16.msra.mxu0 %v4317_v41 }
 0xcf2   : > { %2895 = vmatpush.bf16.msrb.mxu3 %v5030_v2 }
 0xcf4   : > { %2908 = vmatpush.bf16.msrb.mxu0 %v5038_v44 }
 0xcf8   : > { %2909 = vmatpush.bf16.msrb.mxu0 %v5037_v47 }
 0xcfc   : > { %2910 = vmatpush.bf16.msrb.mxu0 %v5036_v3 }
 0xd57   : > { %v2296_v18 = vpop.xlane.xlu1 %2295 }
 0xd58   : > { %v2297_v40 = vmul.f32 %v2296_v18, %v5670_v54  ;;  %v4353_v18 = vor.u32 %v4992_v16, %v4350_v17  ;;  %v5018_v16 = vld [vmem:[#allocation7 + $0x118] sm:$0xff] }
 0xd59   : > { %v5026_v17 = vld [vmem:[#allocation7 + $0x158] sm:$0xff] }
 0xd5a   : > { %v5768_v19 = vsub.f32 %v2290_v4, %v2297_v40  ;;  %v4996_v4 = vld [vmem:[#allocation5 + $0x16c] sm:$0xf]  ;;  %v4324_v40 = vld [vmem:[#allocation5 + $0x120] sm:$0xf] }
 0xd5b   : > { %v4369_v6 = vor.u32 %v4996_v4, %v4366_v5  ;;  %v5021_v4 = vld [vmem:[#allocation7 + $0x130] sm:$0xff] }
 0xd5c   : > { %v2299_v20 = vmul.f32 %v5768_v19, %v5768_v19  ;;  %v5029_v5 = vld [vmem:[#allocation7 + $0x170] sm:$0xff] }
 0xd5d   : > { %2571 = vmatpush.bf16.msrb.mxu1 %v4369_v6  ;;  %2896 = vmatpush.bf16.msrb.mxu3 %v5029_v5  ;;  %v5035_v6 = vld [vmem:[#allocation7 + $0x1a0] sm:$0xff] }
 0xd5e   : > { %2300 = vadd.xlane.f32.xlu2 %v2299_v20  ;;  %v4989_v20 = vld [vmem:[#allocation5 + $0x12c] sm:$0xf0]  ;;  %2911 = vmatpush.bf16.msrb.mxu0 %v5035_v6 }
 0xd5f   : > { %v4325_v22 = vor.u32 %v4989_v20, %v4324_v40  ;;  %v5040_v40 = vld [vmem:[#allocation7 + $0x1c8] sm:$0xff]  ;;  %v5017_v20 = vld [vmem:[#allocation7 + $0x110] sm:$0xff] }
 0xd61   : > { %2572 = vmatpush.bf16.msrb.mxu1 %v4353_v18  ;;  %2534 = vmatpush.bf16.msrb.mxu2 %v4325_v22  ;;  %v5032_v18 = vld [vmem:[#allocation7 + $0x188] sm:$0xff]  ;;  %v5031_v22 = vld [vmem:[#allocation7 + $0x180] sm:$0xff] }
 0xd62   : > { %2897 = vmatpush.bf16.msrb.mxu3 %v5028_v9  ;;  %2912 = vmatpush.bf16.msrb.mxu0 %v5034_v10 }
 0xd65   : > { %2573 = vmatpush.bf16.msrb.mxu1 %v4337_v31  ;;  %2535 = vmatpush.bf16.msrb.mxu2 %v4309_v35  ;;  %v2360_v35 = vperm.slane %v4305_v26, 0  ;;  %v5196_v26 = vld [vmem:[%s5861_s11 + $0x1] ss:$0 sm:$0xff] }
 0xd66   : > { %2898 = vmatpush.bf16.msrb.mxu3 %v5027_v13  ;;  %2913 = vmatpush.bf16.msrb.mxu0 %v5033_v14 }
 0xd69   : > { %2574 = vmatpush.bf16.msrb.mxu1 %v4321_v43  ;;  %2882 = vmatpush.bf16.msra.mxu2 %v5022_v1 }
 0xd6a   : > { %2899 = vmatpush.bf16.msrb.mxu3 %v5026_v17  ;;  %2914 = vmatpush.bf16.msrb.mxu0 %v5032_v18 }
 0xd6d   : > { %2921 = vmatpush.bf16.msra.mxu1 %v5046_v45  ;;  %2883 = vmatpush.bf16.msra.mxu2 %v5021_v4 }
 0xd6e   : > { %2900 = vmatpush.bf16.msrb.mxu3 %v5025_v21  ;;  %2915 = vmatpush.bf16.msrb.mxu0 %v5031_v22 }
 0xd71   : > { %2922 = vmatpush.bf16.msra.mxu1 %v5045_v48  ;;  %2884 = vmatpush.bf16.msra.mxu2 %v5020_v8 }
 0xd72   : > { %2901 = vmatpush.bf16.msrb.mxu3 %v5024_v25 }
 0xd75   : > { %2885 = vmatpush.bf16.msra.mxu2 %v5019_v12 }
 0xd76   : > { %2902 = vmatpush.bf16.msrb.mxu3 %v5023_v28 }
 0xd79   : > { %2886 = vmatpush.bf16.msra.mxu2 %v5018_v16 }
 0xd7d   : > { %2887 = vmatpush.bf16.msra.mxu2 %v5017_v20 }
 0xd81   : > { %2888 = vmatpush.bf16.msra.mxu2 %v5016_v24 }
 0xd85   : > { %2889 = vmatpush.bf16.msra.mxu2 %v5015_v27 }
 0xdd1   : > { %v2301_v23 = vpop.xlane.xlu2 %2300 }
 0xdd2   : > { %v2302_v46 = vmul.f32 %v2301_v23, %v5670_v54 }
 0xdd4   : > { %v2303_v49 = vadd.f32 1e-12, %v2302_v46 }
 0xdd6   : > { %5231 = vrsqrt.f32 %v2303_v49  ;;  %vm2310_vm1 = vweird.f32 %v2303_v49 }
 0xddc   : > { %v5232_v50 = vpop.eup %5231 }
 0xddd   : > { %v2305_v62 = vmul.f32 %v5232_v50, %v2303_v49  ;;  %vm2311_vm0 = vweird.f32 %v5232_v50 }
 0xdde   : > { %vm2312_vm2 = vmor %vm2310_vm1, %vm2311_vm0 }
 0xddf   : > { %v2306_v51 = vmul.f32 %v5232_v50, %v2305_v62 }
 0xde1   : > { %v2307_v52 = vmul.f32 0.5, %v2306_v51 }
 0xde3   : > { %v2308_v53 = vsub.f32 1.5, %v2307_v52 }
 0xde5   : > { %v2309_v55 = vmul.f32 %v5232_v50, %v2308_v53 }
 0xde7   : > { %v2313_v58 = vsel %vm2312_vm2, %v5232_v50, %v2309_v55 }
 0xde8   : > { %v2314_v59 = vmul.f32 %v2313_v58, %v5768_v19  ;;  %v5044_v19 = vld [vmem:[#allocation7 + $0x1e8] sm:$0xff] }
 0xde9   : > { %2923 = vmatpush.bf16.msra.mxu1 %v5044_v19 }
 0xdea   : > { %v2318_v61 = vmul.f32 %v5194_v56, %v2314_v59 }
 0xdec   : > { %v5780_v63 = vadd.f32 %v5195_v60, %v2318_v61 }
 0xded   : > { %2924 = vmatpush.bf16.msra.mxu1 %v5043_v7 }
 0xdee   : > { %v2323_v0 = vpack.c.bf16 %v5780_v63, %v5780_v63 }
 0xdf0   : > { %2536 = vmatmul.bf16.vlgmr.msrb.gmra.mxu2 %v2323_v0  ;;  %2549 = vmatmul.bf16.vlgmr.msra.gmra.mxu3 %v2323_v0 }
 0xdf1   : > { %2562 = vmatmul.bf16.vlgmr.msra.gmra.mxu0 %v2323_v0  ;;  %2575 = vmatmul.bf16.vlgmr.msrb.gmra.mxu1 %v2323_v0 }
 0xdf2   : > { %2925 = vmatpush.bf16.msra.mxu1 %v5042_v11 }
 0xdf6   : > { %2926 = vmatpush.bf16.msra.mxu1 %v5041_v15 }
 0xdfa   : > { %2927 = vmatpush.bf16.msra.mxu1 %v5040_v40 }
 0xdfe   : > { %2928 = vmatpush.bf16.msra.mxu1 %v5039_v36 }
 0xe6e   : > { %v2563_v31 = vpop.f32.mrf.mxu0  ;;  %v2576_v32 = vpop.f32.mrf.mxu1 }
 0xe6f   : > { %v2564_v33 = vadd.f32 %v2563_v31, %v2362_v29  ;;  %v2577_v34 = vadd.f32 %v2576_v32, %v2363_v30 }
 0xe71   : > { %v2586_v38 = vmul.f32 0.044715, %v2564_v33  ;;  %v2587_v39 = vmul.f32 0.044715, %v2577_v34  ;;  %v2582_v5 = vmul.f32 0.5, %v2564_v33  ;;  %v2583_v7 = vmul.f32 0.5, %v2577_v34 }
 0xe73   : > { %v2590_v57 = vmul.f32 %v2586_v38, %v2564_v33  ;;  %v2591_v41 = vmul.f32 %v2587_v39, %v2577_v34  ;;  %v2537_v42 = vpop.f32.mrf.mxu2  ;;  %v2550_v43 = vpop.f32.mrf.mxu3  ;;  %v5054_v38 = vld [vmem:[%s5864_s14 + $0x38] sm:$0xff] }
 0xe74   : > { %v2538_v23 = vadd.f32 %v2537_v42, %v2360_v35  ;;  %v2551_v44 = vadd.f32 %v2550_v43, %v2361_v37  ;;  %3036 = vmatpush.bf16.msrb.mxu2 %v5054_v38  ;;  %v5053_v43 = vld [vmem:[%s5864_s14 + $0x30] sm:$0xff]  ;;  %v5069_v38 = vld [vmem:[#allocation8 + $0x6c] sm:$0xf0] }
 0xe75   : > { %v2594_v45 = vmul.f32 %v2590_v57, %v2564_v33  ;;  %v2595_v46 = vmul.f32 %v2591_v41, %v2577_v34 }
 0xe76   : > { %v2584_v47 = vmul.f32 0.044715, %v2538_v23  ;;  %v2585_v48 = vmul.f32 0.044715, %v2551_v44  ;;  %v2565_v49 = vpop.f32.mrf.mxu0  ;;  %v2578_v50 = vpop.f32.mrf.mxu1  ;;  %v2580_v15 = vmul.f32 0.5, %v2538_v23  ;;  %v2581_v17 = vmul.f32 0.5, %v2551_v44 }
 0xe77   : > { %v2598_v62 = vadd.f32 %v2594_v45, %v2564_v33  ;;  %v2599_v51 = vadd.f32 %v2595_v46, %v2577_v34  ;;  %v5049_v45 = vld [vmem:[%s5864_s14 + $0x10] sm:$0xff]  ;;  %v5048_v46 = vld [vmem:[%s5864_s14 + $0x8] sm:$0xff]  ;;  %v5085_v49 = vld [vmem:[#allocation8 + $0xec] sm:$0xf0] }
 0xe78   : > { %v2588_v52 = vmul.f32 %v2584_v47, %v2538_v23  ;;  %v2589_v53 = vmul.f32 %v2585_v48, %v2551_v44  ;;  %3037 = vmatpush.bf16.msrb.mxu2 %v5053_v43  ;;  %v5047_v47 = vld [vmem:[%s5864_s14] sm:$0xff]  ;;  %v4711_v48 = vld [vmem:[#allocation8 + $0xe0] sm:$0xf]  ;;  %v5083_v50 = vld [vmem:[#allocation8 + $0xe4] sm:$0xf] }
 0xe79   : > { %v2602_v55 = vmul.f32 0.7978846, %v2598_v62  ;;  %v2603_v56 = vmul.f32 0.7978846, %v2599_v51  ;;  %v4712_v51 = vor.u32 %v5085_v49, %v4711_v48  ;;  %v4649_v43 = vld [vmem:[#allocation8 + $0x70] sm:$0xf0] }
 0xe7a   : > { %v2592_v58 = vmul.f32 %v2588_v52, %v2538_v23  ;;  %v2593_v59 = vmul.f32 %v2589_v53, %v2551_v44  ;;  %v4713_v52 = vld [vmem:[#allocation8 + $0xf0] sm:$0xf0]  ;;  %v4719_v53 = vld [vmem:[#allocation8 + $0xe8] sm:$0xf] }
 0xe7b   : > { %v2539_v60 = vpop.f32.mrf.mxu2  ;;  %v2552_v61 = vpop.f32.mrf.mxu3  ;;  %5233 = vtanh.f32 %v2602_v55  ;;  %v5086_v55 = vld [vmem:[#allocation8 + $0xf4] sm:$0xf0]  ;;  %3253 = vmatpush.bf16.msra.mxu3 %v4712_v51 }
 0xe7c   : > { %5235 = vtanh.f32 %v2603_v56  ;;  %v2596_v0 = vadd.f32 %v2592_v58, %v2538_v23  ;;  %v2597_v1 = vadd.f32 %v2593_v59, %v2551_v44  ;;  %v5051_v23 = vld [vmem:[%s5864_s14 + $0x20] sm:$0xff]  ;;  %v5050_v44 = vld [vmem:[%s5864_s14 + $0x18] sm:$0xff]  ;;  %v4716_v58 = vor.u32 %v5083_v50, %v4713_v52  ;;  %v5084_v60 = vld [vmem:[#allocation8 + $0xec] sm:$0xf] }
 0xe7d   : > { %v4720_v59 = vor.u32 %v5086_v55, %v4719_v53  ;;  %v4721_v61 = vld [vmem:[#allocation8 + $0xf8] sm:$0xf0]  ;;  %v5197_v53 = vld [vmem:[%s5862_s12 + $0x1] ss:$0 sm:$0xff] }
 0xe7e   : > { %v2600_v2 = vmul.f32 0.7978846, %v2596_v0  ;;  %v2601_v3 = vmul.f32 0.7978846, %v2597_v1  ;;  %v4695_v0 = vld [vmem:[#allocation8 + $0xc0] sm:$0xf]  ;;  %v4724_v1 = vor.u32 %v5084_v60, %v4721_v61  ;;  %3266 = vmatpush.bf16.msra.mxu0 %v4716_v58 }
 0xe7f   : > { %3279 = vmatpush.bf16.msrb.mxu1 %v4720_v59  ;;  %v5198_v58 = vld [vmem:[%s5863_s13 + $0x1] ss:$0 sm:$0xff] }
 0xe80   : > { %5237 = vtanh.f32 %v2600_v2  ;;  %v5081_v2 = vld [vmem:[#allocation8 + $0xcc] sm:$0xf0] }
 0xe81   : > { %v5234_v19 = vpop.eup %5233  ;;  %5239 = vtanh.f32 %v2601_v3  ;;  %v5079_v3 = vld [vmem:[#allocation8 + $0xc4] sm:$0xf] }
 0xe82   : > { %v5236_v4 = vpop.eup %5235  ;;  %v2610_v6 = vadd.f32 1.0, %v5234_v19  ;;  %v4697_v19 = vld [vmem:[#allocation8 + $0xd0] sm:$0xf0] }
 0xe83   : > { %v2611_v8 = vadd.f32 1.0, %v5236_v4 }
 0xe84   : > { %v2614_v9 = vmul.f32 %v2610_v6, %v2582_v5  ;;  %v4696_v5 = vor.u32 %v5081_v2, %v4695_v0  ;;  %v4700_v6 = vor.u32 %v5079_v3, %v4697_v19  ;;  %v4631_v0 = vld [vmem:[#allocation8 + $0x40] sm:$0xf]  ;;  %v5063_v2 = vld [vmem:[#allocation8 + $0x44] sm:$0xf]  ;;  %v4633_v19 = vld [vmem:[#allocation8 + $0x50] sm:$0xf0] }
 0xe85   : > { %v2615_v10 = vmul.f32 %v2611_v8, %v2583_v7  ;;  %v4703_v7 = vld [vmem:[#allocation8 + $0xc8] sm:$0xf]  ;;  %v5082_v8 = vld [vmem:[#allocation8 + $0xd4] sm:$0xf0] }
 0xe86   : > { %v5238_v11 = vpop.eup %5237  ;;  %v2618_v12 = vpack.c.bf16 %v2614_v9, %v2614_v9  ;;  %v5080_v9 = vld [vmem:[#allocation8 + $0xcc] sm:$0xf]  ;;  %3254 = vmatpush.bf16.msra.mxu3 %v4696_v5  ;;  %3267 = vmatpush.bf16.msra.mxu0 %v4700_v6  ;;  %v5066_v5 = vld [vmem:[#allocation8 + $0x54] sm:$0xf0]  ;;  %v4636_v6 = vor.u32 %v5063_v2, %v4633_v19  ;;  %v5089_v2 = vld [vmem:[#allocation10 + $0x10] sm:$0xff] }
 0xe87   : > { %v5240_v13 = vpop.eup %5239  ;;  %v2619_v14 = vpack.c.bf16 %v2615_v10, %v2615_v10  ;;  %v2608_v16 = vadd.f32 1.0, %v5238_v11  ;;  %v4705_v10 = vld [vmem:[#allocation8 + $0xd8] sm:$0xf0]  ;;  %v4679_v11 = vld [vmem:[#allocation8 + $0xa0] sm:$0xf] }
 0xe88   : > { %2916 = vmatmul.bf16.vlgmr.msrb.gmra.mxu0 %v2618_v12  ;;  %v2609_v18 = vadd.f32 1.0, %v5240_v13  ;;  %v4708_v12 = vor.u32 %v5080_v9, %v4705_v10  ;;  %v5077_v13 = vld [vmem:[#allocation8 + $0xac] sm:$0xf0]  ;;  %v4615_v9 = vld [vmem:[#allocation8 + $0x20] sm:$0xf] }
 0xe89   : > { %2929 = vmatmul.bf16.vlgmr.msra.gmra.mxu1 %v2619_v14  ;;  %v2612_v40 = vmul.f32 %v2608_v16, %v2580_v15  ;;  %v5075_v14 = vld [vmem:[#allocation8 + $0xa4] sm:$0xf]  ;;  %v4681_v15 = vld [vmem:[#allocation8 + $0xb0] sm:$0xf0]  ;;  %v4680_v16 = vor.u32 %v5077_v13, %v4679_v11  ;;  %v5061_v10 = vld [vmem:[#allocation8 + $0x2c] sm:$0xf0] }
 0xe8a   : > { %v2613_v20 = vmul.f32 %v2609_v18, %v2581_v17  ;;  %v4687_v17 = vld [vmem:[#allocation8 + $0xa8] sm:$0xf]  ;;  %v5078_v18 = vld [vmem:[#allocation8 + $0xb4] sm:$0xf0]  ;;  %v5059_v11 = vld [vmem:[#allocation8 + $0x24] sm:$0xf] }
 0xe8b   : > { %v2616_v21 = vpack.c.bf16 %v2612_v40, %v2612_v40  ;;  %v5076_v40 = vld [vmem:[#allocation8 + $0xac] sm:$0xf]  ;;  %3255 = vmatpush.bf16.msra.mxu3 %v4680_v16  ;;  %v4617_v13 = vld [vmem:[#allocation8 + $0x30] sm:$0xf0]  ;;  %v5095_v19 = vld [vmem:[#allocation10 + $0x40] sm:$0xff] }
 0xe8c   : > { %v2617_v22 = vpack.c.bf16 %v2613_v20, %v2613_v20  ;;  %v4684_v20 = vor.u32 %v5075_v14, %v4681_v15  ;;  %v4623_v14 = vld [vmem:[#allocation8 + $0x28] sm:$0xf]  ;;  %v5062_v15 = vld [vmem:[#allocation8 + $0x34] sm:$0xf0]  ;;  %v4620_v16 = vor.u32 %v5059_v11, %v4617_v13 }
 0xe8d   : > { %2890 = vmatmul.bf16.vlgmr.msra.gmra.mxu2 %v2616_v21  ;;  %v4688_v21 = vor.u32 %v5078_v18, %v4687_v17  ;;  %v4624_v17 = vor.u32 %v5062_v15, %v4623_v14  ;;  %v5060_v18 = vld [vmem:[#allocation8 + $0x2c] sm:$0xf] }
 0xe8e   : > { %2903 = vmatmul.bf16.vlgmr.msrb.gmra.mxu3 %v2617_v22  ;;  %v4689_v22 = vld [vmem:[#allocation8 + $0xb8] sm:$0xf0]  ;;  %3268 = vmatpush.bf16.msra.mxu0 %v4684_v20 }
 0xf05   : > { %v2917_v36 = vpop.f32.mrf.mxu0 }
 0xf06   : > { %v2930_v24 = vpop.f32.mrf.mxu1 }
 0xf0d   : > { %v2919_v25 = vpop.f32.mrf.mxu0 }
 0xf0e   : > { %v2932_v27 = vpop.f32.mrf.mxu1  ;;  %v4692_v25 = vor.u32 %v5076_v40, %v4689_v22  ;;  %v4625_v40 = vld [vmem:[#allocation8 + $0x38] sm:$0xf0]  ;;  %v5057_v22 = vld [vmem:[#allocation8 + $0xc] sm:$0xf0] }
 0xf0f   : > { %v4665_v27 = vld [vmem:[#allocation8 + $0x90] sm:$0xf0]  ;;  %v4628_v20 = vor.u32 %v5060_v18, %v4625_v40 }
 0xf10   : > { %v2891_v28 = vpop.f32.mrf.mxu2 }
 0xf11   : > { %v2892_v29 = vadd.f32 %v5196_v26, %v2891_v28  ;;  %v2904_v30 = vpop.f32.mrf.mxu3  ;;  %v5071_v26 = vld [vmem:[#allocation8 + $0x84] sm:$0xf]  ;;  %v4671_v28 = vld [vmem:[#allocation8 + $0x88] sm:$0xf] }
 0xf13   : > { %v2905_v31 = vadd.f32 %v2904_v30, %v2892_v29  ;;  %v5074_v29 = vld [vmem:[#allocation8 + $0x94] sm:$0xf0]  ;;  %v5072_v30 = vld [vmem:[#allocation8 + $0x8c] sm:$0xf] }
 0xf15   : > { %v2918_v32 = vadd.f32 %v2917_v36, %v2905_v31  ;;  %v4663_v36 = vld [vmem:[#allocation8 + $0x80] sm:$0xf]  ;;  %v4673_v31 = vld [vmem:[#allocation8 + $0x98] sm:$0xf0] }
 0xf17   : > { %v2931_v33 = vadd.f32 %v2930_v24, %v2918_v32  ;;  %v5073_v24 = vld [vmem:[#allocation8 + $0x8c] sm:$0xf0] }
 0xf18   : > { %v2893_v34 = vpop.f32.mrf.mxu2  ;;  %v4664_v32 = vor.u32 %v5073_v24, %v4663_v36  ;;  %v5055_v36 = vld [vmem:[#allocation8 + $0x4] sm:$0xf] }
 0xf19   : > { %v2906_v35 = vpop.f32.mrf.mxu3  ;;  %v2934_v37 = vadd.f32 %v2931_v33, %v5780_v63  ;;  %v5052_v63 = vld [vmem:[%s5864_s14 + $0x28] sm:$0xff]  ;;  %v4668_v34 = vor.u32 %v5071_v26, %v4665_v27  ;;  %v4607_v26 = vld [vmem:[#allocation8 + $0x8] sm:$0xf]  ;;  %v5058_v27 = vld [vmem:[#allocation8 + $0x14] sm:$0xf0] }
 0xf1a   : > { %3038 = vmatpush.bf16.msrb.mxu2 %v5052_v63  ;;  %v4672_v35 = vor.u32 %v5074_v29, %v4671_v28  ;;  %v4655_v63 = vld [vmem:[#allocation8 + $0x68] sm:$0xf]  ;;  %3256 = vmatpush.bf16.msra.mxu3 %v4664_v32  ;;  %v4608_v29 = vor.u32 %v5058_v27, %v4607_v26 }
 0xf1b   : > { %2939 = vadd.xlane.f32.xlu2 %v2934_v37  ;;  %3269 = vmatpush.bf16.msra.mxu0 %v4668_v34  ;;  %v5110_v34 = vld [vmem:[#allocation10 + $0xb8] sm:$0xff] }
 0xf1e   : > { %3039 = vmatpush.bf16.msrb.mxu2 %v5051_v23  ;;  %v5070_v23 = vld [vmem:[#allocation8 + $0x74] sm:$0xf0] }
 0xf1f   : > { %v4656_v49 = vor.u32 %v5070_v23, %v4655_v63  ;;  %v5108_v63 = vld [vmem:[#allocation10 + $0xa8] sm:$0xff] }
 0xf20   : > { %v5092_v23 = vld [vmem:[#allocation10 + $0x28] sm:$0xff] }
 0xf22   : > { %3040 = vmatpush.bf16.msrb.mxu2 %v5050_v44  ;;  %v5068_v44 = vld [vmem:[#allocation8 + $0x6c] sm:$0xf] }
 0xf26   : > { %3041 = vmatpush.bf16.msrb.mxu2 %v5049_v45  ;;  %v4657_v45 = vld [vmem:[#allocation8 + $0x78] sm:$0xf0] }
 0xf2a   : > { %3042 = vmatpush.bf16.msrb.mxu2 %v5048_v46 }
 0xf2e   : > { %3043 = vmatpush.bf16.msrb.mxu2 %v5047_v47 }
 0xf32   : > { %3292 = vmatpush.bf16.msra.mxu2 %v4724_v1  ;;  %v5065_v1 = vld [vmem:[#allocation8 + $0x4c] sm:$0xf0] }
 0xf33   : > { %v4632_v3 = vor.u32 %v5065_v1, %v4631_v0  ;;  %v5096_v0 = vld [vmem:[#allocation10 + $0x48] sm:$0xff] }
 0xf34   : > { %v5104_v1 = vld [vmem:[#allocation10 + $0x88] sm:$0xff] }
 0xf36   : > { %3293 = vmatpush.bf16.msra.mxu2 %v4708_v12  ;;  %v4616_v12 = vor.u32 %v5061_v10, %v4615_v9 }
 0xf3a   : > { %3294 = vmatpush.bf16.msra.mxu2 %v4692_v25  ;;  %v4601_v25 = vld [vmem:[#allocation8 + $0x10] sm:$0xf0] }
 0xf3b   : > { %v4604_v28 = vor.u32 %v5055_v36, %v4601_v25 }
 0xf8e   : > { %v2940_v39 = vpop.xlane.xlu2 %2939 }
 0xf8f   : > { %v2941_v57 = vmul.f32 %v2940_v39, %v5670_v54  ;;  %v5067_v39 = vld [vmem:[#allocation8 + $0x64] sm:$0xf] }
 0xf90   : > { %v4652_v48 = vor.u32 %v5067_v39, %v4649_v43  ;;  %v5109_v39 = vld [vmem:[#allocation10 + $0xb0] sm:$0xff]  ;;  %v5100_v43 = vld [vmem:[#allocation10 + $0x68] sm:$0xff] }
 0xf91   : > { %v5795_v41 = vsub.f32 %v2934_v37, %v2941_v57  ;;  %v4647_v37 = vld [vmem:[#allocation8 + $0x60] sm:$0xf] }
 0xf92   : > { %v4648_v47 = vor.u32 %v5069_v38, %v4647_v37  ;;  %3270 = vmatpush.bf16.msra.mxu0 %v4652_v48  ;;  %v5118_v37 = vld [vmem:[#allocation10 + $0xf8] sm:$0xff]  ;;  %v5101_v38 = vld [vmem:[#allocation10 + $0x70] sm:$0xff]  ;;  %v5115_v48 = vld [vmem:[#allocation10 + $0xe0] sm:$0xff] }
 0xf93   : > { %v2943_v42 = vmul.f32 %v5795_v41, %v5795_v41 }
 0xf94   : > { %3257 = vmatpush.bf16.msra.mxu3 %v4648_v47  ;;  %v5091_v47 = vld [vmem:[#allocation10 + $0x20] sm:$0xff] }
 0xf95   : > { %2944 = vadd.xlane.f32.xlu0 %v2943_v42  ;;  %v4676_v42 = vor.u32 %v5072_v30, %v4673_v31  ;;  %v5056_v30 = vld [vmem:[#allocation8 + $0xc] sm:$0xf]  ;;  %v4609_v31 = vld [vmem:[#allocation8 + $0x18] sm:$0xf0] }
 0xf96   : > { %3271 = vmatpush.bf16.msra.mxu0 %v4636_v6  ;;  %v4612_v32 = vor.u32 %v5056_v30, %v4609_v31  ;;  %v5112_v6 = vld [vmem:[#allocation10 + $0xc8] sm:$0xff] }
 0xf97   : > { %3295 = vmatpush.bf16.msra.mxu2 %v4676_v42  ;;  %v5117_v42 = vld [vmem:[#allocation10 + $0xf0] sm:$0xff] }
 0xf98   : > { %3258 = vmatpush.bf16.msra.mxu3 %v4632_v3  ;;  %v5113_v3 = vld [vmem:[#allocation10 + $0xd0] sm:$0xff] }
 0xf9a   : > { %3272 = vmatpush.bf16.msra.mxu0 %v4620_v16 }
 0xf9c   : > { %3259 = vmatpush.bf16.msra.mxu3 %v4616_v12 }
 0xf9e   : > { %3273 = vmatpush.bf16.msra.mxu0 %v4604_v28 }
0x1008   : > { %v2945_v62 = vpop.xlane.xlu0 %2944 }
0x1009   : > { %v2946_v56 = vmul.f32 %v2945_v62, %v5670_v54  ;;  %v4704_v54 = vor.u32 %v5082_v8, %v4703_v7  ;;  %v4660_v62 = vor.u32 %v5068_v44, %v4657_v45  ;;  %v5064_v8 = vld [vmem:[#allocation8 + $0x4c] sm:$0xf]  ;;  %v5099_v45 = vld [vmem:[#allocation10 + $0x60] sm:$0xff] }
0x100a   : > { %v5116_v44 = vld [vmem:[#allocation10 + $0xe8] sm:$0xff] }
0x100b   : > { %v5821_v4 = vadd.f32 1e-12, %v2946_v56  ;;  %3280 = vmatpush.bf16.msrb.mxu1 %v4704_v54  ;;  %3296 = vmatpush.bf16.msra.mxu2 %v4660_v62  ;;  %v4641_v54 = vld [vmem:[#allocation8 + $0x58] sm:$0xf0] }
0x100c   : > { %v5090_v62 = vld [vmem:[#allocation10 + $0x18] sm:$0xff] }
0x100d   : > { %5241 = vrsqrt.f32 %v5821_v4  ;;  %vm2954_vm15 = vweird.f32 %v5821_v4 }
0x100f   : > { %3281 = vmatpush.bf16.msrb.mxu1 %v4688_v21  ;;  %v4599_v21 = vld [vmem:[#allocation8] sm:$0xf] }
0x1010   : > { %v4600_v24 = vor.u32 %v5057_v22, %v4599_v21 }
0x1012   : > { %3260 = vmatpush.bf16.msra.mxu3 %v4600_v24 }
0x1013   : > { %v5242_v33 = vpop.eup %5241  ;;  %3282 = vmatpush.bf16.msrb.mxu1 %v4672_v35  ;;  %v5094_v35 = vld [vmem:[#allocation10 + $0x38] sm:$0xff] }
0x1014   : > { %v2949_v57 = vmul.f32 %v5242_v33, %v5821_v4  ;;  %vm2955_vm11 = vweird.f32 %v5242_v33  ;;  %v4639_v4 = vld [vmem:[#allocation8 + $0x48] sm:$0xf] }
0x1015   : > { %vm2956_vm3 = vmor %vm2954_vm15, %vm2955_vm11  ;;  %v4640_v7 = vor.u32 %v5066_v5, %v4639_v4  ;;  %v5103_v4 = vld [vmem:[#allocation10 + $0x80] sm:$0xff]  ;;  %v5088_v5 = vld [vmem:[#allocation10 + $0x8] sm:$0xff] }
0x1016   : > { %v2950_v46 = vmul.f32 %v5242_v33, %v2949_v57  ;;  %3573 = vmatpush.bf16.msrb.mxu3 %v5094_v35  ;;  %v5093_v57 = vld [vmem:[#allocation10 + $0x30] sm:$0xff] }
0x1017   : > { %3283 = vmatpush.bf16.msrb.mxu1 %v4656_v49  ;;  %v5098_v49 = vld [vmem:[#allocation10 + $0x58] sm:$0xff] }
0x1018   : > { %v2951_v50 = vmul.f32 0.5, %v2950_v46  ;;  %v5107_v46 = vld [vmem:[#allocation10 + $0xa0] sm:$0xff] }
0x101a   : > { %v2952_v51 = vsub.f32 1.5, %v2951_v50  ;;  %3574 = vmatpush.bf16.msrb.mxu3 %v5093_v57  ;;  %v5106_v50 = vld [vmem:[#allocation10 + $0x98] sm:$0xff] }
0x101b   : > { %3284 = vmatpush.bf16.msrb.mxu1 %v4640_v7  ;;  %v5087_v7 = vld [vmem:[#allocation10] sm:$0xff] }
0x101c   : > { %v2953_v52 = vmul.f32 %v5242_v33, %v2952_v51  ;;  %v5114_v51 = vld [vmem:[#allocation10 + $0xd8] sm:$0xff] }
0x101e   : > { %v2957_v55 = vsel %vm2956_vm3, %v5242_v33, %v2953_v52  ;;  %v5102_v33 = vld [vmem:[#allocation10 + $0x78] sm:$0xff]  ;;  %3575 = vmatpush.bf16.msrb.mxu3 %v5092_v23 }
0x101f   : > { %v2958_v56 = vmul.f32 %v2957_v55, %v5795_v41  ;;  %v4644_v41 = vor.u32 %v5064_v8, %v4641_v54  ;;  %3285 = vmatpush.bf16.msrb.mxu1 %v4624_v17  ;;  %3586 = vmatpush.bf16.msrb.mxu0 %v5102_v33  ;;  %v5199_v52 = vld [vmem:[%s5865_s15] ss:$0 sm:$0xff]  ;;  %v5105_v55 = vld [vmem:[#allocation10 + $0x90] sm:$0xff]  ;;  %v5111_v8 = vld [vmem:[#allocation10 + $0xc0] sm:$0xff] }
0x1020   : > { %v3083_v54 = vld [vmem:[%s5867_s17] sm:$0xf] }
0x1021   : > { %v2962_v59 = vmul.f32 %v5197_v53, %v2958_v56  ;;  %3297 = vmatpush.bf16.msra.mxu2 %v4644_v41  ;;  %v5097_v53 = vld [vmem:[#allocation10 + $0x50] sm:$0xff]  ;;  %v3086_v41 = vperm.slane %v3083_v54, 1  ;;  %v3087_v9 = vperm.slane %v3083_v54, 2  ;;  %v3085_v15 = vperm.slane %v3083_v54, 0 }
0x1022   : > { %3576 = vmatpush.bf16.msrb.mxu3 %v5091_v47  ;;  %v3088_v17 = vperm.slane %v3083_v54, 3 }
0x1023   : > { %v2966_v60 = vadd.f32 %v5198_v58, %v2962_v59  ;;  %3286 = vmatpush.bf16.msrb.mxu1 %v4608_v29  ;;  %3587 = vmatpush.bf16.msrb.mxu0 %v5101_v38 }
0x1025   : > { %v2967_v61 = vpack.c.bf16 %v2966_v60, %v2966_v60  ;;  %3298 = vmatpush.bf16.msra.mxu2 %v4628_v20 }
0x1026   : > { %3577 = vmatpush.bf16.msrb.mxu3 %v5090_v62 }
0x1027   : > { %3044 = vmatmul.bf16.vlgmr.msrb.gmra.mxu2 %v2967_v61  ;;  %3599 = vmatpush.bf16.msra.mxu1 %v5110_v34 }
0x1028   : > { %3588 = vmatpush.bf16.msrb.mxu0 %v5100_v43 }
0x1029   : > { %3299 = vmatpush.bf16.msra.mxu2 %v4612_v32 }
0x102a   : > { %3578 = vmatpush.bf16.msrb.mxu3 %v5089_v2 }
0x102b   : > { %3600 = vmatpush.bf16.msra.mxu1 %v5109_v39 }
0x102c   : > { %3589 = vmatpush.bf16.msrb.mxu0 %v5099_v45 }
0x102d   : > { %3612 = vmatpush.bf16.msrb.mxu2 %v5118_v37  ;;  %v5200_v37 = vld [vmem:[%s5893_s24] ss:$0 sm:$0xff] }
0x102e   : > { %3579 = vmatpush.bf16.msrb.mxu3 %v5088_v5 }
0x102f   : > { %3601 = vmatpush.bf16.msra.mxu1 %v5108_v63 }
0x1030   : > { %3590 = vmatpush.bf16.msrb.mxu0 %v5098_v49 }
0x1031   : > { %3613 = vmatpush.bf16.msrb.mxu2 %v5117_v42 }
0x1032   : > { %3580 = vmatpush.bf16.msrb.mxu3 %v5087_v7 }
0x1033   : > { %3602 = vmatpush.bf16.msra.mxu1 %v5107_v46 }
0x1034   : > { %3591 = vmatpush.bf16.msrb.mxu0 %v5097_v53 }
0x1035   : > { %3614 = vmatpush.bf16.msrb.mxu2 %v5116_v44 }
0x1037   : > { %3603 = vmatpush.bf16.msra.mxu1 %v5106_v50 }
0x1038   : > { %3592 = vmatpush.bf16.msrb.mxu0 %v5096_v0 }
0x1039   : > { %3615 = vmatpush.bf16.msrb.mxu2 %v5115_v48 }
0x103b   : > { %3604 = vmatpush.bf16.msra.mxu1 %v5105_v55 }
0x103c   : > { %3593 = vmatpush.bf16.msrb.mxu0 %v5095_v19 }
0x103d   : > { %3616 = vmatpush.bf16.msrb.mxu2 %v5114_v51 }
0x103f   : > { %3605 = vmatpush.bf16.msra.mxu1 %v5104_v1 }
0x1041   : > { %3617 = vmatpush.bf16.msrb.mxu2 %v5113_v3 }
0x1043   : > { %3606 = vmatpush.bf16.msra.mxu1 %v5103_v4 }
0x1045   : > { %3618 = vmatpush.bf16.msrb.mxu2 %v5112_v6 }
0x1049   : > { %3619 = vmatpush.bf16.msrb.mxu2 %v5111_v8 }
0x10aa   : > { %v3045_v56 = vpop.f32.mrf.mxu2 }
0x10ab   : > { %v3046_v58 = vadd.f32 %v5199_v52, %v3045_v56 }
0x10ad   : > { %5243 = vtanh.f32 %v3046_v58 }
0x10b2   : > { %v3047_v59 = vpop.f32.mrf.mxu2 }
0x10b3   : > { %v5244_v60 = vpop.eup %5243 }
0x10b4   : > { %v3050_v61 = vpack.c.bf16 %v5244_v60, %v5244_v60 }
0x10b6   : > { %3261 = vmatmul.bf16.vlgmr.msra.gmra.mxu3 %v3050_v61  ;;  %3274 = vmatmul.bf16.vlgmr.msra.gmra.mxu0 %v3050_v61 }
0x10b7   : > { %3287 = vmatmul.bf16.vlgmr.msrb.gmra.mxu1 %v3050_v61  ;;  %3300 = vmatmul.bf16.vlgmr.msra.gmra.mxu2 %v3050_v61 }
0x1133   : > { %v3275_v10 = vpop.f32.mrf.mxu0 }
0x1134   : > { %v3276_v11 = vadd.f32 %v3275_v10, %v3086_v41  ;;  %v3288_v12 = vpop.f32.mrf.mxu1 }
0x1135   : > { %v3289_v13 = vadd.f32 %v3288_v12, %v3087_v9 }
0x1136   : > { %v3306_v14 = vmax.f32 %v3276_v11, 0.0 }
0x1137   : > { %v3307_v16 = vmax.f32 %v3289_v13, 0.0 }
0x1138   : > { %v3310_v18 = vpack.c.bf16 %v3306_v14, %v3306_v14 }
0x1139   : > { %v3311_v40 = vpack.c.bf16 %v3307_v16, %v3307_v16  ;;  %v3262_v20 = vpop.f32.mrf.mxu3 }
0x113a   : > { %v3263_v21 = vadd.f32 %v3262_v20, %v3085_v15  ;;  %v3301_v22 = vpop.f32.mrf.mxu2  ;;  %3594 = vmatmul.bf16.vlgmr.msrb.gmra.mxu0 %v3310_v18 }
0x113b   : > { %v3302_v36 = vadd.f32 %v3301_v22, %v3088_v17  ;;  %3607 = vmatmul.bf16.vlgmr.msra.gmra.mxu1 %v3311_v40  ;;  %v3277_v24 = vpop.f32.mrf.mxu0 }
0x113c   : > { %v3305_v25 = vmax.f32 %v3263_v21, 0.0  ;;  %v3290_v26 = vpop.f32.mrf.mxu1 }
0x113d   : > { %v3308_v27 = vmax.f32 %v3302_v36, 0.0 }
0x113e   : > { %v3309_v28 = vpack.c.bf16 %v3305_v25, %v3305_v25 }
0x113f   : > { %v3312_v29 = vpack.c.bf16 %v3308_v27, %v3308_v27 }
0x1140   : > { %3581 = vmatmul.bf16.vlgmr.msrb.gmra.mxu3 %v3309_v28 }
0x1141   : > { %3620 = vmatmul.bf16.vlgmr.msrb.gmra.mxu2 %v3312_v29  ;;  %v3264_v30 = vpop.f32.mrf.mxu3 }
0x1142   : > { %v3303_v31 = vpop.f32.mrf.mxu2 }
0x11b7   : > { %v3595_v32 = vpop.f32.mrf.mxu0 }
0x11b8   : > { %v3608_v33 = vpop.f32.mrf.mxu1 }
0x11bf   : > { %v3597_v34 = vpop.f32.mrf.mxu0 }
0x11c0   : > { %v3610_v35 = vpop.f32.mrf.mxu1 }
0x11c3   : > { %v3582_v38 = vpop.f32.mrf.mxu3 }
0x11c4   : > { %v3583_v39 = vadd.f32 %v5200_v37, %v3582_v38  ;;  %v3621_v57 = vpop.f32.mrf.mxu2 }
0x11c6   : > { %v3596_v42 = vadd.f32 %v3595_v32, %v3583_v39 }
0x11c8   : > { %v3609_v43 = vadd.f32 %v3608_v33, %v3596_v42 }
0x11ca   : > { %v3622_v63 = vadd.f32 %v3621_v57, %v3609_v43 }
0x11cb   : > { %v3584_v23 = vpop.f32.mrf.mxu3 }
0x11cc   : > { %v3623_v44 = vpop.f32.mrf.mxu2  ;;  %3625 = vmax.xlane.f32.xlu2 %v3622_v63 }
0x123f   : > { %v3626_v45 = vpop.xlane.xlu2 %3625 }
0x1240   : > { %v3627_v46 = vsub.f32 %v3622_v63, %v3626_v45 }
0x1242   : > { %v3628_v47 = vmul.f32 1.442695, %v3627_v46 }
0x1244   : > { %5245 = vpow2.f32 %v3628_v47 }
0x124a   : > { %v5246_v48 = vpop.eup %5245 }
0x124b   : > { %3630 = vadd.xlane.f32.xlu2 %v5246_v48 }
0x12be   : > { %v3631_v49 = vpop.xlane.xlu2 %3630 }
0x12bf   : > { %5247 = vlog2.f32 %v3631_v49 }
0x12c5   : > { %v5248_v50 = vpop.eup %5247 }
0x12c6   : > { %v3633_v62 = vmul.f32 0.6931472, %v5248_v50 }
0x12c8   : > { %v3634_v51 = vsub.f32 %v3627_v46, %v3633_v62 }
0x12ca   : > { %3635 = vst [vmem:[%s721_s27] sm:$0xff] %v3634_v51 }
0x12cb PF: > { %s5895_s19 = sld [smem:[#allocation14_spill]] }
0x12d1   : > { %s33_s1 = sadd.s32 1, %s5895_s19  }
0x12d2   : > { %p30_p7 = scmp.ge.s32.totalorder %s33_s1, 4  }
0x12d4   :  { %32 = sbr.rel (!%p30_p7) target bundleno = 13 (0xd), region = 166 }
0x12d9   :  { %3655 = vsyncpa [#allocation4], 1 }
0x12da   :  { %3657 = vsyncpa [#allocation4 + $0x1], 1 }
0x12db   :  { %3658 = vsyncpa [#allocation6], 1 }
0x12dc   :  { %3659 = vsyncpa [#allocation9], 1 }

</bundles_post_ra>
